<compile_context>
chip_gen: v5e
topology: v5e:2x2
jax: 0.10.0
libtpu: 0.0.40
codegen_flags: <defaults>
</compile_context>

<pallas_src>
import jax
import jax.numpy as jnp
from jax.experimental import pallas as pl
from jax.experimental.pallas import tpu as pltpu

_LANE = 128


def _round_up(n: int, m: int) -> int:
    return ((n + m - 1) // m) * m


def _demo_model_kernel(x_ref, w1_ref, b1_ref, w2_ref, b2_ref,
                       wh_ref, bh_ref, out_ref):
    # state_embed: Linear(2048 -> 512) + ReLU.  bf16 MXU inputs, fp32 accumulate.
    x = x_ref[...].astype(jnp.bfloat16)
    h1 = jnp.dot(x, w1_ref[...], preferred_element_type=jnp.float32) + b1_ref[...]
    h1 = jnp.maximum(h1, 0.0).astype(jnp.bfloat16)

    # hidden_fc: Linear(512 -> 128) + ReLU (shared by both heads).
    h2 = jnp.dot(h1, w2_ref[...], preferred_element_type=jnp.float32) + b2_ref[...]
    h2 = jnp.maximum(h2, 0.0).astype(jnp.bfloat16)

    # Fused pi|v head: Linear(128 -> action_size + 1), zero-padded to 128 lanes
    # so this is one MXU pass and one unmasked lane-dense store.
    out_ref[...] = (jnp.dot(h2, wh_ref[...], preferred_element_type=jnp.float32)
                    + bh_ref[...])


def pack_params(p, action_size):
    """Convert fp32 (PyTorch-layout-equivalent) params into kernel params:
    bf16 weights, fp32 biases, pi/v heads fused and zero-padded to 128 lanes."""
    head_pad = _round_up(action_size + 1, _LANE)

    w_head = jnp.zeros((128, head_pad), jnp.float32)
    w_head = w_head.at[:, :action_size].set(p["w_pi"])
    w_head = w_head.at[:, action_size:action_size + 1].set(p["w_v"])

    b_head = jnp.zeros((1, head_pad), jnp.float32)
    b_head = b_head.at[:, :action_size].set(p["b_pi"])
    b_head = b_head.at[:, action_size:action_size + 1].set(p["b_v"])

    return dict(
        w1=p["w1"].astype(jnp.bfloat16), b1=p["b1"],
        w2=p["w2"].astype(jnp.bfloat16), b2=p["b2"],
        w_head=w_head.astype(jnp.bfloat16), b_head=b_head,
        head_pad=head_pad,
    )


def demo_model_forward(fc, kparams, action_size):
    """fc: (B, 2048) float32.  kparams: output of pack_params.  Returns dict."""
    B = fc.shape[0]
    head_pad = kparams["head_pad"]

    flops = 2 * B * (2048 * 512 + 512 * 128 + 128 * head_pad)
    bytes_accessed = (
        fc.size * fc.dtype.itemsize
        + sum(kparams[k].size * kparams[k].dtype.itemsize
              for k in ("w1", "b1", "w2", "b2", "w_head", "b_head"))
        + B * head_pad * 4)

    vmem = pl.BlockSpec(memory_space=pltpu.MemorySpace.VMEM)

    head_out = pl.pallas_call(
        _demo_model_kernel,
        out_shape=jax.ShapeDtypeStruct((B, head_pad), jnp.float32),
        in_specs=[vmem] * 7,
        out_specs=vmem,
        cost_estimate=pl.CostEstimate(flops=flops, transcendentals=0,
                                      bytes_accessed=bytes_accessed),
    )(fc,
      kparams["w1"], kparams["b1"],
      kparams["w2"], kparams["b2"],
      kparams["w_head"], kparams["b_head"])

    return dict(policy=head_out[:, :action_size],
                value=head_out[:, action_size:action_size + 1])


def init_params(key, action_size):
    """Deterministic synthetic fp32 init (shapes match the nn.Linear layers,
    stored as (in_features, out_features) so y = x @ W + b)."""
    ks = jax.random.split(key, 8)

    def lin(kw, kb, fan_in, fan_out):
        bound = 1.0 / jnp.sqrt(fan_in)
        w = jax.random.uniform(kw, (fan_in, fan_out), jnp.float32, -bound, bound)
        b = jax.random.uniform(kb, (1, fan_out), jnp.float32, -bound, bound)
        return w, b

    w1, b1 = lin(ks[0], ks[1], 2048, 512)
    w2, b2 = lin(ks[2], ks[3], 512, 128)
    w_pi, b_pi = lin(ks[4], ks[5], 128, action_size)
    w_v, b_v = lin(ks[6], ks[7], 128, 1)
    return dict(w1=w1, b1=b1, w2=w2, b2=b2,
                w_pi=w_pi, b_pi=b_pi, w_v=w_v, b_v=b_v)


def reference_forward(fc, p):
    """Pure-JAX fp32 reference matching the PyTorch module."""
    h1 = jnp.maximum(fc @ p["w1"] + p["b1"], 0.0)
    h2 = jnp.maximum(fc @ p["w1"] + p["b1"], 0.0) @ p["w2"] + p["b2"]  # recompute not needed; keep simple
    h2 = jnp.maximum(h1 @ p["w2"] + p["b2"], 0.0)
    return dict(policy=h2 @ p["w_pi"] + p["b_pi"],
                value=h2 @ p["w_v"] + p["b_v"])


if __name__ == "__main__":
    key = jax.random.PRNGKey(0)
    k_x, k_p = jax.random.split(key)

    batch = 8
    action_size = 6

    fc = jax.random.normal(k_x, (batch, 2048), jnp.float32)
    params = init_params(k_p, action_size)
    kparams = pack_params(params, action_size)

    out = demo_model_forward(fc, kparams, action_size)
    out = jax.tree_util.tree_map(jax.block_until_ready, out)

    ref = reference_forward(fc, params)
    assert out["policy"].shape == (batch, action_size)
    assert out["value"].shape == (batch, 1)
    # bf16 weight/activation storage with fp32 accumulation -> relaxed tolerance
    # vs. the fp32 reference.
    assert jnp.allclose(out["policy"], ref["policy"], atol=5e-2, rtol=5e-2)
    assert jnp.allclose(out["value"], ref["value"], atol=5e-2, rtol=5e-2)

    print("KERNEL_OK")
</pallas_src>

<mosaic_0001>
module attributes {stable_mosaic.version = 11 : i64} {
  func.func @_demo_model_kernel(%arg0: memref<8x2048xf32, #tpu.memory_space<vmem>>, %arg1: memref<2048x512xbf16, #tpu.memory_space<vmem>>, %arg2: memref<1x512xf32, #tpu.memory_space<vmem>>, %arg3: memref<512x128xbf16, #tpu.memory_space<vmem>>, %arg4: memref<1x128xf32, #tpu.memory_space<vmem>>, %arg5: memref<128x128xbf16, #tpu.memory_space<vmem>>, %arg6: memref<1x128xf32, #tpu.memory_space<vmem>>, %arg7: memref<8x128xf32, #tpu.memory_space<vmem>>) attributes {dimension_semantics = [], scalar_prefetch = 0 : i64, scratch_operands = 0 : i64, tpu.core_type = #tpu.core_type<tc>} {
    %c0 = arith.constant 0 : index
    %c0_0 = arith.constant 0 : index
    %0 = vector.load %arg0[%c0, %c0_0] : memref<8x2048xf32, #tpu.memory_space<vmem>>, vector<8x2048xf32>
    %1 = arith.truncf %0 : vector<8x2048xf32> to vector<8x2048xbf16>
    %c0_1 = arith.constant 0 : index
    %c0_2 = arith.constant 0 : index
    %2 = vector.load %arg1[%c0_1, %c0_2] : memref<2048x512xbf16, #tpu.memory_space<vmem>>, vector<2048x512xbf16>
    %cst = arith.constant dense<0.000000e+00> : vector<8x512xf32>
    %3 = tpu.matmul %1, %2, %cst {dimension_numbers = #tpu.dot_dimension_numbers<[1], [0], [0], [1], [0, 0, 1, 1], [], []>} : vector<8x2048xbf16>, vector<2048x512xbf16>, vector<8x512xf32> -> vector<8x512xf32>
    %c0_3 = arith.constant 0 : index
    %c0_4 = arith.constant 0 : index
    %4 = vector.load %arg2[%c0_3, %c0_4] : memref<1x512xf32, #tpu.memory_space<vmem>>, vector<1x512xf32>
    %5 = vector.broadcast %4 : vector<1x512xf32> to vector<8x512xf32>
    %6 = arith.addf %3, %5 : vector<8x512xf32>
    %cst_5 = arith.constant 0.000000e+00 : f32
    %7 = vector.broadcast %cst_5 : f32 to vector<8x512xf32>
    %8 = arith.maximumf %6, %7 : vector<8x512xf32>
    %9 = arith.truncf %8 : vector<8x512xf32> to vector<8x512xbf16>
    %c0_6 = arith.constant 0 : index
    %c0_7 = arith.constant 0 : index
    %10 = vector.load %arg3[%c0_6, %c0_7] : memref<512x128xbf16, #tpu.memory_space<vmem>>, vector<512x128xbf16>
    %cst_8 = arith.constant dense<0.000000e+00> : vector<8x128xf32>
    %11 = tpu.matmul %9, %10, %cst_8 {dimension_numbers = #tpu.dot_dimension_numbers<[1], [0], [0], [1], [0, 0, 1, 1], [], []>} : vector<8x512xbf16>, vector<512x128xbf16>, vector<8x128xf32> -> vector<8x128xf32>
    %c0_9 = arith.constant 0 : index
    %c0_10 = arith.constant 0 : index
    %12 = vector.load %arg4[%c0_9, %c0_10] : memref<1x128xf32, #tpu.memory_space<vmem>>, vector<1x128xf32>
    %13 = vector.broadcast %12 : vector<1x128xf32> to vector<8x128xf32>
    %14 = arith.addf %11, %13 : vector<8x128xf32>
    %cst_11 = arith.constant 0.000000e+00 : f32
    %15 = vector.broadcast %cst_11 : f32 to vector<8x128xf32>
    %16 = arith.maximumf %14, %15 : vector<8x128xf32>
    %17 = arith.truncf %16 : vector<8x128xf32> to vector<8x128xbf16>
    %c0_12 = arith.constant 0 : index
    %c0_13 = arith.constant 0 : index
    %18 = vector.load %arg5[%c0_12, %c0_13] : memref<128x128xbf16, #tpu.memory_space<vmem>>, vector<128x128xbf16>
    %cst_14 = arith.constant dense<0.000000e+00> : vector<8x128xf32>
    %19 = tpu.matmul %17, %18, %cst_14 {dimension_numbers = #tpu.dot_dimension_numbers<[1], [0], [0], [1], [0, 0, 1, 1], [], []>} : vector<8x128xbf16>, vector<128x128xbf16>, vector<8x128xf32> -> vector<8x128xf32>
    %c0_15 = arith.constant 0 : index
    %c0_16 = arith.constant 0 : index
    %20 = vector.load %arg6[%c0_15, %c0_16] : memref<1x128xf32, #tpu.memory_space<vmem>>, vector<1x128xf32>
    %21 = vector.broadcast %20 : vector<1x128xf32> to vector<8x128xf32>
    %22 = arith.addf %19, %21 : vector<8x128xf32>
    %c0_17 = arith.constant 0 : index
    %c0_18 = arith.constant 0 : index
    %23 = vector.load %arg7[%c0_17, %c0_18] : memref<8x128xf32, #tpu.memory_space<vmem>>, vector<8x128xf32>
    tpu.vector_store %arg7[%c0_17, %c0_18], %22 {strides = array<i32>} : memref<8x128xf32, #tpu.memory_space<vmem>>, vector<8x128xf32>,
    return
  }
}

</mosaic_0001>

<bundles_post_ra>
// kernel: tpu_custom_call.1
= control target key start
LH: loop header
LB: loop body
LE: loop exit
PB: predicated region body
PF: predicated region fallthrough
CT: control target
= control target key end

     0   :  { %12 = vsyncpa [#allocation3], 0  ;;  %s7703_s0 = inlined_call_operand.hbm [shape: f32[8,2048], index: 0, kind: input, shape index: {}]   ;;  %s7704_s1 = inlined_call_operand.hbm [shape: bf16[2048,512], index: 1, kind: input, shape index: {}]   ;;  %s7705_s2 = inlined_call_operand.hbm [shape: f32[1,512], index: 2, kind: input, shape index: {}]   ;;  %s7706_s3 = inlined_call_operand.hbm [shape: bf16[512,128], index: 3, kind: input, shape index: {}]   ;;  %s7707_s4 = inlined_call_operand.hbm [shape: f32[1,128], index: 4, kind: input, shape index: {}]   ;;  %s7708_s5 = inlined_call_operand.hbm [shape: bf16[128,128], index: 5, kind: input, shape index: {}]   ;;  %s7709_s6 = inlined_call_operand.hbm [shape: f32[1,128], index: 6, kind: input, shape index: {}]   ;;  %s7710_s7 = inlined_call_operand.hbm [shape: f32[8,128], index: 7, kind: output, shape index: {}]  }
   0x1   :  { %13 = vsyncpa [#allocation6], 0 }
   0x2   :  { %14 = vsyncpa [#allocation9], 0 }
   0x3   :  { %15 = vsyncpa [#allocation12], 0  ;;  %s32_s26 = sshll.u32 %s7704_s1, 4  ;;  %s33_s26 = int_to_ptr.hbm [resolvable:$true] %s32_s26 }
   0x4   :  { %16 = vsyncpa [#allocation4], 0  ;;  %s7476_s27 = smov [#allocation5]   ;;  %s56_s8 = sshll.u32 %s7706_s3, 4  ;;  %s57_s8 = int_to_ptr.hbm [resolvable:$true] %s56_s8 }
   0x5   :  { %s34_s28 = sshll.u32 %s7476_s27, 4  ;;  %s7477_s9 = smov 256   ;;  %s35_s28 = int_to_ptr.vmem [resolvable:$true] %s34_s28 }
   0x6   :  { %s7478_s10 = smov 16   ;;  %s7479_s11 = smov [#allocation8]  }
   0x7   :  { %40 = dma.hbm_to_vmem [thread:$0]  %s33_s26, 65536, %s35_s28, [#allocation6], %s7477_s9, %s7477_s9, %s7478_s10  }
   0x8   :  { %s58_s12 = sshll.u32 %s7479_s11, 4  ;;  %s7480_s13 = smov 64   ;;  %s59_s12 = int_to_ptr.vmem [resolvable:$true] %s58_s12 }
   0x9   :  { %s7481_s14 = smov 4   ;;  %s80_s16 = sshll.u32 %s7708_s5, 4  ;;  %s81_s16 = int_to_ptr.hbm [resolvable:$true] %s80_s16 }
   0xa   :  { %64 = dma.hbm_to_vmem [thread:$0]  %s57_s8, 4096, %s59_s12, [#allocation9], %s7480_s13, %s7480_s13, %s7481_s14  }
   0xb   :  { %s7482_s17 = smov [#allocation11]   ;;  %s22_s20 = sshll.u32 %s7703_s0, 4  ;;  %s23_s20 = int_to_ptr.hbm [resolvable:$true] %s22_s20 }
   0xc   :  { %s82_s18 = sshll.u32 %s7482_s17, 4  ;;  %s7483_s21 = smov [#allocation2]   ;;  %s83_s18 = int_to_ptr.vmem [resolvable:$true] %s82_s18 }
   0xd   :  { %88 = dma.hbm_to_vmem [thread:$0]  %s81_s16, 1024, %s83_s18, [#allocation12], %s7480_s13, %s7480_s13, %s7481_s14  }
   0xe   :  { %s24_s22 = sshll.u32 %s7483_s21, 4  ;;  %s46_s25 = sshll.u32 %s7705_s2, 4  ;;  %s25_s22 = int_to_ptr.vmem [resolvable:$true] %s24_s22  ;;  %s47_s25 = int_to_ptr.hbm [resolvable:$true] %s46_s25 }
   0xf   :  { %27 = dma.hbm_to_vmem [thread:$0]  %s23_s20, 2048, %s25_s22, [#allocation3]  }
  0x10   :  { %s70_s27 = sshll.u32 %s7707_s4, 4  ;;  %s7484_s28 = smov [#allocation7]   ;;  %s71_s27 = int_to_ptr.hbm [resolvable:$true] %s70_s27 }
  0x11   :  { %s48_s29 = sshll.u32 %s7484_s28, 4  ;;  %s7485_s0 = smov [#allocation10]   ;;  %s49_s29 = int_to_ptr.vmem [resolvable:$true] %s48_s29 }
  0x12   :  { %51 = dma.hbm_to_vmem [thread:$0]  %s47_s25, 64, %s49_s29, [#allocation6]  }
  0x13   :  { %s72_s30 = sshll.u32 %s7485_s0, 4  ;;  %s94_s10 = sshll.u32 %s7709_s6, 4  ;;  %s73_s30 = int_to_ptr.vmem [resolvable:$true] %s72_s30  ;;  %s95_s10 = int_to_ptr.hbm [resolvable:$true] %s94_s10 }
  0x14   :  { %75 = dma.hbm_to_vmem [thread:$0]  %s71_s27, 16, %s73_s30, [#allocation9]  }
  0x15   :  { %s7486_s2 = smov [#allocation13]  }
  0x16   :  { %s96_s11 = sshll.u32 %s7486_s2, 4  ;;  %s97_s11 = int_to_ptr.vmem [resolvable:$true] %s96_s11 }
  0x17   :  { %99 = dma.hbm_to_vmem [thread:$0]  %s95_s10, 16, %s97_s11, [#allocation12]  }
  0x18   :  { %7466 = dma.done.wait [#allocation3], 2048  }
  0x19   :  { %7467 = vsyncadd [#allocation3], 4294965248 }
  0x1a   :  { %7468 = dma.done.wait [#allocation6], 65600  }
  0x1b   :  { %7469 = vsyncadd [#allocation6], 4294901696 }
  0x1c   :  { %7470 = dma.done.wait [#allocation9], 4112  }
  0x1d   :  { %7471 = vsyncadd [#allocation9], 4294963184 }
  0x1e   :  { %7472 = dma.done.wait [#allocation12], 1040  }
  0x1f   :  { %7473 = vsyncadd [#allocation12], 4294966256  ;;  %v4612_v0 = vld [vmem:[#allocation5 + $0xe0] sm:$0xf]  ;;  %v6736_v1 = vld [vmem:[#allocation5 + $0xec] sm:$0xf0] }
  0x20   :  { %v4740_v2 = vld [vmem:[#allocation5 + $0x1e0] sm:$0xf]  ;;  %v4613_v3 = vor.u32 %v6736_v1, %v4612_v0  ;;  %v6768_v4 = vld [vmem:[#allocation5 + $0x1ec] sm:$0xf0]  ;;  %s7487_s4 = smov [#allocation14]   ;;  %s4485_s14 = sshll.u32 %s7710_s7, 4  ;;  %s4486_s14 = int_to_ptr.hbm [resolvable:$true] %s4485_s14 }
  0x21   :  { %v4868_v5 = vld [vmem:[#allocation5 + $0x2e0] sm:$0xf]  ;;  %v6800_v6 = vld [vmem:[#allocation5 + $0x2ec] sm:$0xf0]  ;;  %v4741_v7 = vor.u32 %v6768_v4, %v4740_v2  ;;  %s4483_s6 = sshll.u32 %s7487_s4, 4  ;;  %s4484_s6 = int_to_ptr.vmem [resolvable:$true] %s4483_s6 }
  0x22   :  { %v4869_v8 = vor.u32 %v6800_v6, %v4868_v5  ;;  %v4996_v9 = vld [vmem:[#allocation5 + $0x3e0] sm:$0xf]  ;;  %v6832_v10 = vld [vmem:[#allocation5 + $0x3ec] sm:$0xf0]  ;;  %3242 = vmatpush.bf16.msra.mxu0 %v4613_v3 }
  0x23   :  { %v4596_v11 = vld [vmem:[#allocation5 + $0xc0] sm:$0xf]  ;;  %v4997_v12 = vor.u32 %v6832_v10, %v4996_v9  ;;  %v6732_v13 = vld [vmem:[#allocation5 + $0xcc] sm:$0xf0]  ;;  %3255 = vmatpush.bf16.msra.mxu1 %v4741_v7 }
  0x24   :  { %v4724_v14 = vld [vmem:[#allocation5 + $0x1c0] sm:$0xf]  ;;  %v6764_v15 = vld [vmem:[#allocation5 + $0x1cc] sm:$0xf0]  ;;  %3268 = vmatpush.bf16.msra.mxu2 %v4869_v8  ;;  %v4597_v16 = vor.u32 %v6732_v13, %v4596_v11 }
  0x25   :  { %v4725_v17 = vor.u32 %v6764_v15, %v4724_v14  ;;  %v4852_v18 = vld [vmem:[#allocation5 + $0x2c0] sm:$0xf]  ;;  %v6796_v19 = vld [vmem:[#allocation5 + $0x2cc] sm:$0xf0]  ;;  %3281 = vmatpush.bf16.msra.mxu3 %v4997_v12 }
  0x26   :  { %v4980_v20 = vld [vmem:[#allocation5 + $0x3c0] sm:$0xf]  ;;  %v4853_v21 = vor.u32 %v6796_v19, %v4852_v18  ;;  %v6828_v22 = vld [vmem:[#allocation5 + $0x3cc] sm:$0xf0]  ;;  %3243 = vmatpush.bf16.msra.mxu0 %v4597_v16 }
  0x27   :  { %v4580_v23 = vld [vmem:[#allocation5 + $0xa0] sm:$0xf]  ;;  %v6728_v24 = vld [vmem:[#allocation5 + $0xac] sm:$0xf0]  ;;  %v4981_v25 = vor.u32 %v6828_v22, %v4980_v20  ;;  %3256 = vmatpush.bf16.msra.mxu1 %v4725_v17 }
  0x28   :  { %v4708_v26 = vld [vmem:[#allocation5 + $0x1a0] sm:$0xf]  ;;  %v6760_v27 = vld [vmem:[#allocation5 + $0x1ac] sm:$0xf0]  ;;  %v4581_v29 = vor.u32 %v6728_v24, %v4580_v23  ;;  %3269 = vmatpush.bf16.msra.mxu2 %v4853_v21 }
  0x29   :  { %v4836_v28 = vld [vmem:[#allocation5 + $0x2a0] sm:$0xf]  ;;  %v6792_v30 = vld [vmem:[#allocation5 + $0x2ac] sm:$0xf0]  ;;  %v4709_v33 = vor.u32 %v6760_v27, %v4708_v26  ;;  %3282 = vmatpush.bf16.msra.mxu3 %v4981_v25 }
  0x2a   :  { %v4964_v31 = vld [vmem:[#allocation5 + $0x3a0] sm:$0xf]  ;;  %v6824_v32 = vld [vmem:[#allocation5 + $0x3ac] sm:$0xf0]  ;;  %v4837_v34 = vor.u32 %v6792_v30, %v4836_v28  ;;  %3244 = vmatpush.bf16.msra.mxu0 %v4581_v29 }
  0x2b   :  { %v4564_v35 = vld [vmem:[#allocation5 + $0x80] sm:$0xf]  ;;  %v6724_v36 = vld [vmem:[#allocation5 + $0x8c] sm:$0xf0]  ;;  %v4965_v38 = vor.u32 %v6824_v32, %v4964_v31  ;;  %3257 = vmatpush.bf16.msra.mxu1 %v4709_v33 }
  0x2c   :  { %v4692_v37 = vld [vmem:[#allocation5 + $0x180] sm:$0xf]  ;;  %v6756_v39 = vld [vmem:[#allocation5 + $0x18c] sm:$0xf0]  ;;  %v4565_v44 = vor.u32 %v6724_v36, %v4564_v35  ;;  %3270 = vmatpush.bf16.msra.mxu2 %v4837_v34 }
  0x2d   :  { %v4820_v40 = vld [vmem:[#allocation5 + $0x280] sm:$0xf]  ;;  %v6788_v41 = vld [vmem:[#allocation5 + $0x28c] sm:$0xf0]  ;;  %v4693_v45 = vor.u32 %v6756_v39, %v4692_v37  ;;  %3283 = vmatpush.bf16.msra.mxu3 %v4965_v38 }
  0x2e   :  { %v4948_v42 = vld [vmem:[#allocation5 + $0x380] sm:$0xf]  ;;  %v6820_v43 = vld [vmem:[#allocation5 + $0x38c] sm:$0xf0]  ;;  %v4821_v46 = vor.u32 %v6788_v41, %v4820_v40  ;;  %3245 = vmatpush.bf16.msra.mxu0 %v4565_v44 }
  0x2f   :  { %v4548_v47 = vld [vmem:[#allocation5 + $0x60] sm:$0xf]  ;;  %v6720_v48 = vld [vmem:[#allocation5 + $0x6c] sm:$0xf0]  ;;  %v4949_v50 = vor.u32 %v6820_v43, %v4948_v42  ;;  %3258 = vmatpush.bf16.msra.mxu1 %v4693_v45 }
  0x30   :  { %v4676_v49 = vld [vmem:[#allocation5 + $0x160] sm:$0xf]  ;;  %v6752_v51 = vld [vmem:[#allocation5 + $0x16c] sm:$0xf0]  ;;  %v4549_v56 = vor.u32 %v6720_v48, %v4548_v47  ;;  %3271 = vmatpush.bf16.msra.mxu2 %v4821_v46 }
  0x31   :  { %v4804_v52 = vld [vmem:[#allocation5 + $0x260] sm:$0xf]  ;;  %v6784_v53 = vld [vmem:[#allocation5 + $0x26c] sm:$0xf0]  ;;  %v4677_v57 = vor.u32 %v6752_v51, %v4676_v49  ;;  %3284 = vmatpush.bf16.msra.mxu3 %v4949_v50 }
  0x32   :  { %v4932_v54 = vld [vmem:[#allocation5 + $0x360] sm:$0xf]  ;;  %v6816_v55 = vld [vmem:[#allocation5 + $0x36c] sm:$0xf0]  ;;  %v4805_v58 = vor.u32 %v6784_v53, %v4804_v52  ;;  %3246 = vmatpush.bf16.msra.mxu0 %v4549_v56 }
  0x33   :  { %v4532_v59 = vld [vmem:[#allocation5 + $0x40] sm:$0xf]  ;;  %v6716_v60 = vld [vmem:[#allocation5 + $0x4c] sm:$0xf0]  ;;  %v4933_v62 = vor.u32 %v6816_v55, %v4932_v54  ;;  %3259 = vmatpush.bf16.msra.mxu1 %v4677_v57 }
  0x34   :  { %v4660_v61 = vld [vmem:[#allocation5 + $0x140] sm:$0xf]  ;;  %v6748_v63 = vld [vmem:[#allocation5 + $0x14c] sm:$0xf0]  ;;  %v4533_v4 = vor.u32 %v6716_v60, %v4532_v59  ;;  %3272 = vmatpush.bf16.msra.mxu2 %v4805_v58 }
  0x35   :  { %v4788_v0 = vld [vmem:[#allocation5 + $0x240] sm:$0xf]  ;;  %v6780_v1 = vld [vmem:[#allocation5 + $0x24c] sm:$0xf0]  ;;  %v4661_v5 = vor.u32 %v6748_v63, %v4660_v61  ;;  %3285 = vmatpush.bf16.msra.mxu3 %v4933_v62 }
  0x36   :  { %v4916_v2 = vld [vmem:[#allocation5 + $0x340] sm:$0xf]  ;;  %v6812_v3 = vld [vmem:[#allocation5 + $0x34c] sm:$0xf0]  ;;  %v4789_v6 = vor.u32 %v6780_v1, %v4788_v0  ;;  %3247 = vmatpush.bf16.msra.mxu0 %v4533_v4 }
  0x37   :  { %v4516_v7 = vld [vmem:[#allocation5 + $0x20] sm:$0xf]  ;;  %v6712_v8 = vld [vmem:[#allocation5 + $0x2c] sm:$0xf0]  ;;  %v4917_v10 = vor.u32 %v6812_v3, %v4916_v2  ;;  %3260 = vmatpush.bf16.msra.mxu1 %v4661_v5 }
  0x38   :  { %v4644_v9 = vld [vmem:[#allocation5 + $0x120] sm:$0xf]  ;;  %v6744_v11 = vld [vmem:[#allocation5 + $0x12c] sm:$0xf0]  ;;  %v4517_v16 = vor.u32 %v6712_v8, %v4516_v7  ;;  %3273 = vmatpush.bf16.msra.mxu2 %v4789_v6 }
  0x39   :  { %v4772_v12 = vld [vmem:[#allocation5 + $0x220] sm:$0xf]  ;;  %v6776_v13 = vld [vmem:[#allocation5 + $0x22c] sm:$0xf0]  ;;  %v4645_v19 = vor.u32 %v6744_v11, %v4644_v9  ;;  %3286 = vmatpush.bf16.msra.mxu3 %v4917_v10  ;;  %v131_v10 = vld [vmem:[#allocation2 + $0x18] sm:$0xff] }
  0x3a   :  { %v4900_v14 = vld [vmem:[#allocation5 + $0x320] sm:$0xf]  ;;  %v6808_v15 = vld [vmem:[#allocation5 + $0x32c] sm:$0xf0]  ;;  %v4773_v20 = vor.u32 %v6776_v13, %v4772_v12  ;;  %3248 = vmatpush.bf16.msra.mxu0 %v4517_v16 }
  0x3b   :  { %v4500_v17 = vld [vmem:[#allocation5] sm:$0xf]  ;;  %v6708_v18 = vld [vmem:[#allocation5 + $0xc] sm:$0xf0]  ;;  %v4901_v24 = vor.u32 %v6808_v15, %v4900_v14  ;;  %3261 = vmatpush.bf16.msra.mxu1 %v4645_v19  ;;  %v7553_v15 = vpack.c.bf16 %v131_v10, %v131_v10  ;;  %v129_v19 = vld [vmem:[#allocation2 + $0x8] sm:$0xff] }
  0x3c   :  { %v4628_v21 = vld [vmem:[#allocation5 + $0x100] sm:$0xf]  ;;  %v6740_v22 = vld [vmem:[#allocation5 + $0x10c] sm:$0xf0]  ;;  %v4501_v31 = vor.u32 %v6708_v18, %v4500_v17  ;;  %3274 = vmatpush.bf16.msra.mxu2 %v4773_v20 }
  0x3d   :  { %v4756_v23 = vld [vmem:[#allocation5 + $0x200] sm:$0xf]  ;;  %v6772_v25 = vld [vmem:[#allocation5 + $0x20c] sm:$0xf0]  ;;  %v4629_v35 = vor.u32 %v6740_v22, %v4628_v21  ;;  %3287 = vmatpush.bf16.msra.mxu3 %v4901_v24 }
  0x3e   :  { %v4884_v26 = vld [vmem:[#allocation5 + $0x300] sm:$0xf]  ;;  %v6804_v27 = vld [vmem:[#allocation5 + $0x30c] sm:$0xf0]  ;;  %v4757_v36 = vor.u32 %v6772_v25, %v4756_v23  ;;  %3249 = vmatpush.bf16.msra.mxu0 %v4501_v31  ;;  %v7558_v25 = vpack.c.bf16 %v129_v19, %v129_v19 }
  0x3f   :  { %v5124_v28 = vld [vmem:[#allocation5 + $0x4e0] sm:$0xf]  ;;  %v6864_v29 = vld [vmem:[#allocation5 + $0x4ec] sm:$0xf0]  ;;  %v4885_v39 = vor.u32 %v6804_v27, %v4884_v26  ;;  %3262 = vmatpush.bf16.msra.mxu1 %v4629_v35 }
  0x40   :  { %v5252_v30 = vld [vmem:[#allocation5 + $0x5e0] sm:$0xf]  ;;  %v6896_v32 = vld [vmem:[#allocation5 + $0x5ec] sm:$0xf0]  ;;  %v5125_v40 = vor.u32 %v6864_v29, %v5124_v28  ;;  %3275 = vmatpush.bf16.msra.mxu2 %v4757_v36 }
  0x41   :  { %v5380_v33 = vld [vmem:[#allocation5 + $0x6e0] sm:$0xf]  ;;  %v6928_v34 = vld [vmem:[#allocation5 + $0x6ec] sm:$0xf0]  ;;  %v5253_v41 = vor.u32 %v6896_v32, %v5252_v30  ;;  %3288 = vmatpush.bf16.msra.mxu3 %v4885_v39 }
  0x42   :  { %v5508_v37 = vld [vmem:[#allocation5 + $0x7e0] sm:$0xf]  ;;  %v6960_v38 = vld [vmem:[#allocation5 + $0x7ec] sm:$0xf0]  ;;  %v5381_v42 = vor.u32 %v6928_v34, %v5380_v33  ;;  %3294 = vmatpush.bf16.msrb.mxu0 %v5125_v40  ;;  %3263 = vmatmul.bf16.vlgmr.msra.gmra.mxu1 %v7558_v25 }
  0x43   :  { %v5108_v43 = vld [vmem:[#allocation5 + $0x4c0] sm:$0xf]  ;;  %v6860_v44 = vld [vmem:[#allocation5 + $0x4cc] sm:$0xf0]  ;;  %v5509_v46 = vor.u32 %v6960_v38, %v5508_v37  ;;  %3307 = vmatpush.bf16.msrb.mxu1 %v5253_v41 }
  0x44   :  { %v5236_v45 = vld [vmem:[#allocation5 + $0x5c0] sm:$0xf]  ;;  %v6892_v47 = vld [vmem:[#allocation5 + $0x5cc] sm:$0xf0]  ;;  %v5109_v52 = vor.u32 %v6860_v44, %v5108_v43  ;;  %3320 = vmatpush.bf16.msrb.mxu2 %v5381_v42  ;;  %3289 = vmatmul.bf16.vlgmr.msra.gmra.mxu3 %v7553_v15 }
  0x45   :  { %v5364_v48 = vld [vmem:[#allocation5 + $0x6c0] sm:$0xf]  ;;  %v6924_v49 = vld [vmem:[#allocation5 + $0x6cc] sm:$0xf0]  ;;  %v5237_v54 = vor.u32 %v6892_v47, %v5236_v45  ;;  %3333 = vmatpush.bf16.msrb.mxu3 %v5509_v46 }
  0x46   :  { %v5492_v50 = vld [vmem:[#allocation5 + $0x7c0] sm:$0xf]  ;;  %v6956_v51 = vld [vmem:[#allocation5 + $0x7cc] sm:$0xf0]  ;;  %v5365_v55 = vor.u32 %v6924_v49, %v5364_v48  ;;  %3295 = vmatpush.bf16.msrb.mxu0 %v5109_v52 }
  0x47   :  { %v5092_v53 = vld [vmem:[#allocation5 + $0x4a0] sm:$0xf]  ;;  %v6856_v56 = vld [vmem:[#allocation5 + $0x4ac] sm:$0xf0]  ;;  %v5493_v59 = vor.u32 %v6956_v51, %v5492_v50  ;;  %3308 = vmatpush.bf16.msrb.mxu1 %v5237_v54 }
  0x48   :  { %v5220_v57 = vld [vmem:[#allocation5 + $0x5a0] sm:$0xf]  ;;  %v6888_v58 = vld [vmem:[#allocation5 + $0x5ac] sm:$0xf0]  ;;  %v5093_v0 = vor.u32 %v6856_v56, %v5092_v53  ;;  %3321 = vmatpush.bf16.msrb.mxu2 %v5365_v55 }
  0x49   :  { %v5348_v60 = vld [vmem:[#allocation5 + $0x6a0] sm:$0xf]  ;;  %v6920_v61 = vld [vmem:[#allocation5 + $0x6ac] sm:$0xf0]  ;;  %v5221_v1 = vor.u32 %v6888_v58, %v5220_v57  ;;  %3334 = vmatpush.bf16.msrb.mxu3 %v5493_v59 }
  0x4a   :  { %v5476_v62 = vld [vmem:[#allocation5 + $0x7a0] sm:$0xf]  ;;  %v6952_v63 = vld [vmem:[#allocation5 + $0x7ac] sm:$0xf0]  ;;  %v5349_v5 = vor.u32 %v6920_v61, %v5348_v60  ;;  %3296 = vmatpush.bf16.msrb.mxu0 %v5093_v0 }
  0x4b   :  { %v5076_v2 = vld [vmem:[#allocation5 + $0x480] sm:$0xf]  ;;  %v130_v3 = vld [vmem:[#allocation2 + $0x10] sm:$0xff]  ;;  %v5477_v11 = vor.u32 %v6952_v63, %v5476_v62  ;;  %3309 = vmatpush.bf16.msrb.mxu1 %v5221_v1 }
  0x4c   :  { %v128_v4 = vld [vmem:[#allocation2] sm:$0xff]  ;;  %v6852_v6 = vld [vmem:[#allocation5 + $0x48c] sm:$0xf0]  ;;  %v7549_v8 = vpack.c.bf16 %v130_v3, %v130_v3  ;;  %3322 = vmatpush.bf16.msrb.mxu2 %v5349_v5 }
  0x4d   :  { %v5204_v7 = vld [vmem:[#allocation5 + $0x580] sm:$0xf]  ;;  %v7551_v9 = vpack.c.bf16 %v128_v4, %v128_v4  ;;  %v6884_v12 = vld [vmem:[#allocation5 + $0x58c] sm:$0xf0]  ;;  %v5077_v18 = vor.u32 %v6852_v6, %v5076_v2  ;;  %3335 = vmatpush.bf16.msrb.mxu3 %v5477_v11 }
  0x4e   :  { %v5332_v13 = vld [vmem:[#allocation5 + $0x680] sm:$0xf]  ;;  %v6916_v14 = vld [vmem:[#allocation5 + $0x68c] sm:$0xf0]  ;;  %3276 = vmatmul.bf16.vlgmr.msra.gmra.mxu2 %v7549_v8  ;;  %v5205_v20 = vor.u32 %v6884_v12, %v5204_v7 }
  0x4f   :  { %v5460_v16 = vld [vmem:[#allocation5 + $0x780] sm:$0xf]  ;;  %v6948_v17 = vld [vmem:[#allocation5 + $0x78c] sm:$0xf0]  ;;  %3250 = vmatmul.bf16.vlgmr.msra.gmra.mxu0 %v7551_v9  ;;  %v5333_v21 = vor.u32 %v6916_v14, %v5332_v13 }
  0x50   :  { %v5060_v22 = vld [vmem:[#allocation5 + $0x460] sm:$0xf]  ;;  %v6848_v23 = vld [vmem:[#allocation5 + $0x46c] sm:$0xf0]  ;;  %v5461_v26 = vor.u32 %v6948_v17, %v5460_v16  ;;  %3297 = vmatpush.bf16.msrb.mxu0 %v5077_v18  ;;  %3310 = vmatpush.bf16.msrb.mxu1 %v5205_v20 }
  0x51   :  { %v5188_v24 = vld [vmem:[#allocation5 + $0x560] sm:$0xf]  ;;  %v6880_v27 = vld [vmem:[#allocation5 + $0x56c] sm:$0xf0]  ;;  %v5061_v32 = vor.u32 %v6848_v23, %v5060_v22  ;;  %3323 = vmatpush.bf16.msrb.mxu2 %v5333_v21  ;;  %v135_v23 = vld [vmem:[#allocation2 + $0x38] sm:$0xff] }
  0x52   :  { %v5316_v28 = vld [vmem:[#allocation5 + $0x660] sm:$0xf]  ;;  %v6912_v29 = vld [vmem:[#allocation5 + $0x66c] sm:$0xf0]  ;;  %v5189_v33 = vor.u32 %v6880_v27, %v5188_v24  ;;  %3336 = vmatpush.bf16.msrb.mxu3 %v5461_v26 }
  0x53   :  { %v5444_v30 = vld [vmem:[#allocation5 + $0x760] sm:$0xf]  ;;  %v6944_v31 = vld [vmem:[#allocation5 + $0x76c] sm:$0xf0]  ;;  %v5317_v34 = vor.u32 %v6912_v29, %v5316_v28  ;;  %v133_v29 = vld [vmem:[#allocation2 + $0x28] sm:$0xff] }
  0x54   :  { %v5044_v35 = vld [vmem:[#allocation5 + $0x440] sm:$0xf]  ;;  %v6844_v36 = vld [vmem:[#allocation5 + $0x44c] sm:$0xf0]  ;;  %v5445_v38 = vor.u32 %v6944_v31, %v5444_v30  ;;  %3298 = vmatpush.bf16.msrb.mxu0 %v5061_v32  ;;  %3311 = vmatpush.bf16.msrb.mxu1 %v5189_v33 }
  0x55   :  { %v5172_v37 = vld [vmem:[#allocation5 + $0x540] sm:$0xf]  ;;  %v6876_v39 = vld [vmem:[#allocation5 + $0x54c] sm:$0xf0]  ;;  %v5045_v44 = vor.u32 %v6844_v36, %v5044_v35  ;;  %3324 = vmatpush.bf16.msrb.mxu2 %v5317_v34 }
  0x56   :  { %v5300_v40 = vld [vmem:[#allocation5 + $0x640] sm:$0xf]  ;;  %v6908_v41 = vld [vmem:[#allocation5 + $0x64c] sm:$0xf0]  ;;  %v5173_v45 = vor.u32 %v6876_v39, %v5172_v37  ;;  %3337 = vmatpush.bf16.msrb.mxu3 %v5445_v38  ;;  %v7565_v38 = vpack.c.bf16 %v135_v23, %v135_v23 }
  0x57   :  { %v5428_v42 = vld [vmem:[#allocation5 + $0x740] sm:$0xf]  ;;  %v6940_v43 = vld [vmem:[#allocation5 + $0x74c] sm:$0xf0]  ;;  %v5301_v46 = vor.u32 %v6908_v41, %v5300_v40  ;;  %v7567_v40 = vpack.c.bf16 %v133_v29, %v133_v29 }
  0x58   :  { %v5028_v47 = vld [vmem:[#allocation5 + $0x420] sm:$0xf]  ;;  %v6840_v48 = vld [vmem:[#allocation5 + $0x42c] sm:$0xf0]  ;;  %v5429_v50 = vor.u32 %v6940_v43, %v5428_v42  ;;  %3299 = vmatpush.bf16.msrb.mxu0 %v5045_v44  ;;  %3312 = vmatpush.bf16.msrb.mxu1 %v5173_v45 }
  0x59   :  { %v5156_v49 = vld [vmem:[#allocation5 + $0x520] sm:$0xf]  ;;  %v6872_v51 = vld [vmem:[#allocation5 + $0x52c] sm:$0xf0]  ;;  %v5029_v56 = vor.u32 %v6840_v48, %v5028_v47  ;;  %3325 = vmatpush.bf16.msrb.mxu2 %v5301_v46 }
  0x5a   :  { %v5284_v52 = vld [vmem:[#allocation5 + $0x620] sm:$0xf]  ;;  %v6904_v53 = vld [vmem:[#allocation5 + $0x62c] sm:$0xf0]  ;;  %v5157_v59 = vor.u32 %v6872_v51, %v5156_v49  ;;  %3338 = vmatpush.bf16.msrb.mxu3 %v5429_v50 }
  0x5b   :  { %v5412_v54 = vld [vmem:[#allocation5 + $0x720] sm:$0xf]  ;;  %v6936_v55 = vld [vmem:[#allocation5 + $0x72c] sm:$0xf0]  ;;  %v5285_v60 = vor.u32 %v6904_v53, %v5284_v52 }
  0x5c   :  { %v5012_v57 = vld [vmem:[#allocation5 + $0x400] sm:$0xf]  ;;  %v6836_v58 = vld [vmem:[#allocation5 + $0x40c] sm:$0xf0]  ;;  %v5413_v0 = vor.u32 %v6936_v55, %v5412_v54  ;;  %3300 = vmatpush.bf16.msrb.mxu0 %v5029_v56  ;;  %3313 = vmatpush.bf16.msrb.mxu1 %v5157_v59 }
  0x5d   :  { %v5140_v61 = vld [vmem:[#allocation5 + $0x500] sm:$0xf]  ;;  %v6868_v62 = vld [vmem:[#allocation5 + $0x50c] sm:$0xf0]  ;;  %v5013_v7 = vor.u32 %v6836_v58, %v5012_v57  ;;  %3326 = vmatpush.bf16.msrb.mxu2 %v5285_v60 }
  0x5e   :  { %v5268_v63 = vld [vmem:[#allocation5 + $0x600] sm:$0xf]  ;;  %v6900_v1 = vld [vmem:[#allocation5 + $0x60c] sm:$0xf0]  ;;  %v5141_v13 = vor.u32 %v6868_v62, %v5140_v61  ;;  %3339 = vmatpush.bf16.msrb.mxu3 %v5413_v0 }
  0x5f   :  { %v5396_v2 = vld [vmem:[#allocation5 + $0x700] sm:$0xf]  ;;  %v6932_v3 = vld [vmem:[#allocation5 + $0x70c] sm:$0xf0]  ;;  %v5269_v14 = vor.u32 %v6900_v1, %v5268_v63 }
  0x60   :  { %v5636_v4 = vld [vmem:[#allocation5 + $0x8e0] sm:$0xf]  ;;  %v6992_v5 = vld [vmem:[#allocation5 + $0x8ec] sm:$0xf0]  ;;  %v5397_v19 = vor.u32 %v6932_v3, %v5396_v2  ;;  %3301 = vmatpush.bf16.msrb.mxu0 %v5013_v7  ;;  %3314 = vmatpush.bf16.msrb.mxu1 %v5141_v13 }
  0x61   :  { %v5764_v6 = vld [vmem:[#allocation5 + $0x9e0] sm:$0xf]  ;;  %v7024_v10 = vld [vmem:[#allocation5 + $0x9ec] sm:$0xf0]  ;;  %v5637_v20 = vor.u32 %v6992_v5, %v5636_v4  ;;  %3327 = vmatpush.bf16.msrb.mxu2 %v5269_v14 }
  0x62   :  { %v5892_v11 = vld [vmem:[#allocation5 + $0xae0] sm:$0xf]  ;;  %v7056_v12 = vld [vmem:[#allocation5 + $0xaec] sm:$0xf0]  ;;  %v5765_v24 = vor.u32 %v7024_v10, %v5764_v6  ;;  %3340 = vmatpush.bf16.msrb.mxu3 %v5397_v19 }
  0x63   :  { %v6020_v16 = vld [vmem:[#allocation5 + $0xbe0] sm:$0xf]  ;;  %v7088_v17 = vld [vmem:[#allocation5 + $0xbec] sm:$0xf0]  ;;  %v5893_v26 = vor.u32 %v7056_v12, %v5892_v11  ;;  %3315 = vmatmul.bf16.vlgmr.msrb.gmra.mxu1 %v7567_v40 }
  0x64   :  { %v134_v18 = vld [vmem:[#allocation2 + $0x30] sm:$0xff]  ;;  %v5620_v21 = vld [vmem:[#allocation5 + $0x8c0] sm:$0xf]  ;;  %v6021_v30 = vor.u32 %v7088_v17, %v6020_v16  ;;  %3346 = vmatpush.bf16.msra.mxu0 %v5637_v20  ;;  %3359 = vmatpush.bf16.msra.mxu1 %v5765_v24 }
  0x65   :  { %v132_v22 = vld [vmem:[#allocation2 + $0x20] sm:$0xff]  ;;  %v6988_v27 = vld [vmem:[#allocation5 + $0x8cc] sm:$0xf0]  ;;  %v7561_v34 = vpack.c.bf16 %v134_v18, %v134_v18  ;;  %3372 = vmatpush.bf16.msra.mxu2 %v5893_v26  ;;  %3341 = vmatmul.bf16.vlgmr.msrb.gmra.mxu3 %v7565_v38 }
  0x66   :  { %v5748_v28 = vld [vmem:[#allocation5 + $0x9c0] sm:$0xf]  ;;  %v7020_v31 = vld [vmem:[#allocation5 + $0x9cc] sm:$0xf0]  ;;  %v7563_v37 = vpack.c.bf16 %v132_v22, %v132_v22  ;;  %v5621_v39 = vor.u32 %v6988_v27, %v5620_v21  ;;  %3385 = vmatpush.bf16.msra.mxu3 %v6021_v30 }
  0x67   :  { %v5876_v32 = vld [vmem:[#allocation5 + $0xac0] sm:$0xf]  ;;  %v7052_v33 = vld [vmem:[#allocation5 + $0xacc] sm:$0xf0]  ;;  %v5749_v41 = vor.u32 %v7020_v31, %v5748_v28  ;;  %3328 = vmatmul.bf16.vlgmr.msrb.gmra.mxu2 %v7561_v34 }
  0x68   :  { %v6004_v35 = vld [vmem:[#allocation5 + $0xbc0] sm:$0xf]  ;;  %v7084_v36 = vld [vmem:[#allocation5 + $0xbcc] sm:$0xf0]  ;;  %v5877_v42 = vor.u32 %v7052_v33, %v5876_v32  ;;  %3302 = vmatmul.bf16.vlgmr.msrb.gmra.mxu0 %v7563_v37 }
  0x69   :  { %v5604_v43 = vld [vmem:[#allocation5 + $0x8a0] sm:$0xf]  ;;  %v6984_v44 = vld [vmem:[#allocation5 + $0x8ac] sm:$0xf0]  ;;  %v6005_v46 = vor.u32 %v7084_v36, %v6004_v35  ;;  %3347 = vmatpush.bf16.msra.mxu0 %v5621_v39  ;;  %3360 = vmatpush.bf16.msra.mxu1 %v5749_v41 }
  0x6a   :  { %v5732_v45 = vld [vmem:[#allocation5 + $0x9a0] sm:$0xf]  ;;  %v7016_v47 = vld [vmem:[#allocation5 + $0x9ac] sm:$0xf0]  ;;  %v5605_v52 = vor.u32 %v6984_v44, %v5604_v43  ;;  %3373 = vmatpush.bf16.msra.mxu2 %v5877_v42 }
  0x6b   :  { %v5860_v48 = vld [vmem:[#allocation5 + $0xaa0] sm:$0xf]  ;;  %v7048_v49 = vld [vmem:[#allocation5 + $0xaac] sm:$0xf0]  ;;  %v5733_v53 = vor.u32 %v7016_v47, %v5732_v45  ;;  %3386 = vmatpush.bf16.msra.mxu3 %v6005_v46 }
  0x6c   :  { %v5988_v50 = vld [vmem:[#allocation5 + $0xba0] sm:$0xf]  ;;  %v7080_v51 = vld [vmem:[#allocation5 + $0xbac] sm:$0xf0]  ;;  %v5861_v54 = vor.u32 %v7048_v49, %v5860_v48 }
  0x6d   :  { %v5588_v55 = vld [vmem:[#allocation5 + $0x880] sm:$0xf]  ;;  %v6980_v56 = vld [vmem:[#allocation5 + $0x88c] sm:$0xf0]  ;;  %v5989_v58 = vor.u32 %v7080_v51, %v5988_v50  ;;  %3348 = vmatpush.bf16.msra.mxu0 %v5605_v52  ;;  %3361 = vmatpush.bf16.msra.mxu1 %v5733_v53 }
  0x6e   :  { %v5716_v57 = vld [vmem:[#allocation5 + $0x980] sm:$0xf]  ;;  %v7012_v59 = vld [vmem:[#allocation5 + $0x98c] sm:$0xf0]  ;;  %v5589_v0 = vor.u32 %v6980_v56, %v5588_v55  ;;  %3374 = vmatpush.bf16.msra.mxu2 %v5861_v54 }
  0x6f   :  { %v5844_v60 = vld [vmem:[#allocation5 + $0xa80] sm:$0xf]  ;;  %v7044_v61 = vld [vmem:[#allocation5 + $0xa8c] sm:$0xf0]  ;;  %v5717_v1 = vor.u32 %v7012_v59, %v5716_v57  ;;  %3387 = vmatpush.bf16.msra.mxu3 %v5989_v58 }
  0x70   :  { %v5972_v62 = vld [vmem:[#allocation5 + $0xb80] sm:$0xf]  ;;  %v7076_v63 = vld [vmem:[#allocation5 + $0xb8c] sm:$0xf0]  ;;  %v5845_v2 = vor.u32 %v7044_v61, %v5844_v60 }
  0x71   :  { %v5572_v3 = vld [vmem:[#allocation5 + $0x860] sm:$0xf]  ;;  %v6976_v4 = vld [vmem:[#allocation5 + $0x86c] sm:$0xf0]  ;;  %v5973_v6 = vor.u32 %v7076_v63, %v5972_v62  ;;  %3349 = vmatpush.bf16.msra.mxu0 %v5589_v0  ;;  %3362 = vmatpush.bf16.msra.mxu1 %v5717_v1 }
  0x72   :  { %v5700_v5 = vld [vmem:[#allocation5 + $0x960] sm:$0xf]  ;;  %v7008_v7 = vld [vmem:[#allocation5 + $0x96c] sm:$0xf0]  ;;  %v5573_v14 = vor.u32 %v6976_v4, %v5572_v3  ;;  %3375 = vmatpush.bf16.msra.mxu2 %v5845_v2 }
  0x73   :  { %v5828_v10 = vld [vmem:[#allocation5 + $0xa60] sm:$0xf]  ;;  %v7040_v11 = vld [vmem:[#allocation5 + $0xa6c] sm:$0xf0]  ;;  %v5701_v16 = vor.u32 %v7008_v7, %v5700_v5  ;;  %3388 = vmatpush.bf16.msra.mxu3 %v5973_v6  ;;  %v137_v7 = vld [vmem:[#allocation2 + $0x48] sm:$0xff] }
  0x74   :  { %v5956_v12 = vld [vmem:[#allocation5 + $0xb60] sm:$0xf]  ;;  %v7072_v13 = vld [vmem:[#allocation5 + $0xb6c] sm:$0xf0]  ;;  %v5829_v17 = vor.u32 %v7040_v11, %v5828_v10  ;;  %v139_v10 = vld [vmem:[#allocation2 + $0x58] sm:$0xff] }
  0x75   :  { %v5556_v18 = vld [vmem:[#allocation5 + $0x840] sm:$0xf]  ;;  %v6972_v19 = vld [vmem:[#allocation5 + $0x84c] sm:$0xf0]  ;;  %v5957_v21 = vor.u32 %v7072_v13, %v5956_v12  ;;  %3350 = vmatpush.bf16.msra.mxu0 %v5573_v14  ;;  %3363 = vmatpush.bf16.msra.mxu1 %v5701_v16 }
  0x76   :  { %v5684_v20 = vld [vmem:[#allocation5 + $0x940] sm:$0xf]  ;;  %v7004_v22 = vld [vmem:[#allocation5 + $0x94c] sm:$0xf0]  ;;  %v5557_v28 = vor.u32 %v6972_v19, %v5556_v18  ;;  %3376 = vmatpush.bf16.msra.mxu2 %v5829_v17 }
  0x77   :  { %v5812_v23 = vld [vmem:[#allocation5 + $0xa40] sm:$0xf]  ;;  %v7036_v24 = vld [vmem:[#allocation5 + $0xa4c] sm:$0xf0]  ;;  %v5685_v29 = vor.u32 %v7004_v22, %v5684_v20  ;;  %3389 = vmatpush.bf16.msra.mxu3 %v5957_v21 }
  0x78   :  { %v5940_v26 = vld [vmem:[#allocation5 + $0xb40] sm:$0xf]  ;;  %v7068_v27 = vld [vmem:[#allocation5 + $0xb4c] sm:$0xf0]  ;;  %v5813_v30 = vor.u32 %v7036_v24, %v5812_v23  ;;  %v7577_v23 = vpack.c.bf16 %v137_v7, %v137_v7 }
  0x79   :  { %v5540_v31 = vld [vmem:[#allocation5 + $0x820] sm:$0xf]  ;;  %v6968_v32 = vld [vmem:[#allocation5 + $0x82c] sm:$0xf0]  ;;  %v5941_v35 = vor.u32 %v7068_v27, %v5940_v26  ;;  %3351 = vmatpush.bf16.msra.mxu0 %v5557_v28  ;;  %3364 = vmatpush.bf16.msra.mxu1 %v5685_v29  ;;  %v7579_v27 = vpack.c.bf16 %v139_v10, %v139_v10 }
  0x7a   :  { %v5668_v33 = vld [vmem:[#allocation5 + $0x920] sm:$0xf]  ;;  %v7000_v36 = vld [vmem:[#allocation5 + $0x92c] sm:$0xf0]  ;;  %v5541_v45 = vor.u32 %v6968_v32, %v5540_v31  ;;  %3377 = vmatpush.bf16.msra.mxu2 %v5813_v30 }
  0x7b   :  { %v5796_v39 = vld [vmem:[#allocation5 + $0xa20] sm:$0xf]  ;;  %v7032_v41 = vld [vmem:[#allocation5 + $0xa2c] sm:$0xf0]  ;;  %v5669_v49 = vor.u32 %v7000_v36, %v5668_v33  ;;  %3390 = vmatpush.bf16.msra.mxu3 %v5941_v35 }
  0x7c   :  { %v5924_v42 = vld [vmem:[#allocation5 + $0xb20] sm:$0xf]  ;;  %v7064_v43 = vld [vmem:[#allocation5 + $0xb2c] sm:$0xf0]  ;;  %v5797_v50 = vor.u32 %v7032_v41, %v5796_v39 }
  0x7d   :  { %v5524_v44 = vld [vmem:[#allocation5 + $0x800] sm:$0xf]  ;;  %v6964_v46 = vld [vmem:[#allocation5 + $0x80c] sm:$0xf0]  ;;  %v5925_v54 = vor.u32 %v7064_v43, %v5924_v42  ;;  %3352 = vmatpush.bf16.msra.mxu0 %v5541_v45  ;;  %3365 = vmatpush.bf16.msra.mxu1 %v5669_v49 }
  0x7e   :  { %v5652_v47 = vld [vmem:[#allocation5 + $0x900] sm:$0xf]  ;;  %v6996_v48 = vld [vmem:[#allocation5 + $0x90c] sm:$0xf0]  ;;  %v5525_v60 = vor.u32 %v6964_v46, %v5524_v44  ;;  %3378 = vmatpush.bf16.msra.mxu2 %v5797_v50 }
  0x7f   :  { %v5780_v51 = vld [vmem:[#allocation5 + $0xa00] sm:$0xf]  ;;  %v7028_v52 = vld [vmem:[#allocation5 + $0xa0c] sm:$0xf0]  ;;  %v5653_v63 = vor.u32 %v6996_v48, %v5652_v47  ;;  %3391 = vmatpush.bf16.msra.mxu3 %v5925_v54 }
  0x80   :  { %v5908_v53 = vld [vmem:[#allocation5 + $0xb00] sm:$0xf]  ;;  %v7060_v55 = vld [vmem:[#allocation5 + $0xb0c] sm:$0xf0]  ;;  %v5781_v0 = vor.u32 %v7028_v52, %v5780_v51 }
  0x81   :  { %v6148_v56 = vld [vmem:[#allocation5 + $0xce0] sm:$0xf]  ;;  %v7120_v57 = vld [vmem:[#allocation5 + $0xcec] sm:$0xf0]  ;;  %v5909_v4 = vor.u32 %v7060_v55, %v5908_v53  ;;  %3353 = vmatpush.bf16.msra.mxu0 %v5525_v60  ;;  %3366 = vmatpush.bf16.msra.mxu1 %v5653_v63 }
  0x82   :  { %v6276_v58 = vld [vmem:[#allocation5 + $0xde0] sm:$0xf]  ;;  %v7152_v59 = vld [vmem:[#allocation5 + $0xdec] sm:$0xf0]  ;;  %v6149_v5 = vor.u32 %v7120_v57, %v6148_v56  ;;  %3379 = vmatpush.bf16.msra.mxu2 %v5781_v0 }
  0x83   :  { %v6404_v61 = vld [vmem:[#allocation5 + $0xee0] sm:$0xf]  ;;  %v7184_v62 = vld [vmem:[#allocation5 + $0xeec] sm:$0xf0]  ;;  %v6277_v11 = vor.u32 %v7152_v59, %v6276_v58  ;;  %3392 = vmatpush.bf16.msra.mxu3 %v5909_v4 }
  0x84   :  { %v6532_v1 = vld [vmem:[#allocation5 + $0xfe0] sm:$0xf]  ;;  %v7216_v2 = vld [vmem:[#allocation5 + $0xfec] sm:$0xf0]  ;;  %v6405_v12 = vor.u32 %v7184_v62, %v6404_v61  ;;  %3367 = vmatmul.bf16.vlgmr.msra.gmra.mxu1 %v7577_v23 }
  0x85   :  { %v136_v3 = vld [vmem:[#allocation2 + $0x40] sm:$0xff]  ;;  %v138_v6 = vld [vmem:[#allocation2 + $0x50] sm:$0xff]  ;;  %v6533_v17 = vor.u32 %v7216_v2, %v6532_v1  ;;  %3398 = vmatpush.bf16.msrb.mxu0 %v6149_v5  ;;  %3411 = vmatpush.bf16.msrb.mxu1 %v6277_v11 }
  0x86   :  { %v6132_v13 = vld [vmem:[#allocation5 + $0xcc0] sm:$0xf]  ;;  %v7116_v14 = vld [vmem:[#allocation5 + $0xccc] sm:$0xf0]  ;;  %v7573_v18 = vpack.c.bf16 %v136_v3, %v136_v3  ;;  %v7575_v22 = vpack.c.bf16 %v138_v6, %v138_v6  ;;  %3424 = vmatpush.bf16.msrb.mxu2 %v6405_v12  ;;  %3393 = vmatmul.bf16.vlgmr.msra.gmra.mxu3 %v7579_v27 }
  0x87   :  { %v6260_v16 = vld [vmem:[#allocation5 + $0xdc0] sm:$0xf]  ;;  %v7148_v19 = vld [vmem:[#allocation5 + $0xdcc] sm:$0xf0]  ;;  %v6133_v28 = vor.u32 %v7116_v14, %v6132_v13  ;;  %3437 = vmatpush.bf16.msrb.mxu3 %v6533_v17 }
  0x88   :  { %v6388_v20 = vld [vmem:[#allocation5 + $0xec0] sm:$0xf]  ;;  %v7180_v21 = vld [vmem:[#allocation5 + $0xecc] sm:$0xf0]  ;;  %v6261_v29 = vor.u32 %v7148_v19, %v6260_v16  ;;  %3354 = vmatmul.bf16.vlgmr.msra.gmra.mxu0 %v7573_v18  ;;  %3380 = vmatmul.bf16.vlgmr.msra.gmra.mxu2 %v7575_v22 }
  0x89   :  { %v6516_v24 = vld [vmem:[#allocation5 + $0xfc0] sm:$0xf]  ;;  %v7212_v26 = vld [vmem:[#allocation5 + $0xfcc] sm:$0xf0]  ;;  %v6389_v30 = vor.u32 %v7180_v21, %v6388_v20  ;;  %3399 = vmatpush.bf16.msrb.mxu0 %v6133_v28 }
  0x8a   :  { %v6116_v31 = vld [vmem:[#allocation5 + $0xca0] sm:$0xf]  ;;  %v7112_v32 = vld [vmem:[#allocation5 + $0xcac] sm:$0xf0]  ;;  %v6517_v35 = vor.u32 %v7212_v26, %v6516_v24  ;;  %3412 = vmatpush.bf16.msrb.mxu1 %v6261_v29 }
  0x8b   :  { %v6244_v33 = vld [vmem:[#allocation5 + $0xda0] sm:$0xf]  ;;  %v7144_v36 = vld [vmem:[#allocation5 + $0xdac] sm:$0xf0]  ;;  %v6117_v44 = vor.u32 %v7112_v32, %v6116_v31  ;;  %3425 = vmatpush.bf16.msrb.mxu2 %v6389_v30 }
  0x8c   :  { %v6372_v39 = vld [vmem:[#allocation5 + $0xea0] sm:$0xf]  ;;  %v7176_v41 = vld [vmem:[#allocation5 + $0xeac] sm:$0xf0]  ;;  %v6245_v45 = vor.u32 %v7144_v36, %v6244_v33  ;;  %3438 = vmatpush.bf16.msrb.mxu3 %v6517_v35 }
  0x8d   :  { %v6500_v42 = vld [vmem:[#allocation5 + $0xfa0] sm:$0xf]  ;;  %v7208_v43 = vld [vmem:[#allocation5 + $0xfac] sm:$0xf0]  ;;  %v6373_v46 = vor.u32 %v7176_v41, %v6372_v39  ;;  %3400 = vmatpush.bf16.msrb.mxu0 %v6117_v44 }
  0x8e   :  { %v6100_v47 = vld [vmem:[#allocation5 + $0xc80] sm:$0xf]  ;;  %v7108_v48 = vld [vmem:[#allocation5 + $0xc8c] sm:$0xf0]  ;;  %v6501_v50 = vor.u32 %v7208_v43, %v6500_v42  ;;  %3413 = vmatpush.bf16.msrb.mxu1 %v6245_v45 }
  0x8f   :  { %v6228_v49 = vld [vmem:[#allocation5 + $0xd80] sm:$0xf]  ;;  %v7140_v51 = vld [vmem:[#allocation5 + $0xd8c] sm:$0xf0]  ;;  %v6101_v56 = vor.u32 %v7108_v48, %v6100_v47  ;;  %3426 = vmatpush.bf16.msrb.mxu2 %v6373_v46 }
  0x90   :  { %v6356_v52 = vld [vmem:[#allocation5 + $0xe80] sm:$0xf]  ;;  %v7172_v53 = vld [vmem:[#allocation5 + $0xe8c] sm:$0xf0]  ;;  %v6229_v57 = vor.u32 %v7140_v51, %v6228_v49  ;;  %3439 = vmatpush.bf16.msrb.mxu3 %v6501_v50 }
  0x91   :  { %v6484_v54 = vld [vmem:[#allocation5 + $0xf80] sm:$0xf]  ;;  %v7204_v55 = vld [vmem:[#allocation5 + $0xf8c] sm:$0xf0]  ;;  %v6357_v58 = vor.u32 %v7172_v53, %v6356_v52  ;;  %3401 = vmatpush.bf16.msrb.mxu0 %v6101_v56  ;;  %v6734_v52 = vld [vmem:[#allocation5 + $0xe4] sm:$0xf] }
  0x92   :  { %v6084_v59 = vld [vmem:[#allocation5 + $0xc60] sm:$0xf]  ;;  %v7104_v60 = vld [vmem:[#allocation5 + $0xc6c] sm:$0xf0]  ;;  %v6485_v62 = vor.u32 %v7204_v55, %v6484_v54  ;;  %3414 = vmatpush.bf16.msrb.mxu1 %v6229_v57  ;;  %v4614_v53 = vld [vmem:[#allocation5 + $0xf0] sm:$0xf0] }
  0x93   :  { %v6212_v61 = vld [vmem:[#allocation5 + $0xd60] sm:$0xf]  ;;  %v7136_v63 = vld [vmem:[#allocation5 + $0xd6c] sm:$0xf0]  ;;  %v6085_v4 = vor.u32 %v7104_v60, %v6084_v59  ;;  %3427 = vmatpush.bf16.msrb.mxu2 %v6357_v58  ;;  %v6766_v54 = vld [vmem:[#allocation5 + $0x1e4] sm:$0xf] }
  0x94   :  { %v6340_v0 = vld [vmem:[#allocation5 + $0xe60] sm:$0xf]  ;;  %v7168_v1 = vld [vmem:[#allocation5 + $0xe6c] sm:$0xf0]  ;;  %v6213_v5 = vor.u32 %v7136_v63, %v6212_v61  ;;  %3440 = vmatpush.bf16.msrb.mxu3 %v6485_v62  ;;  %v4742_v56 = vld [vmem:[#allocation5 + $0x1f0] sm:$0xf0] }
  0x95   :  { %v6468_v2 = vld [vmem:[#allocation5 + $0xf60] sm:$0xf]  ;;  %v7200_v3 = vld [vmem:[#allocation5 + $0xf6c] sm:$0xf0]  ;;  %v6341_v6 = vor.u32 %v7168_v1, %v6340_v0  ;;  %3402 = vmatpush.bf16.msrb.mxu0 %v6085_v4  ;;  %v6798_v57 = vld [vmem:[#allocation5 + $0x2e4] sm:$0xf]  ;;  %v4617_v1 = vor.u32 %v6734_v52, %v4614_v53 }
  0x96   :  { %v6068_v7 = vld [vmem:[#allocation5 + $0xc40] sm:$0xf]  ;;  %v7100_v10 = vld [vmem:[#allocation5 + $0xc4c] sm:$0xf0]  ;;  %v6469_v12 = vor.u32 %v7200_v3, %v6468_v2  ;;  %3415 = vmatpush.bf16.msrb.mxu1 %v6213_v5  ;;  %v4870_v58 = vld [vmem:[#allocation5 + $0x2f0] sm:$0xf0]  ;;  %v4745_v5 = vor.u32 %v6766_v54, %v4742_v56 }
  0x97   :  { %v6196_v11 = vld [vmem:[#allocation5 + $0xd40] sm:$0xf]  ;;  %v7132_v13 = vld [vmem:[#allocation5 + $0xd4c] sm:$0xf0]  ;;  %v6069_v20 = vor.u32 %v7100_v10, %v6068_v7  ;;  %3428 = vmatpush.bf16.msrb.mxu2 %v6341_v6  ;;  %v6830_v61 = vld [vmem:[#allocation5 + $0x3e4] sm:$0xf]  ;;  %v4873_v6 = vor.u32 %v6798_v57, %v4870_v58 }
  0x98   :  { %v6324_v14 = vld [vmem:[#allocation5 + $0xe40] sm:$0xf]  ;;  %v7164_v16 = vld [vmem:[#allocation5 + $0xe4c] sm:$0xf0]  ;;  %v6197_v21 = vor.u32 %v7132_v13, %v6196_v11  ;;  %3441 = vmatpush.bf16.msrb.mxu3 %v6469_v12  ;;  %v4998_v62 = vld [vmem:[#allocation5 + $0x3f0] sm:$0xf0] }
  0x99   :  { %v6452_v17 = vld [vmem:[#allocation5 + $0xf40] sm:$0xf]  ;;  %v7196_v19 = vld [vmem:[#allocation5 + $0xf4c] sm:$0xf0]  ;;  %v6325_v24 = vor.u32 %v7164_v16, %v6324_v14  ;;  %3403 = vmatpush.bf16.msrb.mxu0 %v6069_v20  ;;  %v141_v3 = vld [vmem:[#allocation2 + $0x68] sm:$0xff]  ;;  %v5001_v12 = vor.u32 %v6830_v61, %v4998_v62 }
  0x9a   :  { %v6052_v26 = vld [vmem:[#allocation5 + $0xc20] sm:$0xf]  ;;  %v7096_v28 = vld [vmem:[#allocation5 + $0xc2c] sm:$0xf0]  ;;  %v6453_v30 = vor.u32 %v7196_v19, %v6452_v17  ;;  %3416 = vmatpush.bf16.msrb.mxu1 %v6197_v21  ;;  %v143_v4 = vld [vmem:[#allocation2 + $0x78] sm:$0xff]  ;;  %v7589_v20 = vpack.c.bf16 %v141_v3, %v141_v3 }
  0x9b   :  { %v6180_v29 = vld [vmem:[#allocation5 + $0xd20] sm:$0xf]  ;;  %v7128_v31 = vld [vmem:[#allocation5 + $0xd2c] sm:$0xf0]  ;;  %v6053_v39 = vor.u32 %v7096_v28, %v6052_v26  ;;  %3429 = vmatpush.bf16.msrb.mxu2 %v6325_v24  ;;  %v6730_v7 = vld [vmem:[#allocation5 + $0xc4] sm:$0xf]  ;;  %v7591_v26 = vpack.c.bf16 %v143_v4, %v143_v4 }
  0x9c   :  { %v6308_v32 = vld [vmem:[#allocation5 + $0xe20] sm:$0xf]  ;;  %v7160_v33 = vld [vmem:[#allocation5 + $0xe2c] sm:$0xf0]  ;;  %v6181_v43 = vor.u32 %v7128_v31, %v6180_v29  ;;  %3442 = vmatpush.bf16.msrb.mxu3 %v6453_v30  ;;  %v4598_v10 = vld [vmem:[#allocation5 + $0xd0] sm:$0xf0] }
  0x9d   :  { %v6436_v35 = vld [vmem:[#allocation5 + $0xf20] sm:$0xf]  ;;  %v7192_v36 = vld [vmem:[#allocation5 + $0xf2c] sm:$0xf0]  ;;  %v6309_v44 = vor.u32 %v7160_v33, %v6308_v32  ;;  %3404 = vmatpush.bf16.msrb.mxu0 %v6053_v39  ;;  %v6762_v11 = vld [vmem:[#allocation5 + $0x1c4] sm:$0xf]  ;;  %v4601_v28 = vor.u32 %v6730_v7, %v4598_v10 }
  0x9e   :  { %v6036_v41 = vld [vmem:[#allocation5 + $0xc00] sm:$0xf]  ;;  %v7092_v42 = vld [vmem:[#allocation5 + $0xc0c] sm:$0xf0]  ;;  %v6437_v48 = vor.u32 %v7192_v36, %v6436_v35  ;;  %3417 = vmatpush.bf16.msrb.mxu1 %v6181_v43  ;;  %v4726_v14 = vld [vmem:[#allocation5 + $0x1d0] sm:$0xf0] }
  0x9f   :  { %v6164_v45 = vld [vmem:[#allocation5 + $0xd00] sm:$0xf]  ;;  %v7124_v46 = vld [vmem:[#allocation5 + $0xd0c] sm:$0xf0]  ;;  %v6037_v55 = vor.u32 %v7092_v42, %v6036_v41  ;;  %3430 = vmatpush.bf16.msrb.mxu2 %v6309_v44  ;;  %v6794_v16 = vld [vmem:[#allocation5 + $0x2c4] sm:$0xf]  ;;  %v4729_v29 = vor.u32 %v6762_v11, %v4726_v14 }
  0xa0   :  { %v6292_v47 = vld [vmem:[#allocation5 + $0xe00] sm:$0xf]  ;;  %v7156_v49 = vld [vmem:[#allocation5 + $0xe0c] sm:$0xf0]  ;;  %v6165_v59 = vor.u32 %v7124_v46, %v6164_v45  ;;  %3443 = vmatpush.bf16.msrb.mxu3 %v6437_v48  ;;  %v4854_v17 = vld [vmem:[#allocation5 + $0x2d0] sm:$0xf0] }
  0xa1   :  { %v6420_v50 = vld [vmem:[#allocation5 + $0xf00] sm:$0xf]  ;;  %v7188_v51 = vld [vmem:[#allocation5 + $0xf0c] sm:$0xf0]  ;;  %v6293_v60 = vor.u32 %v7156_v49, %v6292_v47  ;;  %3405 = vmatpush.bf16.msrb.mxu0 %v6037_v55  ;;  %v6826_v21 = vld [vmem:[#allocation5 + $0x3c4] sm:$0xf]  ;;  %v4857_v30 = vor.u32 %v6794_v16, %v4854_v17 }
  0xa2   :  { %v140_v63 = vld [vmem:[#allocation2 + $0x60] sm:$0xff]  ;;  %v6421_v0 = vor.u32 %v7188_v51, %v6420_v50  ;;  %v142_v2 = vld [vmem:[#allocation2 + $0x70] sm:$0xff]  ;;  %3418 = vmatpush.bf16.msrb.mxu1 %v6165_v59 }
  0xa3   :  { %v7585_v13 = vpack.c.bf16 %v140_v63, %v140_v63  ;;  %3431 = vmatpush.bf16.msrb.mxu2 %v6293_v60  ;;  %v7587_v19 = vpack.c.bf16 %v142_v2, %v142_v2  ;;  %v4982_v24 = vld [vmem:[#allocation5 + $0x3d0] sm:$0xf0]  ;;  %v6726_v31 = vld [vmem:[#allocation5 + $0xa4] sm:$0xf] }
  0xa4   :  { %3444 = vmatpush.bf16.msrb.mxu3 %v6421_v0  ;;  %v4582_v32 = vld [vmem:[#allocation5 + $0xb0] sm:$0xf0]  ;;  %v6758_v33 = vld [vmem:[#allocation5 + $0x1a4] sm:$0xf]  ;;  %v4985_v35 = vor.u32 %v6826_v21, %v4982_v24 }
  0xa5   :  { %3450 = vmatpush.bf16.msra.mxu0 %v4617_v1  ;;  %v4710_v36 = vld [vmem:[#allocation5 + $0x1b0] sm:$0xf0]  ;;  %v6790_v39 = vld [vmem:[#allocation5 + $0x2a4] sm:$0xf]  ;;  %3419 = vmatmul.bf16.vlgmr.msrb.gmra.mxu1 %v7589_v20  ;;  %v4585_v44 = vor.u32 %v6726_v31, %v4582_v32 }
  0xa6   :  { %3463 = vmatpush.bf16.msra.mxu1 %v4745_v5  ;;  %3406 = vmatmul.bf16.vlgmr.msrb.gmra.mxu0 %v7585_v13  ;;  %v4838_v41 = vld [vmem:[#allocation5 + $0x2b0] sm:$0xf0]  ;;  %v6822_v42 = vld [vmem:[#allocation5 + $0x3a4] sm:$0xf]  ;;  %v4713_v45 = vor.u32 %v6758_v33, %v4710_v36 }
  0xa7   :  { %3476 = vmatpush.bf16.msra.mxu2 %v4873_v6  ;;  %v4966_v43 = vld [vmem:[#allocation5 + $0x3b0] sm:$0xf0]  ;;  %3445 = vmatmul.bf16.vlgmr.msrb.gmra.mxu3 %v7591_v26  ;;  %v4841_v46 = vor.u32 %v6790_v39, %v4838_v41  ;;  %v6722_v47 = vld [vmem:[#allocation5 + $0x84] sm:$0xf] }
  0xa8   :  { %3489 = vmatpush.bf16.msra.mxu3 %v5001_v12  ;;  %3432 = vmatmul.bf16.vlgmr.msrb.gmra.mxu2 %v7587_v19  ;;  %v4566_v48 = vld [vmem:[#allocation5 + $0x90] sm:$0xf0]  ;;  %v6754_v49 = vld [vmem:[#allocation5 + $0x184] sm:$0xf]  ;;  %v4969_v50 = vor.u32 %v6822_v42, %v4966_v43 }
  0xa9   :  { %3451 = vmatpush.bf16.msra.mxu0 %v4601_v28  ;;  %v4694_v51 = vld [vmem:[#allocation5 + $0x190] sm:$0xf0]  ;;  %v6786_v52 = vld [vmem:[#allocation5 + $0x284] sm:$0xf]  ;;  %v4569_v56 = vor.u32 %v6722_v47, %v4566_v48 }
  0xaa   :  { %3464 = vmatpush.bf16.msra.mxu1 %v4729_v29  ;;  %v4822_v53 = vld [vmem:[#allocation5 + $0x290] sm:$0xf0]  ;;  %v6818_v54 = vld [vmem:[#allocation5 + $0x384] sm:$0xf]  ;;  %v4697_v57 = vor.u32 %v6754_v49, %v4694_v51 }
  0xab   :  { %3477 = vmatpush.bf16.msra.mxu2 %v4857_v30  ;;  %v4950_v55 = vld [vmem:[#allocation5 + $0x390] sm:$0xf0]  ;;  %v4825_v58 = vor.u32 %v6786_v52, %v4822_v53  ;;  %v6718_v59 = vld [vmem:[#allocation5 + $0x64] sm:$0xf] }
  0xac   :  { %3490 = vmatpush.bf16.msra.mxu3 %v4985_v35  ;;  %v4550_v60 = vld [vmem:[#allocation5 + $0x70] sm:$0xf0]  ;;  %v6750_v61 = vld [vmem:[#allocation5 + $0x164] sm:$0xf]  ;;  %v4953_v62 = vor.u32 %v6818_v54, %v4950_v55 }
  0xad   :  { %3452 = vmatpush.bf16.msra.mxu0 %v4585_v44  ;;  %v4678_v63 = vld [vmem:[#allocation5 + $0x170] sm:$0xf0]  ;;  %v6782_v0 = vld [vmem:[#allocation5 + $0x264] sm:$0xf]  ;;  %v4553_v4 = vor.u32 %v6718_v59, %v4550_v60 }
  0xae   :  { %3465 = vmatpush.bf16.msra.mxu1 %v4713_v45  ;;  %v4806_v1 = vld [vmem:[#allocation5 + $0x270] sm:$0xf0]  ;;  %v6814_v2 = vld [vmem:[#allocation5 + $0x364] sm:$0xf]  ;;  %v4681_v5 = vor.u32 %v6750_v61, %v4678_v63 }
  0xaf   :  { %3478 = vmatpush.bf16.msra.mxu2 %v4841_v46  ;;  %v4934_v3 = vld [vmem:[#allocation5 + $0x370] sm:$0xf0]  ;;  %v4809_v6 = vor.u32 %v6782_v0, %v4806_v1  ;;  %v6714_v7 = vld [vmem:[#allocation5 + $0x44] sm:$0xf] }
  0xb0   :  { %3491 = vmatpush.bf16.msra.mxu3 %v4969_v50  ;;  %v4534_v10 = vld [vmem:[#allocation5 + $0x50] sm:$0xf0]  ;;  %v6746_v11 = vld [vmem:[#allocation5 + $0x144] sm:$0xf]  ;;  %v4937_v12 = vor.u32 %v6814_v2, %v4934_v3 }
  0xb1   :  { %3453 = vmatpush.bf16.msra.mxu0 %v4569_v56  ;;  %v4662_v14 = vld [vmem:[#allocation5 + $0x150] sm:$0xf0]  ;;  %v6778_v16 = vld [vmem:[#allocation5 + $0x244] sm:$0xf]  ;;  %v4537_v28 = vor.u32 %v6714_v7, %v4534_v10 }
  0xb2   :  { %3466 = vmatpush.bf16.msra.mxu1 %v4697_v57  ;;  %v4790_v17 = vld [vmem:[#allocation5 + $0x250] sm:$0xf0]  ;;  %v6810_v21 = vld [vmem:[#allocation5 + $0x344] sm:$0xf]  ;;  %v4665_v29 = vor.u32 %v6746_v11, %v4662_v14 }
  0xb3   :  { %3479 = vmatpush.bf16.msra.mxu2 %v4825_v58  ;;  %v4918_v24 = vld [vmem:[#allocation5 + $0x350] sm:$0xf0]  ;;  %v4793_v30 = vor.u32 %v6778_v16, %v4790_v17  ;;  %v6710_v31 = vld [vmem:[#allocation5 + $0x24] sm:$0xf] }
  0xb4   :  { %3492 = vmatpush.bf16.msra.mxu3 %v4953_v62  ;;  %v4518_v32 = vld [vmem:[#allocation5 + $0x30] sm:$0xf0]  ;;  %v6742_v33 = vld [vmem:[#allocation5 + $0x124] sm:$0xf]  ;;  %v4921_v35 = vor.u32 %v6810_v21, %v4918_v24 }
  0xb5   :  { %3454 = vmatpush.bf16.msra.mxu0 %v4553_v4  ;;  %v4646_v36 = vld [vmem:[#allocation5 + $0x130] sm:$0xf0]  ;;  %v6774_v39 = vld [vmem:[#allocation5 + $0x224] sm:$0xf]  ;;  %v4521_v44 = vor.u32 %v6710_v31, %v4518_v32 }
  0xb6   :  { %3467 = vmatpush.bf16.msra.mxu1 %v4681_v5  ;;  %v4774_v41 = vld [vmem:[#allocation5 + $0x230] sm:$0xf0]  ;;  %v6806_v42 = vld [vmem:[#allocation5 + $0x324] sm:$0xf]  ;;  %v4649_v47 = vor.u32 %v6742_v33, %v4646_v36 }
  0xb7   :  { %3480 = vmatpush.bf16.msra.mxu2 %v4809_v6  ;;  %v4902_v43 = vld [vmem:[#allocation5 + $0x330] sm:$0xf0]  ;;  %v6706_v45 = vld [vmem:[#allocation5 + $0x4] sm:$0xf]  ;;  %v4777_v48 = vor.u32 %v6774_v39, %v4774_v41 }
  0xb8   :  { %3493 = vmatpush.bf16.msra.mxu3 %v4937_v12  ;;  %v4502_v46 = vld [vmem:[#allocation5 + $0x10] sm:$0xf0]  ;;  %v6738_v49 = vld [vmem:[#allocation5 + $0x104] sm:$0xf]  ;;  %v4905_v52 = vor.u32 %v6806_v42, %v4902_v43 }
  0xb9   :  { %3455 = vmatpush.bf16.msra.mxu0 %v4537_v28  ;;  %v4630_v50 = vld [vmem:[#allocation5 + $0x110] sm:$0xf0]  ;;  %v6770_v51 = vld [vmem:[#allocation5 + $0x204] sm:$0xf]  ;;  %v4505_v59 = vor.u32 %v6706_v45, %v4502_v46 }
  0xba   :  { %3468 = vmatpush.bf16.msra.mxu1 %v4665_v29  ;;  %v4758_v53 = vld [vmem:[#allocation5 + $0x210] sm:$0xf0]  ;;  %v6802_v54 = vld [vmem:[#allocation5 + $0x304] sm:$0xf]  ;;  %v4633_v63 = vor.u32 %v6738_v49, %v4630_v50 }
  0xbb   :  { %3481 = vmatpush.bf16.msra.mxu2 %v4793_v30  ;;  %v4886_v55 = vld [vmem:[#allocation5 + $0x310] sm:$0xf0]  ;;  %v6862_v56 = vld [vmem:[#allocation5 + $0x4e4] sm:$0xf]  ;;  %v4761_v0 = vor.u32 %v6770_v51, %v4758_v53 }
  0xbc   :  { %3494 = vmatpush.bf16.msra.mxu3 %v4921_v35  ;;  %v5126_v57 = vld [vmem:[#allocation5 + $0x4f0] sm:$0xf0]  ;;  %v6894_v58 = vld [vmem:[#allocation5 + $0x5e4] sm:$0xf]  ;;  %v4889_v3 = vor.u32 %v6802_v54, %v4886_v55  ;;  %v672_v54 = vld [vmem:[#allocation7] sm:$0xf] }
  0xbd   :  { %3456 = vmatpush.bf16.msra.mxu0 %v4521_v44  ;;  %v5254_v60 = vld [vmem:[#allocation5 + $0x5f0] sm:$0xf0]  ;;  %v6926_v61 = vld [vmem:[#allocation5 + $0x6e4] sm:$0xf]  ;;  %v5129_v4 = vor.u32 %v6862_v56, %v5126_v57 }
  0xbe   :  { %v5382_v62 = vld [vmem:[#allocation5 + $0x6f0] sm:$0xf0]  ;;  %3469 = vmatpush.bf16.msra.mxu1 %v4649_v47  ;;  %v6958_v1 = vld [vmem:[#allocation5 + $0x7e4] sm:$0xf]  ;;  %v5257_v5 = vor.u32 %v6894_v58, %v5254_v60 }
  0xbf   :  { %3482 = vmatpush.bf16.msra.mxu2 %v4777_v48  ;;  %v5510_v2 = vld [vmem:[#allocation5 + $0x7f0] sm:$0xf0]  ;;  %v5385_v6 = vor.u32 %v6926_v61, %v5382_v62  ;;  %v6858_v7 = vld [vmem:[#allocation5 + $0x4c4] sm:$0xf] }
  0xc0   :  { %3495 = vmatpush.bf16.msra.mxu3 %v4905_v52  ;;  %v5110_v10 = vld [vmem:[#allocation5 + $0x4d0] sm:$0xf0]  ;;  %v6890_v11 = vld [vmem:[#allocation5 + $0x5c4] sm:$0xf]  ;;  %v5513_v12 = vor.u32 %v6958_v1, %v5510_v2 }
  0xc1   :  { %3457 = vmatpush.bf16.msra.mxu0 %v4505_v59  ;;  %v5238_v14 = vld [vmem:[#allocation5 + $0x5d0] sm:$0xf0]  ;;  %v6922_v16 = vld [vmem:[#allocation5 + $0x6c4] sm:$0xf]  ;;  %v5113_v28 = vor.u32 %v6858_v7, %v5110_v10 }
  0xc2   :  { %v5366_v17 = vld [vmem:[#allocation5 + $0x6d0] sm:$0xf0]  ;;  %3470 = vmatpush.bf16.msra.mxu1 %v4633_v63  ;;  %v6954_v21 = vld [vmem:[#allocation5 + $0x7c4] sm:$0xf]  ;;  %v5241_v29 = vor.u32 %v6890_v11, %v5238_v14  ;;  %v674_v63 = vperm.slane %v672_v54, 0 }
  0xc3   :  { %3483 = vmatpush.bf16.msra.mxu2 %v4761_v0  ;;  %v5494_v24 = vld [vmem:[#allocation5 + $0x7d0] sm:$0xf0]  ;;  %v5369_v30 = vor.u32 %v6922_v16, %v5366_v17  ;;  %v6854_v31 = vld [vmem:[#allocation5 + $0x4a4] sm:$0xf] }
  0xc4   :  { %3496 = vmatpush.bf16.msra.mxu3 %v4889_v3  ;;  %v5094_v32 = vld [vmem:[#allocation5 + $0x4b0] sm:$0xf0]  ;;  %v6886_v33 = vld [vmem:[#allocation5 + $0x5a4] sm:$0xf]  ;;  %v5497_v35 = vor.u32 %v6954_v21, %v5494_v24  ;;  %3458 = vmatmul.bf16.vlgmr.msra.gmra.mxu0 %v7551_v9 }
  0xc5   :  { %3502 = vmatpush.bf16.msrb.mxu0 %v5129_v4  ;;  %v5222_v36 = vld [vmem:[#allocation5 + $0x5b0] sm:$0xf0]  ;;  %v6918_v39 = vld [vmem:[#allocation5 + $0x6a4] sm:$0xf]  ;;  %v5097_v44 = vor.u32 %v6854_v31, %v5094_v32  ;;  %3471 = vmatmul.bf16.vlgmr.msra.gmra.mxu1 %v7558_v25 }
  0xc6   :  { %3515 = vmatpush.bf16.msrb.mxu1 %v5257_v5  ;;  %v5350_v41 = vld [vmem:[#allocation5 + $0x6b0] sm:$0xf0]  ;;  %3484 = vmatmul.bf16.vlgmr.msra.gmra.mxu2 %v7549_v8  ;;  %v6950_v42 = vld [vmem:[#allocation5 + $0x7a4] sm:$0xf]  ;;  %v5225_v46 = vor.u32 %v6886_v33, %v5222_v36  ;;  %v3264_v33 = vpop.f32.mrf.mxu1 }
  0xc7   :  { %3528 = vmatpush.bf16.msrb.mxu2 %v5385_v6  ;;  %v5478_v43 = vld [vmem:[#allocation5 + $0x7b0] sm:$0xf0]  ;;  %3497 = vmatmul.bf16.vlgmr.msra.gmra.mxu3 %v7553_v15  ;;  %v6850_v45 = vld [vmem:[#allocation5 + $0x484] sm:$0xf]  ;;  %v5353_v47 = vor.u32 %v6918_v39, %v5350_v41 }
  0xc8   :  { %3541 = vmatpush.bf16.msrb.mxu3 %v5513_v12  ;;  %v5078_v48 = vld [vmem:[#allocation5 + $0x490] sm:$0xf0]  ;;  %v6882_v49 = vld [vmem:[#allocation5 + $0x584] sm:$0xf]  ;;  %v5481_v51 = vor.u32 %v6950_v42, %v5478_v43 }
  0xc9   :  { %3503 = vmatpush.bf16.msrb.mxu0 %v5113_v28  ;;  %v5206_v50 = vld [vmem:[#allocation5 + $0x590] sm:$0xf0]  ;;  %v6914_v52 = vld [vmem:[#allocation5 + $0x684] sm:$0xf]  ;;  %v5081_v57 = vor.u32 %v6850_v45, %v5078_v48 }
  0xca   :  { %3516 = vmatpush.bf16.msrb.mxu1 %v5241_v29  ;;  %v5334_v53 = vld [vmem:[#allocation5 + $0x690] sm:$0xf0]  ;;  %v6946_v55 = vld [vmem:[#allocation5 + $0x784] sm:$0xf]  ;;  %v5209_v59 = vor.u32 %v6882_v49, %v5206_v50 }
  0xcb   :  { %3529 = vmatpush.bf16.msrb.mxu2 %v5369_v30  ;;  %v5462_v56 = vld [vmem:[#allocation5 + $0x790] sm:$0xf0]  ;;  %v6846_v58 = vld [vmem:[#allocation5 + $0x464] sm:$0xf]  ;;  %v5337_v60 = vor.u32 %v6914_v52, %v5334_v53  ;;  %v3290_v52 = vpop.f32.mrf.mxu3 }
  0xcc   :  { %3542 = vmatpush.bf16.msrb.mxu3 %v5497_v35  ;;  %v5062_v61 = vld [vmem:[#allocation5 + $0x470] sm:$0xf0]  ;;  %v6878_v62 = vld [vmem:[#allocation5 + $0x564] sm:$0xf]  ;;  %v5465_v0 = vor.u32 %v6946_v55, %v5462_v56  ;;  %v3251_v7 = vpop.f32.mrf.mxu0 }
  0xcd   :  { %3504 = vmatpush.bf16.msrb.mxu0 %v5097_v44  ;;  %v5190_v1 = vld [vmem:[#allocation5 + $0x570] sm:$0xf0]  ;;  %v6910_v2 = vld [vmem:[#allocation5 + $0x664] sm:$0xf]  ;;  %v5065_v6 = vor.u32 %v6846_v58, %v5062_v61  ;;  %v3252_v17 = vadd.f32 %v3251_v7, %v674_v63 }
  0xce   :  { %3517 = vmatpush.bf16.msrb.mxu1 %v5225_v46  ;;  %v5318_v3 = vld [vmem:[#allocation5 + $0x670] sm:$0xf0]  ;;  %v6942_v4 = vld [vmem:[#allocation5 + $0x764] sm:$0xf]  ;;  %v5193_v10 = vor.u32 %v6878_v62, %v5190_v1 }
  0xcf   :  { %3530 = vmatpush.bf16.msrb.mxu2 %v5353_v47  ;;  %v5446_v5 = vld [vmem:[#allocation5 + $0x770] sm:$0xf0]  ;;  %v5321_v11 = vor.u32 %v6910_v2, %v5318_v3  ;;  %v6842_v12 = vld [vmem:[#allocation5 + $0x444] sm:$0xf]  ;;  %v3265_v43 = vadd.f32 %v3264_v33, %v3252_v17 }
  0xd0   :  { %3543 = vmatpush.bf16.msrb.mxu3 %v5481_v51  ;;  %v5046_v14 = vld [vmem:[#allocation5 + $0x450] sm:$0xf0]  ;;  %v6874_v16 = vld [vmem:[#allocation5 + $0x544] sm:$0xf]  ;;  %v5449_v21 = vor.u32 %v6942_v4, %v5446_v5 }
  0xd1   :  { %3505 = vmatpush.bf16.msrb.mxu0 %v5081_v57  ;;  %v5174_v24 = vld [vmem:[#allocation5 + $0x550] sm:$0xf0]  ;;  %v6906_v28 = vld [vmem:[#allocation5 + $0x644] sm:$0xf]  ;;  %v5049_v32 = vor.u32 %v6842_v12, %v5046_v14  ;;  %v3277_v48 = vpop.f32.mrf.mxu2  ;;  %v3266_v12 = vpop.f32.mrf.mxu1 }
  0xd2   :  { %3518 = vmatpush.bf16.msrb.mxu1 %v5209_v59  ;;  %v5302_v29 = vld [vmem:[#allocation5 + $0x650] sm:$0xf0]  ;;  %v6938_v30 = vld [vmem:[#allocation5 + $0x744] sm:$0xf]  ;;  %v5177_v35 = vor.u32 %v6874_v16, %v5174_v24  ;;  %v3278_v51 = vadd.f32 %v3277_v48, %v3265_v43 }
  0xd3   :  { %3531 = vmatpush.bf16.msrb.mxu2 %v5337_v60  ;;  %v5430_v31 = vld [vmem:[#allocation5 + $0x750] sm:$0xf0]  ;;  %v5305_v36 = vor.u32 %v6906_v28, %v5302_v29  ;;  %v6838_v39 = vld [vmem:[#allocation5 + $0x424] sm:$0xf] }
  0xd4   :  { %3544 = vmatpush.bf16.msrb.mxu3 %v5465_v0  ;;  %v5030_v41 = vld [vmem:[#allocation5 + $0x430] sm:$0xf0]  ;;  %v6870_v42 = vld [vmem:[#allocation5 + $0x524] sm:$0xf]  ;;  %v5433_v44 = vor.u32 %v6938_v30, %v5430_v31  ;;  %v3253_v56 = vpop.f32.mrf.mxu0  ;;  %v7601_v62 = vadd.f32 %v3290_v52, %v3278_v51 }
  0xd5   :  { %3506 = vmatpush.bf16.msrb.mxu0 %v5065_v6  ;;  %v5158_v45 = vld [vmem:[#allocation5 + $0x530] sm:$0xf0]  ;;  %v6902_v46 = vld [vmem:[#allocation5 + $0x624] sm:$0xf]  ;;  %v5033_v53 = vor.u32 %v6838_v39, %v5030_v41 }
  0xd6   :  { %3519 = vmatpush.bf16.msrb.mxu1 %v5193_v10  ;;  %v5286_v47 = vld [vmem:[#allocation5 + $0x630] sm:$0xf0]  ;;  %v6934_v49 = vld [vmem:[#allocation5 + $0x724] sm:$0xf]  ;;  %v5161_v57 = vor.u32 %v6870_v42, %v5158_v45 }
  0xd7   :  { %3532 = vmatpush.bf16.msrb.mxu2 %v5321_v11  ;;  %v5414_v50 = vld [vmem:[#allocation5 + $0x730] sm:$0xf0]  ;;  %v6834_v54 = vld [vmem:[#allocation5 + $0x404] sm:$0xf]  ;;  %v5289_v58 = vor.u32 %v6902_v46, %v5286_v47 }
  0xd8   :  { %3545 = vmatpush.bf16.msrb.mxu3 %v5449_v21  ;;  %v5014_v55 = vld [vmem:[#allocation5 + $0x410] sm:$0xf0]  ;;  %v6866_v59 = vld [vmem:[#allocation5 + $0x504] sm:$0xf]  ;;  %v5417_v63 = vor.u32 %v6934_v49, %v5414_v50 }
  0xd9   :  { %3507 = vmatpush.bf16.msrb.mxu0 %v5049_v32  ;;  %v5142_v60 = vld [vmem:[#allocation5 + $0x510] sm:$0xf0]  ;;  %v6898_v61 = vld [vmem:[#allocation5 + $0x604] sm:$0xf]  ;;  %v5017_v6 = vor.u32 %v6834_v54, %v5014_v55  ;;  %v3279_v29 = vpop.f32.mrf.mxu2 }
  0xda   :  { %3520 = vmatpush.bf16.msrb.mxu1 %v5177_v35  ;;  %v5270_v0 = vld [vmem:[#allocation5 + $0x610] sm:$0xf0]  ;;  %v6930_v1 = vld [vmem:[#allocation5 + $0x704] sm:$0xf]  ;;  %v5145_v14 = vor.u32 %v6866_v59, %v5142_v60 }
  0xdb   :  { %3533 = vmatpush.bf16.msrb.mxu2 %v5305_v36  ;;  %v5398_v2 = vld [vmem:[#allocation5 + $0x710] sm:$0xf0]  ;;  %v6990_v3 = vld [vmem:[#allocation5 + $0x8e4] sm:$0xf]  ;;  %v5273_v16 = vor.u32 %v6898_v61, %v5270_v0  ;;  %v3292_v36 = vpop.f32.mrf.mxu3 }
  0xdc   :  { %3546 = vmatpush.bf16.msrb.mxu3 %v5433_v44  ;;  %v5638_v4 = vld [vmem:[#allocation5 + $0x8f0] sm:$0xf0]  ;;  %v7022_v5 = vld [vmem:[#allocation5 + $0x9e4] sm:$0xf]  ;;  %v5401_v24 = vor.u32 %v6930_v1, %v5398_v2 }
  0xdd   :  { %3508 = vmatpush.bf16.msrb.mxu0 %v5033_v53  ;;  %v5766_v7 = vld [vmem:[#allocation5 + $0x9f0] sm:$0xf0]  ;;  %v7054_v10 = vld [vmem:[#allocation5 + $0xae4] sm:$0xf]  ;;  %v5641_v28 = vor.u32 %v6990_v3, %v5638_v4 }
  0xde   :  { %v5894_v11 = vld [vmem:[#allocation5 + $0xaf0] sm:$0xf0]  ;;  %3521 = vmatpush.bf16.msrb.mxu1 %v5161_v57  ;;  %v7086_v17 = vld [vmem:[#allocation5 + $0xbe4] sm:$0xf]  ;;  %v5769_v30 = vor.u32 %v7022_v5, %v5766_v7 }
  0xdf   :  { %3534 = vmatpush.bf16.msrb.mxu2 %v5289_v58  ;;  %v6022_v21 = vld [vmem:[#allocation5 + $0xbf0] sm:$0xf0]  ;;  %v5897_v31 = vor.u32 %v7054_v10, %v5894_v11  ;;  %v6986_v32 = vld [vmem:[#allocation5 + $0x8c4] sm:$0xf] }
  0xe0   :  { %3547 = vmatpush.bf16.msrb.mxu3 %v5417_v63  ;;  %v5622_v33 = vld [vmem:[#allocation5 + $0x8d0] sm:$0xf0]  ;;  %v7018_v35 = vld [vmem:[#allocation5 + $0x9c4] sm:$0xf]  ;;  %v6025_v39 = vor.u32 %v7086_v17, %v6022_v21 }
  0xe1   :  { %3509 = vmatpush.bf16.msrb.mxu0 %v5017_v6  ;;  %v5750_v41 = vld [vmem:[#allocation5 + $0x9d0] sm:$0xf0]  ;;  %v7050_v42 = vld [vmem:[#allocation5 + $0xac4] sm:$0xf]  ;;  %v5625_v46 = vor.u32 %v6986_v32, %v5622_v33 }
  0xe2   :  { %v5878_v43 = vld [vmem:[#allocation5 + $0xad0] sm:$0xf0]  ;;  %3522 = vmatpush.bf16.msrb.mxu1 %v5145_v14  ;;  %v7082_v44 = vld [vmem:[#allocation5 + $0xbc4] sm:$0xf]  ;;  %v5753_v47 = vor.u32 %v7018_v35, %v5750_v41 }
  0xe3   :  { %3535 = vmatpush.bf16.msrb.mxu2 %v5273_v16  ;;  %v6006_v45 = vld [vmem:[#allocation5 + $0xbd0] sm:$0xf0]  ;;  %v5881_v48 = vor.u32 %v7050_v42, %v5878_v43  ;;  %v6982_v49 = vld [vmem:[#allocation5 + $0x8a4] sm:$0xf] }
  0xe4   :  { %3548 = vmatpush.bf16.msrb.mxu3 %v5401_v24  ;;  %v5606_v50 = vld [vmem:[#allocation5 + $0x8b0] sm:$0xf0]  ;;  %v7014_v51 = vld [vmem:[#allocation5 + $0x9a4] sm:$0xf]  ;;  %v6009_v52 = vor.u32 %v7082_v44, %v6006_v45  ;;  %3510 = vmatmul.bf16.vlgmr.msrb.gmra.mxu0 %v7563_v37  ;;  %v3316_v24 = vpop.f32.mrf.mxu1 }
  0xe5   :  { %3554 = vmatpush.bf16.msra.mxu0 %v5641_v28  ;;  %v5734_v53 = vld [vmem:[#allocation5 + $0x9b0] sm:$0xf0]  ;;  %v7046_v54 = vld [vmem:[#allocation5 + $0xaa4] sm:$0xf]  ;;  %v5609_v58 = vor.u32 %v6982_v49, %v5606_v50  ;;  %3523 = vmatmul.bf16.vlgmr.msrb.gmra.mxu1 %v7567_v40  ;;  %v3303_v10 = vpop.f32.mrf.mxu0 }
  0xe6   :  { %3567 = vmatpush.bf16.msra.mxu1 %v5769_v30  ;;  %3536 = vmatmul.bf16.vlgmr.msrb.gmra.mxu2 %v7561_v34  ;;  %v5862_v55 = vld [vmem:[#allocation5 + $0xab0] sm:$0xf0]  ;;  %v7078_v56 = vld [vmem:[#allocation5 + $0xba4] sm:$0xf]  ;;  %v5737_v59 = vor.u32 %v7014_v51, %v5734_v53  ;;  %v3304_v21 = vadd.f32 %v3303_v10, %v7601_v62 }
  0xe7   :  { %3580 = vmatpush.bf16.msra.mxu2 %v5897_v31  ;;  %v5990_v57 = vld [vmem:[#allocation5 + $0xbb0] sm:$0xf0]  ;;  %3549 = vmatmul.bf16.vlgmr.msrb.gmra.mxu3 %v7565_v38  ;;  %v5865_v60 = vor.u32 %v7046_v54, %v5862_v55  ;;  %v6978_v61 = vld [vmem:[#allocation5 + $0x884] sm:$0xf] }
  0xe8   :  { %3593 = vmatpush.bf16.msra.mxu3 %v6025_v39  ;;  %v5590_v63 = vld [vmem:[#allocation5 + $0x890] sm:$0xf0]  ;;  %v7010_v0 = vld [vmem:[#allocation5 + $0x984] sm:$0xf]  ;;  %v5993_v1 = vor.u32 %v7078_v56, %v5990_v57  ;;  %v3317_v35 = vadd.f32 %v3316_v24, %v3304_v21  ;;  %v3342_v50 = vpop.f32.mrf.mxu3 }
  0xe9   :  { %3555 = vmatpush.bf16.msra.mxu0 %v5625_v46  ;;  %v5718_v2 = vld [vmem:[#allocation5 + $0x990] sm:$0xf0]  ;;  %v7042_v3 = vld [vmem:[#allocation5 + $0xa84] sm:$0xf]  ;;  %v5593_v7 = vor.u32 %v6978_v61, %v5590_v63 }
  0xea   :  { %3568 = vmatpush.bf16.msra.mxu1 %v5753_v47  ;;  %v5846_v4 = vld [vmem:[#allocation5 + $0xa90] sm:$0xf0]  ;;  %v7074_v5 = vld [vmem:[#allocation5 + $0xb84] sm:$0xf]  ;;  %v5721_v11 = vor.u32 %v7010_v0, %v5718_v2  ;;  %v3329_v45 = vpop.f32.mrf.mxu2 }
  0xeb   :  { %3581 = vmatpush.bf16.msra.mxu2 %v5881_v48  ;;  %v5974_v6 = vld [vmem:[#allocation5 + $0xb90] sm:$0xf0]  ;;  %v5849_v12 = vor.u32 %v7042_v3, %v5846_v4  ;;  %v6974_v14 = vld [vmem:[#allocation5 + $0x864] sm:$0xf]  ;;  %v3330_v49 = vadd.f32 %v3329_v45, %v3317_v35 }
  0xec   :  { %3594 = vmatpush.bf16.msra.mxu3 %v6009_v52  ;;  %v5574_v16 = vld [vmem:[#allocation5 + $0x870] sm:$0xf0]  ;;  %v7006_v17 = vld [vmem:[#allocation5 + $0x964] sm:$0xf]  ;;  %v5977_v28 = vor.u32 %v7074_v5, %v5974_v6  ;;  %v3318_v61 = vpop.f32.mrf.mxu1 }
  0xed   :  { %3556 = vmatpush.bf16.msra.mxu0 %v5609_v58  ;;  %v5702_v29 = vld [vmem:[#allocation5 + $0x970] sm:$0xf0]  ;;  %v7038_v30 = vld [vmem:[#allocation5 + $0xa64] sm:$0xf]  ;;  %v5577_v36 = vor.u32 %v6974_v14, %v5574_v16  ;;  %v7608_v54 = vadd.f32 %v3342_v50, %v3330_v49  ;;  %v3305_v55 = vpop.f32.mrf.mxu0 }
  0xee   :  { %3569 = vmatpush.bf16.msra.mxu1 %v5737_v59  ;;  %v5830_v31 = vld [vmem:[#allocation5 + $0xa70] sm:$0xf0]  ;;  %v7070_v32 = vld [vmem:[#allocation5 + $0xb64] sm:$0xf]  ;;  %v5705_v39 = vor.u32 %v7006_v17, %v5702_v29 }
  0xef   :  { %3582 = vmatpush.bf16.msra.mxu2 %v5865_v60  ;;  %v5958_v33 = vld [vmem:[#allocation5 + $0xb70] sm:$0xf0]  ;;  %v5833_v41 = vor.u32 %v7038_v30, %v5830_v31  ;;  %v6970_v42 = vld [vmem:[#allocation5 + $0x844] sm:$0xf] }
  0xf0   :  { %3595 = vmatpush.bf16.msra.mxu3 %v5993_v1  ;;  %v5558_v43 = vld [vmem:[#allocation5 + $0x850] sm:$0xf0]  ;;  %v7002_v44 = vld [vmem:[#allocation5 + $0x944] sm:$0xf]  ;;  %v5961_v62 = vor.u32 %v7070_v32, %v5958_v33  ;;  %v3344_v30 = vpop.f32.mrf.mxu3 }
  0xf1   :  { %3557 = vmatpush.bf16.msra.mxu0 %v5593_v7  ;;  %v5686_v46 = vld [vmem:[#allocation5 + $0x950] sm:$0xf0]  ;;  %v7034_v47 = vld [vmem:[#allocation5 + $0xa44] sm:$0xf]  ;;  %v5561_v53 = vor.u32 %v6970_v42, %v5558_v43 }
  0xf2   :  { %3570 = vmatpush.bf16.msra.mxu1 %v5721_v11  ;;  %v5814_v48 = vld [vmem:[#allocation5 + $0xa50] sm:$0xf0]  ;;  %v7066_v51 = vld [vmem:[#allocation5 + $0xb44] sm:$0xf]  ;;  %v5689_v56 = vor.u32 %v7002_v44, %v5686_v46  ;;  %v3331_v17 = vpop.f32.mrf.mxu2 }
  0xf3   :  { %3583 = vmatpush.bf16.msra.mxu2 %v5849_v12  ;;  %v5942_v52 = vld [vmem:[#allocation5 + $0xb50] sm:$0xf0]  ;;  %v5817_v57 = vor.u32 %v7034_v47, %v5814_v48  ;;  %v6966_v58 = vld [vmem:[#allocation5 + $0x824] sm:$0xf] }
  0xf4   :  { %3596 = vmatpush.bf16.msra.mxu3 %v5977_v28  ;;  %v5542_v59 = vld [vmem:[#allocation5 + $0x830] sm:$0xf0]  ;;  %v6998_v60 = vld [vmem:[#allocation5 + $0x924] sm:$0xf]  ;;  %v5945_v63 = vor.u32 %v7066_v51, %v5942_v52 }
  0xf5   :  { %3558 = vmatpush.bf16.msra.mxu0 %v5577_v36  ;;  %v5670_v0 = vld [vmem:[#allocation5 + $0x930] sm:$0xf0]  ;;  %v7030_v1 = vld [vmem:[#allocation5 + $0xa24] sm:$0xf]  ;;  %v5545_v5 = vor.u32 %v6966_v58, %v5542_v59 }
  0xf6   :  { %3571 = vmatpush.bf16.msra.mxu1 %v5705_v39  ;;  %v5798_v2 = vld [vmem:[#allocation5 + $0xa30] sm:$0xf0]  ;;  %v7062_v3 = vld [vmem:[#allocation5 + $0xb24] sm:$0xf]  ;;  %v5673_v10 = vor.u32 %v6998_v60, %v5670_v0 }
  0xf7   :  { %3584 = vmatpush.bf16.msra.mxu2 %v5833_v41  ;;  %v5926_v4 = vld [vmem:[#allocation5 + $0xb30] sm:$0xf0]  ;;  %v6962_v6 = vld [vmem:[#allocation5 + $0x804] sm:$0xf]  ;;  %v5801_v11 = vor.u32 %v7030_v1, %v5798_v2 }
  0xf8   :  { %3597 = vmatpush.bf16.msra.mxu3 %v5961_v62  ;;  %v5526_v7 = vld [vmem:[#allocation5 + $0x810] sm:$0xf0]  ;;  %v6994_v12 = vld [vmem:[#allocation5 + $0x904] sm:$0xf]  ;;  %v5929_v21 = vor.u32 %v7062_v3, %v5926_v4 }
  0xf9   :  { %3559 = vmatpush.bf16.msra.mxu0 %v5561_v53  ;;  %v5654_v14 = vld [vmem:[#allocation5 + $0x910] sm:$0xf0]  ;;  %v7026_v16 = vld [vmem:[#allocation5 + $0xa04] sm:$0xf]  ;;  %v5529_v35 = vor.u32 %v6962_v6, %v5526_v7 }
  0xfa   :  { %3572 = vmatpush.bf16.msra.mxu1 %v5689_v56  ;;  %v5782_v24 = vld [vmem:[#allocation5 + $0xa10] sm:$0xf0]  ;;  %v7058_v28 = vld [vmem:[#allocation5 + $0xb04] sm:$0xf]  ;;  %v5657_v42 = vor.u32 %v6994_v12, %v5654_v14 }
  0xfb   :  { %3585 = vmatpush.bf16.msra.mxu2 %v5817_v57  ;;  %v5910_v29 = vld [vmem:[#allocation5 + $0xb10] sm:$0xf0]  ;;  %v7118_v31 = vld [vmem:[#allocation5 + $0xce4] sm:$0xf]  ;;  %v5785_v43 = vor.u32 %v7026_v16, %v5782_v24 }
  0xfc   :  { %3598 = vmatpush.bf16.msra.mxu3 %v5945_v63  ;;  %v6150_v32 = vld [vmem:[#allocation5 + $0xcf0] sm:$0xf0]  ;;  %v7150_v33 = vld [vmem:[#allocation5 + $0xde4] sm:$0xf]  ;;  %v5913_v62 = vor.u32 %v7058_v28, %v5910_v29 }
  0xfd   :  { %3560 = vmatpush.bf16.msra.mxu0 %v5545_v5  ;;  %v6278_v36 = vld [vmem:[#allocation5 + $0xdf0] sm:$0xf0]  ;;  %v7182_v39 = vld [vmem:[#allocation5 + $0xee4] sm:$0xf]  ;;  %v6153_v46 = vor.u32 %v7118_v31, %v6150_v32 }
  0xfe   :  { %v6406_v41 = vld [vmem:[#allocation5 + $0xef0] sm:$0xf0]  ;;  %3573 = vmatpush.bf16.msra.mxu1 %v5673_v10  ;;  %v7214_v44 = vld [vmem:[#allocation5 + $0xfe4] sm:$0xf]  ;;  %v6281_v47 = vor.u32 %v7150_v33, %v6278_v36 }
  0xff   :  { %3586 = vmatpush.bf16.msra.mxu2 %v5801_v11  ;;  %v6534_v45 = vld [vmem:[#allocation5 + $0xff0] sm:$0xf0]  ;;  %v6409_v48 = vor.u32 %v7182_v39, %v6406_v41  ;;  %v7114_v49 = vld [vmem:[#allocation5 + $0xcc4] sm:$0xf] }
 0x100   :  { %3599 = vmatpush.bf16.msra.mxu3 %v5929_v21  ;;  %v6134_v50 = vld [vmem:[#allocation5 + $0xcd0] sm:$0xf0]  ;;  %v7146_v51 = vld [vmem:[#allocation5 + $0xdc4] sm:$0xf]  ;;  %v6537_v52 = vor.u32 %v7214_v44, %v6534_v45 }
 0x101   :  { %3561 = vmatpush.bf16.msra.mxu0 %v5529_v35  ;;  %v6262_v53 = vld [vmem:[#allocation5 + $0xdd0] sm:$0xf0]  ;;  %v7178_v55 = vld [vmem:[#allocation5 + $0xec4] sm:$0xf]  ;;  %v6137_v59 = vor.u32 %v7114_v49, %v6134_v50  ;;  %v3368_v36 = vpop.f32.mrf.mxu1 }
 0x102   :  { %v6390_v56 = vld [vmem:[#allocation5 + $0xed0] sm:$0xf0]  ;;  %3574 = vmatpush.bf16.msra.mxu1 %v5657_v42  ;;  %v7210_v57 = vld [vmem:[#allocation5 + $0xfc4] sm:$0xf]  ;;  %v6265_v60 = vor.u32 %v7146_v51, %v6262_v53 }
 0x103   :  { %3587 = vmatpush.bf16.msra.mxu2 %v5785_v43  ;;  %v6518_v58 = vld [vmem:[#allocation5 + $0xfd0] sm:$0xf0]  ;;  %v6393_v61 = vor.u32 %v7178_v55, %v6390_v56  ;;  %v7110_v63 = vld [vmem:[#allocation5 + $0xca4] sm:$0xf] }
 0x104   :  { %3600 = vmatpush.bf16.msra.mxu3 %v5913_v62  ;;  %v6118_v0 = vld [vmem:[#allocation5 + $0xcb0] sm:$0xf0]  ;;  %v7142_v1 = vld [vmem:[#allocation5 + $0xda4] sm:$0xf]  ;;  %3562 = vmatmul.bf16.vlgmr.msra.gmra.mxu0 %v7573_v18  ;;  %v6521_v2 = vor.u32 %v7210_v57, %v6518_v58 }
 0x105   :  { %3606 = vmatpush.bf16.msrb.mxu0 %v6153_v46  ;;  %v6246_v3 = vld [vmem:[#allocation5 + $0xdb0] sm:$0xf0]  ;;  %v7174_v4 = vld [vmem:[#allocation5 + $0xea4] sm:$0xf]  ;;  %3575 = vmatmul.bf16.vlgmr.msra.gmra.mxu1 %v7577_v23  ;;  %v6121_v10 = vor.u32 %v7110_v63, %v6118_v0  ;;  %v3355_v30 = vpop.f32.mrf.mxu0 }
 0x106   :  { %3619 = vmatpush.bf16.msrb.mxu1 %v6281_v47  ;;  %v6374_v5 = vld [vmem:[#allocation5 + $0xeb0] sm:$0xf0]  ;;  %3588 = vmatmul.bf16.vlgmr.msra.gmra.mxu2 %v7575_v22  ;;  %v7206_v6 = vld [vmem:[#allocation5 + $0xfa4] sm:$0xf]  ;;  %v6249_v11 = vor.u32 %v7142_v1, %v6246_v3  ;;  %v3356_v33 = vadd.f32 %v3355_v30, %v7608_v54 }
 0x107   :  { %3632 = vmatpush.bf16.msrb.mxu2 %v6409_v48  ;;  %v6502_v7 = vld [vmem:[#allocation5 + $0xfb0] sm:$0xf0]  ;;  %3601 = vmatmul.bf16.vlgmr.msra.gmra.mxu3 %v7579_v27  ;;  %v6377_v12 = vor.u32 %v7174_v4, %v6374_v5  ;;  %v7106_v14 = vld [vmem:[#allocation5 + $0xc84] sm:$0xf] }
 0x108   :  { %3645 = vmatpush.bf16.msrb.mxu3 %v6537_v52  ;;  %v6102_v16 = vld [vmem:[#allocation5 + $0xc90] sm:$0xf0]  ;;  %v7138_v17 = vld [vmem:[#allocation5 + $0xd84] sm:$0xf]  ;;  %v6505_v21 = vor.u32 %v7206_v6, %v6502_v7  ;;  %v3369_v62 = vadd.f32 %v3368_v36, %v3356_v33 }
 0x109   :  { %3607 = vmatpush.bf16.msrb.mxu0 %v6137_v59  ;;  %v6230_v24 = vld [vmem:[#allocation5 + $0xd90] sm:$0xf0]  ;;  %v7170_v28 = vld [vmem:[#allocation5 + $0xe84] sm:$0xf]  ;;  %v6105_v35 = vor.u32 %v7106_v14, %v6102_v16  ;;  %v3394_v0 = vpop.f32.mrf.mxu3  ;;  %v3370_v5 = vpop.f32.mrf.mxu1 }
 0x10a   :  { %3620 = vmatpush.bf16.msrb.mxu1 %v6265_v60  ;;  %v6358_v29 = vld [vmem:[#allocation5 + $0xe90] sm:$0xf0]  ;;  %v7202_v31 = vld [vmem:[#allocation5 + $0xf84] sm:$0xf]  ;;  %v6233_v39 = vor.u32 %v7138_v17, %v6230_v24  ;;  %v6797_v5 = vld [vmem:[#allocation5 + $0x2d4] sm:$0xf0] }
 0x10b   :  { %3633 = vmatpush.bf16.msrb.mxu2 %v6393_v61  ;;  %v6486_v32 = vld [vmem:[#allocation5 + $0xf90] sm:$0xf0]  ;;  %v6361_v41 = vor.u32 %v7170_v28, %v6358_v29  ;;  %v7102_v42 = vld [vmem:[#allocation5 + $0xc64] sm:$0xf]  ;;  %v3381_v58 = vpop.f32.mrf.mxu2 }
 0x10c   :  { %3646 = vmatpush.bf16.msrb.mxu3 %v6521_v2  ;;  %v6086_v43 = vld [vmem:[#allocation5 + $0xc70] sm:$0xf0]  ;;  %v7134_v44 = vld [vmem:[#allocation5 + $0xd64] sm:$0xf]  ;;  %v6489_v45 = vor.u32 %v7202_v31, %v6486_v32  ;;  %v3382_v63 = vadd.f32 %v3381_v58, %v3369_v62 }
 0x10d   :  { %3608 = vmatpush.bf16.msrb.mxu0 %v6121_v10  ;;  %v6214_v46 = vld [vmem:[#allocation5 + $0xd70] sm:$0xf0]  ;;  %v7166_v47 = vld [vmem:[#allocation5 + $0xe64] sm:$0xf]  ;;  %v6089_v51 = vor.u32 %v7102_v42, %v6086_v43  ;;  %v3357_v3 = vpop.f32.mrf.mxu0 }
 0x10e   :  { %3621 = vmatpush.bf16.msrb.mxu1 %v6249_v11  ;;  %v6342_v48 = vld [vmem:[#allocation5 + $0xe70] sm:$0xf0]  ;;  %v7198_v49 = vld [vmem:[#allocation5 + $0xf64] sm:$0xf]  ;;  %v6217_v54 = vor.u32 %v7134_v44, %v6214_v46  ;;  %v7615_v6 = vadd.f32 %v3394_v0, %v3382_v63  ;;  %v4620_v46 = vld [vmem:[#allocation5 + $0xe8] sm:$0xf] }
 0x10f   :  { %3634 = vmatpush.bf16.msrb.mxu2 %v6377_v12  ;;  %v6470_v50 = vld [vmem:[#allocation5 + $0xf70] sm:$0xf0]  ;;  %v6345_v52 = vor.u32 %v7166_v47, %v6342_v48  ;;  %v7098_v53 = vld [vmem:[#allocation5 + $0xc44] sm:$0xf]  ;;  %v6737_v47 = vld [vmem:[#allocation5 + $0xf4] sm:$0xf0] }
 0x110   :  { %3647 = vmatpush.bf16.msrb.mxu3 %v6505_v21  ;;  %v6070_v55 = vld [vmem:[#allocation5 + $0xc50] sm:$0xf0]  ;;  %v7130_v56 = vld [vmem:[#allocation5 + $0xd44] sm:$0xf]  ;;  %v6473_v57 = vor.u32 %v7198_v49, %v6470_v50  ;;  %v4748_v48 = vld [vmem:[#allocation5 + $0x1e8] sm:$0xf] }
 0x111   :  { %3609 = vmatpush.bf16.msrb.mxu0 %v6105_v35  ;;  %v6198_v59 = vld [vmem:[#allocation5 + $0xd50] sm:$0xf0]  ;;  %v7162_v60 = vld [vmem:[#allocation5 + $0xe44] sm:$0xf]  ;;  %v6073_v4 = vor.u32 %v7098_v53, %v6070_v55  ;;  %v3396_v49 = vpop.f32.mrf.mxu3  ;;  %v4604_v63 = vld [vmem:[#allocation5 + $0xc8] sm:$0xf] }
 0x112   :  { %3622 = vmatpush.bf16.msrb.mxu1 %v6233_v39  ;;  %v6326_v61 = vld [vmem:[#allocation5 + $0xe50] sm:$0xf0]  ;;  %v7194_v1 = vld [vmem:[#allocation5 + $0xf44] sm:$0xf]  ;;  %v6201_v7 = vor.u32 %v7130_v56, %v6198_v59  ;;  %v5004_v56 = vld [vmem:[#allocation5 + $0x3e8] sm:$0xf]  ;;  %v4621_v59 = vor.u32 %v6737_v47, %v4620_v46 }
 0x113   :  { %3635 = vmatpush.bf16.msrb.mxu2 %v6361_v41  ;;  %v6454_v2 = vld [vmem:[#allocation5 + $0xf50] sm:$0xf0]  ;;  %v6329_v10 = vor.u32 %v7162_v60, %v6326_v61  ;;  %v7094_v11 = vld [vmem:[#allocation5 + $0xc24] sm:$0xf]  ;;  %v3383_v62 = vpop.f32.mrf.mxu2  ;;  %v6733_v0 = vld [vmem:[#allocation5 + $0xd4] sm:$0xf0] }
 0x114   :  { %3648 = vmatpush.bf16.msrb.mxu3 %v6489_v45  ;;  %v6054_v12 = vld [vmem:[#allocation5 + $0xc30] sm:$0xf0]  ;;  %v7126_v14 = vld [vmem:[#allocation5 + $0xd24] sm:$0xf]  ;;  %v6457_v16 = vor.u32 %v7194_v1, %v6454_v2  ;;  %v4732_v1 = vld [vmem:[#allocation5 + $0x1c8] sm:$0xf] }
 0x115   :  { %3610 = vmatpush.bf16.msrb.mxu0 %v6089_v51  ;;  %v6182_v17 = vld [vmem:[#allocation5 + $0xd30] sm:$0xf0]  ;;  %v7158_v21 = vld [vmem:[#allocation5 + $0xe24] sm:$0xf]  ;;  %v6057_v30 = vor.u32 %v7094_v11, %v6054_v12  ;;  %v6769_v51 = vld [vmem:[#allocation5 + $0x1f4] sm:$0xf0]  ;;  %v4605_v11 = vor.u32 %v6733_v0, %v4604_v63 }
 0x116   :  { %3623 = vmatpush.bf16.msrb.mxu1 %v6217_v54  ;;  %v6310_v24 = vld [vmem:[#allocation5 + $0xe30] sm:$0xf0]  ;;  %v7190_v28 = vld [vmem:[#allocation5 + $0xf24] sm:$0xf]  ;;  %v6185_v33 = vor.u32 %v7126_v14, %v6182_v17  ;;  %v4876_v54 = vld [vmem:[#allocation5 + $0x2e8] sm:$0xf]  ;;  %v4749_v60 = vor.u32 %v6769_v51, %v4748_v48 }
 0x117   :  { %3636 = vmatpush.bf16.msrb.mxu2 %v6345_v52  ;;  %v6438_v29 = vld [vmem:[#allocation5 + $0xf30] sm:$0xf0]  ;;  %v7090_v31 = vld [vmem:[#allocation5 + $0xc04] sm:$0xf]  ;;  %v6313_v35 = vor.u32 %v7158_v21, %v6310_v24  ;;  %v6801_v52 = vld [vmem:[#allocation5 + $0x2f4] sm:$0xf0] }
 0x118   :  { %3649 = vmatpush.bf16.msrb.mxu3 %v6473_v57  ;;  %v6038_v32 = vld [vmem:[#allocation5 + $0xc10] sm:$0xf0]  ;;  %v7122_v36 = vld [vmem:[#allocation5 + $0xd04] sm:$0xf]  ;;  %v6441_v42 = vor.u32 %v7190_v28, %v6438_v29  ;;  %v6833_v57 = vld [vmem:[#allocation5 + $0x3f4] sm:$0xf0]  ;;  %v4877_v61 = vor.u32 %v6801_v52, %v4876_v54 }
 0x119   :  { %3611 = vmatpush.bf16.msrb.mxu0 %v6073_v4  ;;  %v6166_v39 = vld [vmem:[#allocation5 + $0xd10] sm:$0xf0]  ;;  %v7154_v41 = vld [vmem:[#allocation5 + $0xe04] sm:$0xf]  ;;  %v6041_v50 = vor.u32 %v7090_v31, %v6038_v32  ;;  %v5005_v2 = vor.u32 %v6833_v57, %v5004_v56  ;;  %v6765_v3 = vld [vmem:[#allocation5 + $0x1d4] sm:$0xf0] }
 0x11a   :  { %3624 = vmatpush.bf16.msrb.mxu1 %v6201_v7  ;;  %v6294_v43 = vld [vmem:[#allocation5 + $0xe10] sm:$0xf0]  ;;  %v7186_v44 = vld [vmem:[#allocation5 + $0xf04] sm:$0xf]  ;;  %v6169_v53 = vor.u32 %v7122_v36, %v6166_v39  ;;  %v4860_v4 = vld [vmem:[#allocation5 + $0x2c8] sm:$0xf]  ;;  %v4733_v12 = vor.u32 %v6765_v3, %v4732_v1 }
 0x11b   :  { %3637 = vmatpush.bf16.msrb.mxu2 %v6329_v10  ;;  %v6422_v45 = vld [vmem:[#allocation5 + $0xf10] sm:$0xf0]  ;;  %v6297_v55 = vor.u32 %v7154_v41, %v6294_v43  ;;  %v4988_v7 = vld [vmem:[#allocation5 + $0x3c8] sm:$0xf]  ;;  %v6829_v10 = vld [vmem:[#allocation5 + $0x3d4] sm:$0xf0]  ;;  %v4861_v14 = vor.u32 %v6797_v5, %v4860_v4 }
 0x11c   :  { %3650 = vmatpush.bf16.msrb.mxu3 %v6457_v16  ;;  %v6425_v58 = vor.u32 %v7186_v44, %v6422_v45  ;;  %v4588_v16 = vld [vmem:[#allocation5 + $0xa8] sm:$0xf]  ;;  %v6729_v17 = vld [vmem:[#allocation5 + $0xb4] sm:$0xf0]  ;;  %v4989_v24 = vor.u32 %v6829_v10, %v4988_v7 }
 0x11d   :  { %3612 = vmatpush.bf16.msrb.mxu0 %v6057_v30  ;;  %v4716_v21 = vld [vmem:[#allocation5 + $0x1a8] sm:$0xf]  ;;  %v6761_v28 = vld [vmem:[#allocation5 + $0x1b4] sm:$0xf0] }
 0x11e   :  { %3625 = vmatpush.bf16.msrb.mxu1 %v6185_v33  ;;  %v4844_v29 = vld [vmem:[#allocation5 + $0x2a8] sm:$0xf]  ;;  %v6793_v30 = vld [vmem:[#allocation5 + $0x2b4] sm:$0xf0]  ;;  %v4589_v33 = vor.u32 %v6729_v17, %v4588_v16 }
 0x11f   :  { %3638 = vmatpush.bf16.msrb.mxu2 %v6313_v35  ;;  %v4972_v31 = vld [vmem:[#allocation5 + $0x3a8] sm:$0xf]  ;;  %v6825_v32 = vld [vmem:[#allocation5 + $0x3b4] sm:$0xf0]  ;;  %v4717_v35 = vor.u32 %v6761_v28, %v4716_v21  ;;  %v4845_v36 = vor.u32 %v6793_v30, %v4844_v29 }
 0x120   :  { %3651 = vmatpush.bf16.msrb.mxu3 %v6441_v42  ;;  %v4572_v39 = vld [vmem:[#allocation5 + $0x88] sm:$0xf]  ;;  %v6725_v41 = vld [vmem:[#allocation5 + $0x94] sm:$0xf0]  ;;  %v4973_v43 = vor.u32 %v6825_v32, %v4972_v31 }
 0x121   :  { %3613 = vmatpush.bf16.msrb.mxu0 %v6041_v50  ;;  %v4700_v42 = vld [vmem:[#allocation5 + $0x188] sm:$0xf]  ;;  %v6757_v44 = vld [vmem:[#allocation5 + $0x194] sm:$0xf0]  ;;  %v4573_v50 = vor.u32 %v6725_v41, %v4572_v39 }
 0x122   :  { %3626 = vmatpush.bf16.msrb.mxu1 %v6169_v53  ;;  %v4828_v45 = vld [vmem:[#allocation5 + $0x288] sm:$0xf]  ;;  %v6789_v62 = vld [vmem:[#allocation5 + $0x294] sm:$0xf0]  ;;  %v3420_v51 = vpop.f32.mrf.mxu1  ;;  %v4701_v54 = vor.u32 %v6757_v44, %v4700_v42 }
 0x123   :  { %3639 = vmatpush.bf16.msrb.mxu2 %v6297_v55  ;;  %v3407_v46 = vpop.f32.mrf.mxu0  ;;  %v4956_v47 = vld [vmem:[#allocation5 + $0x388] sm:$0xf]  ;;  %v6821_v48 = vld [vmem:[#allocation5 + $0x394] sm:$0xf0]  ;;  %v4829_v52 = vor.u32 %v6789_v62, %v4828_v45 }
 0x124   :  { %3652 = vmatpush.bf16.msrb.mxu3 %v6425_v58  ;;  %3614 = vmatmul.bf16.vlgmr.msrb.gmra.mxu0 %v7585_v13  ;;  %v3408_v49 = vadd.f32 %v3407_v46, %v7615_v6  ;;  %v4556_v53 = vld [vmem:[#allocation5 + $0x68] sm:$0xf]  ;;  %v6721_v55 = vld [vmem:[#allocation5 + $0x74] sm:$0xf0]  ;;  %v4957_v57 = vor.u32 %v6821_v48, %v4956_v47 }
 0x125   :  { %3658 = vmatpush.bf16.msra.mxu0 %v4621_v59  ;;  %3627 = vmatmul.bf16.vlgmr.msrb.gmra.mxu1 %v7589_v20  ;;  %v4684_v56 = vld [vmem:[#allocation5 + $0x168] sm:$0xf]  ;;  %v6753_v59 = vld [vmem:[#allocation5 + $0x174] sm:$0xf0]  ;;  %v4557_v1 = vor.u32 %v6721_v55, %v4556_v53 }
 0x126   :  { %3671 = vmatpush.bf16.msra.mxu1 %v4749_v60  ;;  %3640 = vmatmul.bf16.vlgmr.msrb.gmra.mxu2 %v7587_v19  ;;  %v3421_v58 = vadd.f32 %v3420_v51, %v3408_v49  ;;  %v4812_v60 = vld [vmem:[#allocation5 + $0x268] sm:$0xf]  ;;  %v6817_v0 = vld [vmem:[#allocation5 + $0x374] sm:$0xf0]  ;;  %v4685_v6 = vor.u32 %v6753_v59, %v4684_v56 }
 0x127   :  { %3684 = vmatpush.bf16.msra.mxu2 %v4877_v61  ;;  %3653 = vmatmul.bf16.vlgmr.msrb.gmra.mxu3 %v7591_v26  ;;  %v6785_v61 = vld [vmem:[#allocation5 + $0x274] sm:$0xf0]  ;;  %v4940_v63 = vld [vmem:[#allocation5 + $0x368] sm:$0xf] }
 0x128   :  { %3697 = vmatpush.bf16.msra.mxu3 %v5005_v2  ;;  %v4813_v2 = vor.u32 %v6785_v61, %v4812_v60  ;;  %v4540_v3 = vld [vmem:[#allocation5 + $0x48] sm:$0xf]  ;;  %v6717_v4 = vld [vmem:[#allocation5 + $0x54] sm:$0xf0]  ;;  %v4941_v7 = vor.u32 %v6817_v0, %v4940_v63 }
 0x129   :  { %3659 = vmatpush.bf16.msra.mxu0 %v4605_v11  ;;  %v4668_v5 = vld [vmem:[#allocation5 + $0x148] sm:$0xf]  ;;  %v6749_v11 = vld [vmem:[#allocation5 + $0x154] sm:$0xf0]  ;;  %v4541_v29 = vor.u32 %v6717_v4, %v4540_v3 }
 0x12a   :  { %3672 = vmatpush.bf16.msra.mxu1 %v4733_v12  ;;  %v4796_v12 = vld [vmem:[#allocation5 + $0x248] sm:$0xf]  ;;  %v3446_v17 = vpop.f32.mrf.mxu3  ;;  %v3422_v30 = vpop.f32.mrf.mxu1  ;;  %v4669_v32 = vor.u32 %v6749_v11, %v4668_v5  ;;  %v6745_v42 = vld [vmem:[#allocation5 + $0x134] sm:$0xf0] }
 0x12b   :  { %3685 = vmatpush.bf16.msra.mxu2 %v4861_v14  ;;  %v3433_v10 = vpop.f32.mrf.mxu2  ;;  %v6781_v14 = vld [vmem:[#allocation5 + $0x254] sm:$0xf0]  ;;  %v4924_v21 = vld [vmem:[#allocation5 + $0x348] sm:$0xf]  ;;  %v3409_v28 = vpop.f32.mrf.mxu0 }
 0x12c   :  { %3698 = vmatpush.bf16.msra.mxu3 %v4989_v24  ;;  %v3434_v16 = vadd.f32 %v3433_v10, %v3421_v58  ;;  %v6813_v24 = vld [vmem:[#allocation5 + $0x354] sm:$0xf0]  ;;  %v4652_v39 = vld [vmem:[#allocation5 + $0x128] sm:$0xf] }
 0x12d   :  { %3660 = vmatpush.bf16.msra.mxu0 %v4589_v33  ;;  %v4797_v33 = vor.u32 %v6781_v14, %v4796_v12  ;;  %v4925_v41 = vor.u32 %v6813_v24, %v4924_v21  ;;  %v6777_v44 = vld [vmem:[#allocation5 + $0x234] sm:$0xf0]  ;;  %v4908_v45 = vld [vmem:[#allocation5 + $0x328] sm:$0xf]  ;;  %v4653_v49 = vor.u32 %v6745_v42, %v4652_v39 }
 0x12e   :  { %3673 = vmatpush.bf16.msra.mxu1 %v4717_v35  ;;  %v7622_v31 = vadd.f32 %v3446_v17, %v3434_v16  ;;  %v4524_v35 = vld [vmem:[#allocation5 + $0x28] sm:$0xf]  ;;  %v6809_v62 = vld [vmem:[#allocation5 + $0x334] sm:$0xf0] }
 0x12f   :  { %3686 = vmatpush.bf16.msra.mxu2 %v4845_v36  ;;  %v6713_v36 = vld [vmem:[#allocation5 + $0x34] sm:$0xf0]  ;;  %v4508_v47 = vld [vmem:[#allocation5 + $0x8] sm:$0xf]  ;;  %v4909_v53 = vor.u32 %v6809_v62, %v4908_v45 }
 0x130   :  { %3699 = vmatpush.bf16.msra.mxu3 %v4973_v43  ;;  %v4780_v43 = vld [vmem:[#allocation5 + $0x228] sm:$0xf]  ;;  %v4525_v46 = vor.u32 %v6713_v36, %v4524_v35  ;;  %v6709_v48 = vld [vmem:[#allocation5 + $0x14] sm:$0xf0] }
 0x131   :  { %3661 = vmatpush.bf16.msra.mxu0 %v4573_v50  ;;  %v4781_v50 = vor.u32 %v6777_v44, %v4780_v43  ;;  %v4636_v51 = vld [vmem:[#allocation5 + $0x108] sm:$0xf]  ;;  %v6773_v55 = vld [vmem:[#allocation5 + $0x214] sm:$0xf0]  ;;  %v4509_v0 = vor.u32 %v6709_v48, %v4508_v47 }
 0x132   :  { %3674 = vmatpush.bf16.msra.mxu1 %v4701_v54  ;;  %v6741_v54 = vld [vmem:[#allocation5 + $0x114] sm:$0xf0]  ;;  %v4892_v56 = vld [vmem:[#allocation5 + $0x308] sm:$0xf]  ;;  %v3448_v63 = vpop.f32.mrf.mxu3 }
 0x133   :  { %3687 = vmatpush.bf16.msra.mxu2 %v4829_v52  ;;  %v4764_v52 = vld [vmem:[#allocation5 + $0x208] sm:$0xf]  ;;  %v3435_v58 = vpop.f32.mrf.mxu2  ;;  %v6865_v60 = vld [vmem:[#allocation5 + $0x4f4] sm:$0xf0]  ;;  %v4637_v3 = vor.u32 %v6741_v54, %v4636_v51 }
 0x134   :  { %3700 = vmatpush.bf16.msra.mxu3 %v4957_v57  ;;  %v6805_v57 = vld [vmem:[#allocation5 + $0x314] sm:$0xf0]  ;;  %v5132_v59 = vld [vmem:[#allocation5 + $0x4e8] sm:$0xf]  ;;  %v4765_v4 = vor.u32 %v6773_v55, %v4764_v52  ;;  %v7272_v55 = vld [vmem:[#allocation7] sm:$0xf] }
 0x135   :  { %3662 = vmatpush.bf16.msra.mxu0 %v4557_v1  ;;  %v5260_v61 = vld [vmem:[#allocation5 + $0x5e8] sm:$0xf]  ;;  %v6897_v1 = vld [vmem:[#allocation5 + $0x5f4] sm:$0xf0]  ;;  %v4893_v10 = vor.u32 %v6805_v57, %v4892_v56  ;;  %v5133_v11 = vor.u32 %v6865_v60, %v5132_v59  ;;  %v675_v56 = vperm.slane %v7272_v55, 1 }
 0x136   :  { %3675 = vmatpush.bf16.msra.mxu1 %v4685_v6  ;;  %v5388_v6 = vld [vmem:[#allocation5 + $0x6e8] sm:$0xf]  ;;  %v5261_v12 = vor.u32 %v6897_v1, %v5260_v61  ;;  %v6861_v17 = vld [vmem:[#allocation5 + $0x4d4] sm:$0xf0] }
 0x137   :  { %3688 = vmatpush.bf16.msra.mxu2 %v4813_v2  ;;  %v6929_v2 = vld [vmem:[#allocation5 + $0x6f4] sm:$0xf0]  ;;  %v5516_v5 = vld [vmem:[#allocation5 + $0x7e8] sm:$0xf] }
 0x138   :  { %3701 = vmatpush.bf16.msra.mxu3 %v4941_v7  ;;  %v6961_v7 = vld [vmem:[#allocation5 + $0x7f4] sm:$0xf0]  ;;  %v5389_v14 = vor.u32 %v6929_v2, %v5388_v6  ;;  %v5116_v16 = vld [vmem:[#allocation5 + $0x4c8] sm:$0xf] }
 0x139   :  { %3663 = vmatpush.bf16.msra.mxu0 %v4541_v29  ;;  %v5244_v21 = vld [vmem:[#allocation5 + $0x5c8] sm:$0xf]  ;;  %v5517_v24 = vor.u32 %v6961_v7, %v5516_v5  ;;  %v6893_v28 = vld [vmem:[#allocation5 + $0x5d4] sm:$0xf0]  ;;  %v5117_v35 = vor.u32 %v6861_v17, %v5116_v16 }
 0x13a   :  { %3676 = vmatpush.bf16.msra.mxu1 %v4669_v32  ;;  %v5372_v29 = vld [vmem:[#allocation5 + $0x6c8] sm:$0xf]  ;;  %v6925_v30 = vld [vmem:[#allocation5 + $0x6d4] sm:$0xf0]  ;;  %v5245_v36 = vor.u32 %v6893_v28, %v5244_v21 }
 0x13b   :  { %3689 = vmatpush.bf16.msra.mxu2 %v4797_v33  ;;  %v5500_v32 = vld [vmem:[#allocation5 + $0x7c8] sm:$0xf]  ;;  %v6957_v33 = vld [vmem:[#allocation5 + $0x7d4] sm:$0xf0]  ;;  %v5373_v39 = vor.u32 %v6925_v30, %v5372_v29 }
 0x13c   :  { %3702 = vmatpush.bf16.msra.mxu3 %v4925_v41  ;;  %v5100_v41 = vld [vmem:[#allocation5 + $0x4a8] sm:$0xf]  ;;  %v6857_v42 = vld [vmem:[#allocation5 + $0x4b4] sm:$0xf0]  ;;  %v5501_v44 = vor.u32 %v6957_v33, %v5500_v32 }
 0x13d   :  { %3664 = vmatpush.bf16.msra.mxu0 %v4525_v46  ;;  %v5228_v43 = vld [vmem:[#allocation5 + $0x5a8] sm:$0xf]  ;;  %v6889_v45 = vld [vmem:[#allocation5 + $0x5b4] sm:$0xf0] }
 0x13e   :  { %3677 = vmatpush.bf16.msra.mxu1 %v4653_v49  ;;  %v5356_v62 = vld [vmem:[#allocation5 + $0x6a8] sm:$0xf]  ;;  %v6921_v46 = vld [vmem:[#allocation5 + $0x6b4] sm:$0xf0]  ;;  %v5101_v49 = vor.u32 %v6857_v42, %v5100_v41  ;;  %v5229_v51 = vor.u32 %v6889_v45, %v5228_v43 }
 0x13f   :  { %3690 = vmatpush.bf16.msra.mxu2 %v4781_v50  ;;  %v5484_v47 = vld [vmem:[#allocation5 + $0x7a8] sm:$0xf]  ;;  %v6953_v48 = vld [vmem:[#allocation5 + $0x7b4] sm:$0xf0]  ;;  %v5357_v54 = vor.u32 %v6921_v46, %v5356_v62 }
 0x140   :  { %3703 = vmatpush.bf16.msra.mxu3 %v4909_v53  ;;  %v5084_v50 = vld [vmem:[#allocation5 + $0x488] sm:$0xf]  ;;  %v6853_v52 = vld [vmem:[#allocation5 + $0x494] sm:$0xf0]  ;;  %v5485_v57 = vor.u32 %v6953_v48, %v5484_v47 }
 0x141   :  { %3665 = vmatpush.bf16.msra.mxu0 %v4509_v0  ;;  %v5212_v53 = vld [vmem:[#allocation5 + $0x588] sm:$0xf]  ;;  %v6885_v58 = vld [vmem:[#allocation5 + $0x594] sm:$0xf0]  ;;  %v5085_v0 = vor.u32 %v6853_v52, %v5084_v50  ;;  %v3459_v1 = vpop.f32.mrf.mxu0 }
 0x142   :  { %3678 = vmatpush.bf16.msra.mxu1 %v4637_v3  ;;  %v5340_v59 = vld [vmem:[#allocation5 + $0x688] sm:$0xf]  ;;  %v6917_v60 = vld [vmem:[#allocation5 + $0x694] sm:$0xf0]  ;;  %v5213_v6 = vor.u32 %v6885_v58, %v5212_v53  ;;  %v3460_v7 = vadd.f32 %v3459_v1, %v675_v56 }
 0x143   :  { %3691 = vmatpush.bf16.msra.mxu2 %v4765_v4  ;;  %v5468_v61 = vld [vmem:[#allocation5 + $0x788] sm:$0xf]  ;;  %v6949_v63 = vld [vmem:[#allocation5 + $0x794] sm:$0xf0]  ;;  %v5341_v2 = vor.u32 %v6917_v60, %v5340_v59 }
 0x144   :  { %3704 = vmatpush.bf16.msra.mxu3 %v4893_v10  ;;  %3666 = vmatmul.bf16.vlgmr.msra.gmra.mxu0 %v7551_v9  ;;  %v5068_v3 = vld [vmem:[#allocation5 + $0x468] sm:$0xf]  ;;  %v6849_v4 = vld [vmem:[#allocation5 + $0x474] sm:$0xf0]  ;;  %v3472_v10 = vpop.f32.mrf.mxu1 }
 0x145   :  { %3710 = vmatpush.bf16.msrb.mxu0 %v5133_v11  ;;  %3679 = vmatmul.bf16.vlgmr.msra.gmra.mxu1 %v7558_v25  ;;  %v5196_v5 = vld [vmem:[#allocation5 + $0x568] sm:$0xf]  ;;  %v5469_v11 = vor.u32 %v6949_v63, %v5468_v61  ;;  %v6913_v16 = vld [vmem:[#allocation5 + $0x674] sm:$0xf0]  ;;  %v5069_v28 = vor.u32 %v6849_v4, %v5068_v3 }
 0x146   :  { %3723 = vmatpush.bf16.msrb.mxu1 %v5261_v12  ;;  %3692 = vmatmul.bf16.vlgmr.msra.gmra.mxu2 %v7549_v8  ;;  %v6881_v12 = vld [vmem:[#allocation5 + $0x574] sm:$0xf0]  ;;  %v5452_v17 = vld [vmem:[#allocation5 + $0x768] sm:$0xf] }
 0x147   :  { %3736 = vmatpush.bf16.msrb.mxu2 %v5389_v14  ;;  %3705 = vmatmul.bf16.vlgmr.msra.gmra.mxu3 %v7553_v15  ;;  %v5324_v14 = vld [vmem:[#allocation5 + $0x668] sm:$0xf]  ;;  %v6945_v21 = vld [vmem:[#allocation5 + $0x774] sm:$0xf0]  ;;  %v5197_v29 = vor.u32 %v6881_v12, %v5196_v5 }
 0x148   :  { %3749 = vmatpush.bf16.msrb.mxu3 %v5517_v24  ;;  %v3473_v24 = vadd.f32 %v3472_v10, %v3460_v7  ;;  %v5325_v30 = vor.u32 %v6913_v16, %v5324_v14  ;;  %v5052_v32 = vld [vmem:[#allocation5 + $0x448] sm:$0xf]  ;;  %v6845_v33 = vld [vmem:[#allocation5 + $0x454] sm:$0xf0] }
 0x149   :  { %3711 = vmatpush.bf16.msrb.mxu0 %v5117_v35  ;;  %v5180_v35 = vld [vmem:[#allocation5 + $0x548] sm:$0xf]  ;;  %v6877_v41 = vld [vmem:[#allocation5 + $0x554] sm:$0xf0]  ;;  %v5053_v47 = vor.u32 %v6845_v33, %v5052_v32 }
 0x14a   :  { %3724 = vmatpush.bf16.msrb.mxu1 %v5245_v36  ;;  %v3485_v36 = vpop.f32.mrf.mxu2  ;;  %v5308_v42 = vld [vmem:[#allocation5 + $0x648] sm:$0xf]  ;;  %v6909_v43 = vld [vmem:[#allocation5 + $0x654] sm:$0xf0]  ;;  %v3498_v45 = vpop.f32.mrf.mxu3  ;;  %v5181_v50 = vor.u32 %v6877_v41, %v5180_v35 }
 0x14b   :  { %3737 = vmatpush.bf16.msrb.mxu2 %v5373_v39  ;;  %v5453_v39 = vor.u32 %v6945_v21, %v5452_v17  ;;  %v5436_v62 = vld [vmem:[#allocation5 + $0x748] sm:$0xf]  ;;  %v6941_v46 = vld [vmem:[#allocation5 + $0x754] sm:$0xf0] }
 0x14c   :  { %3750 = vmatpush.bf16.msrb.mxu3 %v5501_v44  ;;  %v3486_v44 = vadd.f32 %v3485_v36, %v3473_v24  ;;  %v6841_v52 = vld [vmem:[#allocation5 + $0x434] sm:$0xf0]  ;;  %v5164_v53 = vld [vmem:[#allocation5 + $0x528] sm:$0xf]  ;;  %v3474_v55 = vpop.f32.mrf.mxu1  ;;  %v5437_v56 = vor.u32 %v6941_v46, %v5436_v62 }
 0x14d   :  { %3712 = vmatpush.bf16.msrb.mxu0 %v5101_v49  ;;  %v3461_v49 = vpop.f32.mrf.mxu0  ;;  %v5292_v58 = vld [vmem:[#allocation5 + $0x628] sm:$0xf]  ;;  %v6905_v59 = vld [vmem:[#allocation5 + $0x634] sm:$0xf0] }
 0x14e   :  { %3725 = vmatpush.bf16.msrb.mxu1 %v5229_v51  ;;  %v7628_v48 = vadd.f32 %v3498_v45, %v3486_v44  ;;  %v5309_v51 = vor.u32 %v6909_v43, %v5308_v42  ;;  %v5420_v60 = vld [vmem:[#allocation5 + $0x728] sm:$0xf]  ;;  %v6937_v61 = vld [vmem:[#allocation5 + $0x734] sm:$0xf0] }
 0x14f   :  { %3738 = vmatpush.bf16.msrb.mxu2 %v5357_v54  ;;  %v5036_v54 = vld [vmem:[#allocation5 + $0x428] sm:$0xf]  ;;  %v6837_v1 = vld [vmem:[#allocation5 + $0x414] sm:$0xf0]  ;;  %v5421_v10 = vor.u32 %v6937_v61, %v5420_v60 }
 0x150   :  { %3751 = vmatpush.bf16.msrb.mxu3 %v5485_v57  ;;  %v6873_v57 = vld [vmem:[#allocation5 + $0x534] sm:$0xf0]  ;;  %v5037_v63 = vor.u32 %v6841_v52, %v5036_v54  ;;  %v5148_v3 = vld [vmem:[#allocation5 + $0x508] sm:$0xf] }
 0x151   :  { %3713 = vmatpush.bf16.msrb.mxu0 %v5085_v0  ;;  %v5020_v0 = vld [vmem:[#allocation5 + $0x408] sm:$0xf]  ;;  %v6869_v4 = vld [vmem:[#allocation5 + $0x514] sm:$0xf0] }
 0x152   :  { %3726 = vmatpush.bf16.msrb.mxu1 %v5213_v6  ;;  %v5165_v6 = vor.u32 %v6873_v57, %v5164_v53  ;;  %v5276_v5 = vld [vmem:[#allocation5 + $0x608] sm:$0xf]  ;;  %v3487_v7 = vpop.f32.mrf.mxu2  ;;  %v6933_v14 = vld [vmem:[#allocation5 + $0x714] sm:$0xf0]  ;;  %v3500_v16 = vpop.f32.mrf.mxu3  ;;  %v5149_v33 = vor.u32 %v6869_v4, %v5148_v3 }
 0x153   :  { %3739 = vmatpush.bf16.msrb.mxu2 %v5341_v2  ;;  %v5293_v2 = vor.u32 %v6905_v59, %v5292_v58  ;;  %v5404_v12 = vld [vmem:[#allocation5 + $0x708] sm:$0xf]  ;;  %v6993_v21 = vld [vmem:[#allocation5 + $0x8f4] sm:$0xf0] }
 0x154   :  { %3752 = vmatpush.bf16.msrb.mxu3 %v5469_v11  ;;  %v6901_v11 = vld [vmem:[#allocation5 + $0x614] sm:$0xf0]  ;;  %v5644_v17 = vld [vmem:[#allocation5 + $0x8e8] sm:$0xf]  ;;  %v5405_v41 = vor.u32 %v6933_v14, %v5404_v12 }
 0x155   :  { %3714 = vmatpush.bf16.msrb.mxu0 %v5069_v28  ;;  %v5772_v24 = vld [vmem:[#allocation5 + $0x9e8] sm:$0xf]  ;;  %v5021_v28 = vor.u32 %v6837_v1, %v5020_v0  ;;  %v7057_v32 = vld [vmem:[#allocation5 + $0xaf4] sm:$0xf0]  ;;  %v5277_v35 = vor.u32 %v6901_v11, %v5276_v5  ;;  %v5645_v42 = vor.u32 %v6993_v21, %v5644_v17 }
 0x156   :  { %3727 = vmatpush.bf16.msrb.mxu1 %v5197_v29  ;;  %v7025_v29 = vld [vmem:[#allocation5 + $0x9f4] sm:$0xf0]  ;;  %v6028_v36 = vld [vmem:[#allocation5 + $0xbe8] sm:$0xf] }
 0x157   :  { %3740 = vmatpush.bf16.msrb.mxu2 %v5325_v30  ;;  %v5900_v30 = vld [vmem:[#allocation5 + $0xae8] sm:$0xf]  ;;  %v5773_v43 = vor.u32 %v7025_v29, %v5772_v24  ;;  %v6989_v62 = vld [vmem:[#allocation5 + $0x8d4] sm:$0xf0] }
 0x158   :  { %3753 = vmatpush.bf16.msrb.mxu3 %v5453_v39  ;;  %v7089_v39 = vld [vmem:[#allocation5 + $0xbf4] sm:$0xf0]  ;;  %v5901_v44 = vor.u32 %v7057_v32, %v5900_v30  ;;  %v5628_v45 = vld [vmem:[#allocation5 + $0x8c8] sm:$0xf] }
 0x159   :  { %3715 = vmatpush.bf16.msrb.mxu0 %v5053_v47  ;;  %v5756_v46 = vld [vmem:[#allocation5 + $0x9c8] sm:$0xf]  ;;  %v6029_v47 = vor.u32 %v7089_v39, %v6028_v36  ;;  %v7021_v49 = vld [vmem:[#allocation5 + $0x9d4] sm:$0xf0]  ;;  %v5629_v53 = vor.u32 %v6989_v62, %v5628_v45 }
 0x15a   :  { %3728 = vmatpush.bf16.msrb.mxu1 %v5181_v50  ;;  %v5884_v50 = vld [vmem:[#allocation5 + $0xac8] sm:$0xf]  ;;  %v7085_v52 = vld [vmem:[#allocation5 + $0xbd4] sm:$0xf0]  ;;  %v5757_v55 = vor.u32 %v7021_v49, %v5756_v46 }
 0x15b   :  { %3741 = vmatpush.bf16.msrb.mxu2 %v5309_v51  ;;  %v7053_v51 = vld [vmem:[#allocation5 + $0xad4] sm:$0xf0]  ;;  %v6012_v54 = vld [vmem:[#allocation5 + $0xbc8] sm:$0xf] }
 0x15c   :  { %3754 = vmatpush.bf16.msrb.mxu3 %v5437_v56  ;;  %v5885_v56 = vor.u32 %v7053_v51, %v5884_v50  ;;  %v5612_v57 = vld [vmem:[#allocation5 + $0x8a8] sm:$0xf]  ;;  %v6985_v58 = vld [vmem:[#allocation5 + $0x8b4] sm:$0xf0]  ;;  %v6013_v60 = vor.u32 %v7085_v52, %v6012_v54 }
 0x15d   :  { %3716 = vmatpush.bf16.msrb.mxu0 %v5037_v63  ;;  %v5740_v59 = vld [vmem:[#allocation5 + $0x9a8] sm:$0xf]  ;;  %v7017_v61 = vld [vmem:[#allocation5 + $0x9b4] sm:$0xf0] }
 0x15e   :  { %3729 = vmatpush.bf16.msrb.mxu1 %v5165_v6  ;;  %v5868_v63 = vld [vmem:[#allocation5 + $0xaa8] sm:$0xf]  ;;  %v7049_v0 = vld [vmem:[#allocation5 + $0xab4] sm:$0xf0]  ;;  %v5741_v3 = vor.u32 %v7017_v61, %v5740_v59 }
 0x15f   :  { %3742 = vmatpush.bf16.msrb.mxu2 %v5293_v2  ;;  %v5996_v1 = vld [vmem:[#allocation5 + $0xba8] sm:$0xf]  ;;  %v7081_v6 = vld [vmem:[#allocation5 + $0xbb4] sm:$0xf0]  ;;  %v5613_v2 = vor.u32 %v6985_v58, %v5612_v57  ;;  %v5869_v4 = vor.u32 %v7049_v0, %v5868_v63 }
 0x160   :  { %3755 = vmatpush.bf16.msrb.mxu3 %v5421_v10  ;;  %v5596_v5 = vld [vmem:[#allocation5 + $0x888] sm:$0xf]  ;;  %v6981_v7 = vld [vmem:[#allocation5 + $0x894] sm:$0xf0]  ;;  %v5997_v11 = vor.u32 %v7081_v6, %v5996_v1 }
 0x161   :  { %3717 = vmatpush.bf16.msrb.mxu0 %v5021_v28  ;;  %v5724_v10 = vld [vmem:[#allocation5 + $0x988] sm:$0xf]  ;;  %v7013_v12 = vld [vmem:[#allocation5 + $0x994] sm:$0xf0]  ;;  %v5597_v24 = vor.u32 %v6981_v7, %v5596_v5  ;;  %v3511_v28 = vpop.f32.mrf.mxu0 }
 0x162   :  { %3730 = vmatpush.bf16.msrb.mxu1 %v5149_v33  ;;  %v5852_v14 = vld [vmem:[#allocation5 + $0xa88] sm:$0xf]  ;;  %v7045_v16 = vld [vmem:[#allocation5 + $0xa94] sm:$0xf0]  ;;  %v5725_v29 = vor.u32 %v7013_v12, %v5724_v10  ;;  %v3512_v36 = vadd.f32 %v3511_v28, %v7628_v48  ;;  %v3524_v39 = vpop.f32.mrf.mxu1 }
 0x163   :  { %3743 = vmatpush.bf16.msrb.mxu2 %v5277_v35  ;;  %v5980_v17 = vld [vmem:[#allocation5 + $0xb88] sm:$0xf]  ;;  %v7077_v21 = vld [vmem:[#allocation5 + $0xb94] sm:$0xf0]  ;;  %v5853_v30 = vor.u32 %v7045_v16, %v5852_v14 }
 0x164   :  { %3756 = vmatpush.bf16.msrb.mxu3 %v5405_v41  ;;  %3718 = vmatmul.bf16.vlgmr.msrb.gmra.mxu0 %v7563_v37  ;;  %v5580_v32 = vld [vmem:[#allocation5 + $0x868] sm:$0xf]  ;;  %v6977_v33 = vld [vmem:[#allocation5 + $0x874] sm:$0xf0]  ;;  %v5981_v41 = vor.u32 %v7077_v21, %v5980_v17  ;;  %v3525_v46 = vadd.f32 %v3524_v39, %v3512_v36 }
 0x165   :  { %3762 = vmatpush.bf16.msra.mxu0 %v5645_v42  ;;  %3731 = vmatmul.bf16.vlgmr.msrb.gmra.mxu1 %v7567_v40  ;;  %v5708_v35 = vld [vmem:[#allocation5 + $0x968] sm:$0xf]  ;;  %v7009_v42 = vld [vmem:[#allocation5 + $0x974] sm:$0xf0] }
 0x166   :  { %3775 = vmatpush.bf16.msra.mxu1 %v5773_v43  ;;  %3744 = vmatmul.bf16.vlgmr.msrb.gmra.mxu2 %v7561_v34  ;;  %v5836_v43 = vld [vmem:[#allocation5 + $0xa68] sm:$0xf]  ;;  %v7073_v62 = vld [vmem:[#allocation5 + $0xb74] sm:$0xf0]  ;;  %v5709_v49 = vor.u32 %v7009_v42, %v5708_v35 }
 0x167   :  { %3788 = vmatpush.bf16.msra.mxu2 %v5901_v44  ;;  %3757 = vmatmul.bf16.vlgmr.msrb.gmra.mxu3 %v7565_v38  ;;  %v7041_v44 = vld [vmem:[#allocation5 + $0xa74] sm:$0xf0]  ;;  %v5964_v45 = vld [vmem:[#allocation5 + $0xb68] sm:$0xf] }
 0x168   :  { %3801 = vmatpush.bf16.msra.mxu3 %v6029_v47  ;;  %v5581_v47 = vor.u32 %v6977_v33, %v5580_v32  ;;  %v5837_v50 = vor.u32 %v7041_v44, %v5836_v43  ;;  %v5564_v51 = vld [vmem:[#allocation5 + $0x848] sm:$0xf]  ;;  %v6973_v54 = vld [vmem:[#allocation5 + $0x854] sm:$0xf0]  ;;  %v5965_v48 = vor.u32 %v7073_v62, %v5964_v45 }
 0x169   :  { %3763 = vmatpush.bf16.msra.mxu0 %v5629_v53  ;;  %v5692_v52 = vld [vmem:[#allocation5 + $0x948] sm:$0xf]  ;;  %v3537_v53 = vpop.f32.mrf.mxu2  ;;  %v7037_v57 = vld [vmem:[#allocation5 + $0xa54] sm:$0xf0]  ;;  %v5565_v63 = vor.u32 %v6973_v54, %v5564_v51  ;;  %v3513_v1 = vpop.f32.mrf.mxu0 }
 0x16a   :  { %3776 = vmatpush.bf16.msra.mxu1 %v5757_v55  ;;  %v7005_v55 = vld [vmem:[#allocation5 + $0x954] sm:$0xf0]  ;;  %v3538_v58 = vadd.f32 %v3537_v53, %v3525_v46  ;;  %v3550_v59 = vpop.f32.mrf.mxu3  ;;  %v5676_v5 = vld [vmem:[#allocation5 + $0x928] sm:$0xf]  ;;  %v3526_v7 = vpop.f32.mrf.mxu1 }
 0x16b   :  { %3789 = vmatpush.bf16.msra.mxu2 %v5885_v56  ;;  %v5820_v56 = vld [vmem:[#allocation5 + $0xa48] sm:$0xf]  ;;  %v7069_v61 = vld [vmem:[#allocation5 + $0xb54] sm:$0xf0]  ;;  %v5693_v6 = vor.u32 %v7005_v55, %v5692_v52 }
 0x16c   :  { %3802 = vmatpush.bf16.msra.mxu3 %v6013_v60  ;;  %v5948_v60 = vld [vmem:[#allocation5 + $0xb48] sm:$0xf]  ;;  %v7635_v0 = vadd.f32 %v3550_v59, %v3538_v58  ;;  %v7033_v14 = vld [vmem:[#allocation5 + $0xa34] sm:$0xf0] }
 0x16d   :  { %3764 = vmatpush.bf16.msra.mxu0 %v5613_v2  ;;  %v5821_v2 = vor.u32 %v7037_v57, %v5820_v56  ;;  %v5949_v10 = vor.u32 %v7069_v61, %v5948_v60  ;;  %v5804_v12 = vld [vmem:[#allocation5 + $0xa28] sm:$0xf]  ;;  %v7065_v17 = vld [vmem:[#allocation5 + $0xb34] sm:$0xf0] }
 0x16e   :  { %3777 = vmatpush.bf16.msra.mxu1 %v5741_v3  ;;  %v5548_v3 = vld [vmem:[#allocation5 + $0x828] sm:$0xf]  ;;  %v6965_v28 = vld [vmem:[#allocation5 + $0x814] sm:$0xf0] }
 0x16f   :  { %3790 = vmatpush.bf16.msra.mxu2 %v5869_v4  ;;  %v6969_v4 = vld [vmem:[#allocation5 + $0x834] sm:$0xf0]  ;;  %v5932_v16 = vld [vmem:[#allocation5 + $0xb28] sm:$0xf] }
 0x170   :  { %3803 = vmatpush.bf16.msra.mxu3 %v5997_v11  ;;  %v7001_v11 = vld [vmem:[#allocation5 + $0x934] sm:$0xf0]  ;;  %v5549_v21 = vor.u32 %v6969_v4, %v5548_v3  ;;  %v5660_v32 = vld [vmem:[#allocation5 + $0x908] sm:$0xf]  ;;  %v5933_v39 = vor.u32 %v7065_v17, %v5932_v16 }
 0x171   :  { %3765 = vmatpush.bf16.msra.mxu0 %v5597_v24  ;;  %v5532_v24 = vld [vmem:[#allocation5 + $0x808] sm:$0xf]  ;;  %v6997_v33 = vld [vmem:[#allocation5 + $0x914] sm:$0xf0]  ;;  %v3539_v36 = vpop.f32.mrf.mxu2 }
 0x172   :  { %3778 = vmatpush.bf16.msra.mxu1 %v5725_v29  ;;  %v5677_v29 = vor.u32 %v7001_v11, %v5676_v5  ;;  %v5788_v35 = vld [vmem:[#allocation5 + $0xa08] sm:$0xf]  ;;  %v7061_v43 = vld [vmem:[#allocation5 + $0xb14] sm:$0xf0]  ;;  %v3552_v44 = vpop.f32.mrf.mxu3  ;;  %v5661_v54 = vor.u32 %v6997_v33, %v5660_v32 }
 0x173   :  { %3791 = vmatpush.bf16.msra.mxu2 %v5853_v30  ;;  %v5805_v30 = vor.u32 %v7033_v14, %v5804_v12  ;;  %v5916_v42 = vld [vmem:[#allocation5 + $0xb08] sm:$0xf]  ;;  %v7121_v62 = vld [vmem:[#allocation5 + $0xcf4] sm:$0xf0] }
 0x174   :  { %3804 = vmatpush.bf16.msra.mxu3 %v5981_v41  ;;  %v7029_v41 = vld [vmem:[#allocation5 + $0xa14] sm:$0xf0]  ;;  %v6156_v45 = vld [vmem:[#allocation5 + $0xce8] sm:$0xf]  ;;  %v5917_v55 = vor.u32 %v7061_v43, %v5916_v42 }
 0x175   :  { %3766 = vmatpush.bf16.msra.mxu0 %v5581_v47  ;;  %v6284_v46 = vld [vmem:[#allocation5 + $0xde8] sm:$0xf]  ;;  %v5533_v47 = vor.u32 %v6965_v28, %v5532_v24  ;;  %v7185_v51 = vld [vmem:[#allocation5 + $0xef4] sm:$0xf0]  ;;  %v5789_v52 = vor.u32 %v7029_v41, %v5788_v35  ;;  %v6157_v56 = vor.u32 %v7121_v62, %v6156_v45 }
 0x176   :  { %3779 = vmatpush.bf16.msra.mxu1 %v5709_v49  ;;  %v7153_v49 = vld [vmem:[#allocation5 + $0xdf4] sm:$0xf0]  ;;  %v6540_v53 = vld [vmem:[#allocation5 + $0xfe8] sm:$0xf] }
 0x177   :  { %3792 = vmatpush.bf16.msra.mxu2 %v5837_v50  ;;  %v6412_v50 = vld [vmem:[#allocation5 + $0xee8] sm:$0xf]  ;;  %v6285_v57 = vor.u32 %v7153_v49, %v6284_v46  ;;  %v7117_v60 = vld [vmem:[#allocation5 + $0xcd4] sm:$0xf0] }
 0x178   :  { %3805 = vmatpush.bf16.msra.mxu3 %v5965_v48  ;;  %v7217_v48 = vld [vmem:[#allocation5 + $0xff4] sm:$0xf0]  ;;  %v6413_v58 = vor.u32 %v7185_v51, %v6412_v50  ;;  %v6140_v59 = vld [vmem:[#allocation5 + $0xcc8] sm:$0xf] }
 0x179   :  { %3767 = vmatpush.bf16.msra.mxu0 %v5565_v63  ;;  %v6268_v61 = vld [vmem:[#allocation5 + $0xdc8] sm:$0xf]  ;;  %v6541_v63 = vor.u32 %v7217_v48, %v6540_v53  ;;  %v7149_v1 = vld [vmem:[#allocation5 + $0xdd4] sm:$0xf0]  ;;  %v6141_v5 = vor.u32 %v7117_v60, %v6140_v59 }
 0x17a   :  { %3780 = vmatpush.bf16.msra.mxu1 %v5693_v6  ;;  %v6396_v6 = vld [vmem:[#allocation5 + $0xec8] sm:$0xf]  ;;  %v7213_v4 = vld [vmem:[#allocation5 + $0xfd4] sm:$0xf0]  ;;  %v6269_v7 = vor.u32 %v7149_v1, %v6268_v61 }
 0x17b   :  { %3793 = vmatpush.bf16.msra.mxu2 %v5821_v2  ;;  %v7181_v2 = vld [vmem:[#allocation5 + $0xed4] sm:$0xf0]  ;;  %v6524_v3 = vld [vmem:[#allocation5 + $0xfc8] sm:$0xf] }
 0x17c   :  { %3806 = vmatpush.bf16.msra.mxu3 %v5949_v10  ;;  %v6397_v10 = vor.u32 %v7181_v2, %v6396_v6  ;;  %v6124_v11 = vld [vmem:[#allocation5 + $0xca8] sm:$0xf]  ;;  %v7113_v12 = vld [vmem:[#allocation5 + $0xcb4] sm:$0xf0]  ;;  %v6525_v16 = vor.u32 %v7213_v4, %v6524_v3 }
 0x17d   :  { %3768 = vmatpush.bf16.msra.mxu0 %v5549_v21  ;;  %v6252_v14 = vld [vmem:[#allocation5 + $0xda8] sm:$0xf]  ;;  %v7145_v17 = vld [vmem:[#allocation5 + $0xdb4] sm:$0xf0] }
 0x17e   :  { %3781 = vmatpush.bf16.msra.mxu1 %v5677_v29  ;;  %v6380_v21 = vld [vmem:[#allocation5 + $0xea8] sm:$0xf]  ;;  %v7177_v24 = vld [vmem:[#allocation5 + $0xeb4] sm:$0xf0]  ;;  %v6253_v32 = vor.u32 %v7145_v17, %v6252_v14 }
 0x17f   :  { %3794 = vmatpush.bf16.msra.mxu2 %v5805_v30  ;;  %v6508_v28 = vld [vmem:[#allocation5 + $0xfa8] sm:$0xf]  ;;  %v7209_v29 = vld [vmem:[#allocation5 + $0xfb4] sm:$0xf0]  ;;  %v6125_v30 = vor.u32 %v7113_v12, %v6124_v11  ;;  %v6381_v33 = vor.u32 %v7177_v24, %v6380_v21 }
 0x180   :  { %3807 = vmatpush.bf16.msra.mxu3 %v5933_v39  ;;  %v6108_v35 = vld [vmem:[#allocation5 + $0xc88] sm:$0xf]  ;;  %v7109_v36 = vld [vmem:[#allocation5 + $0xc94] sm:$0xf0]  ;;  %v6509_v41 = vor.u32 %v7209_v29, %v6508_v28 }
 0x181   :  { %3769 = vmatpush.bf16.msra.mxu0 %v5533_v47  ;;  %v6236_v39 = vld [vmem:[#allocation5 + $0xd88] sm:$0xf]  ;;  %v7141_v42 = vld [vmem:[#allocation5 + $0xd94] sm:$0xf0]  ;;  %v3563_v45 = vpop.f32.mrf.mxu0  ;;  %v6109_v49 = vor.u32 %v7109_v36, %v6108_v35 }
 0x182   :  { %3782 = vmatpush.bf16.msra.mxu1 %v5661_v54  ;;  %v6364_v43 = vld [vmem:[#allocation5 + $0xe88] sm:$0xf]  ;;  %v7173_v44 = vld [vmem:[#allocation5 + $0xe94] sm:$0xf0]  ;;  %v3564_v47 = vadd.f32 %v3563_v45, %v7635_v0  ;;  %v3576_v50 = vpop.f32.mrf.mxu1  ;;  %v6237_v51 = vor.u32 %v7141_v42, %v6236_v39 }
 0x183   :  { %3795 = vmatpush.bf16.msra.mxu2 %v5789_v52  ;;  %v6492_v62 = vld [vmem:[#allocation5 + $0xf88] sm:$0xf]  ;;  %v7205_v46 = vld [vmem:[#allocation5 + $0xf94] sm:$0xf0]  ;;  %v6365_v54 = vor.u32 %v7173_v44, %v6364_v43 }
 0x184   :  { %3808 = vmatpush.bf16.msra.mxu3 %v5917_v55  ;;  %3770 = vmatmul.bf16.vlgmr.msra.gmra.mxu0 %v7573_v18  ;;  %v6092_v52 = vld [vmem:[#allocation5 + $0xc68] sm:$0xf]  ;;  %v7105_v53 = vld [vmem:[#allocation5 + $0xc74] sm:$0xf0]  ;;  %v6493_v55 = vor.u32 %v7205_v46, %v6492_v62 }
 0x185   :  { %3814 = vmatpush.bf16.msrb.mxu0 %v6157_v56  ;;  %3783 = vmatmul.bf16.vlgmr.msra.gmra.mxu1 %v7577_v23  ;;  %v6220_v48 = vld [vmem:[#allocation5 + $0xd68] sm:$0xf]  ;;  %v3577_v56 = vadd.f32 %v3576_v50, %v3564_v47  ;;  %v7169_v59 = vld [vmem:[#allocation5 + $0xe74] sm:$0xf0] }
 0x186   :  { %3827 = vmatpush.bf16.msrb.mxu1 %v6285_v57  ;;  %3796 = vmatmul.bf16.vlgmr.msra.gmra.mxu2 %v7575_v22  ;;  %v7137_v57 = vld [vmem:[#allocation5 + $0xd74] sm:$0xf0]  ;;  %v6476_v60 = vld [vmem:[#allocation5 + $0xf68] sm:$0xf] }
 0x187   :  { %3840 = vmatpush.bf16.msrb.mxu2 %v6413_v58  ;;  %3809 = vmatmul.bf16.vlgmr.msra.gmra.mxu3 %v7579_v27  ;;  %v6348_v58 = vld [vmem:[#allocation5 + $0xe68] sm:$0xf]  ;;  %v7201_v61 = vld [vmem:[#allocation5 + $0xf74] sm:$0xf0]  ;;  %v6221_v0 = vor.u32 %v7137_v57, %v6220_v48 }
 0x188   :  { %3853 = vmatpush.bf16.msrb.mxu3 %v6541_v63  ;;  %v6093_v63 = vor.u32 %v7105_v53, %v6092_v52  ;;  %v6349_v1 = vor.u32 %v7169_v59, %v6348_v58  ;;  %v6076_v6 = vld [vmem:[#allocation5 + $0xc48] sm:$0xf]  ;;  %v7101_v2 = vld [vmem:[#allocation5 + $0xc54] sm:$0xf0]  ;;  %v6477_v4 = vor.u32 %v7201_v61, %v6476_v60  ;;  %v6735_v58 = vld [vmem:[#allocation5 + $0xec] sm:$0xf] }
 0x189   :  { %3815 = vmatpush.bf16.msrb.mxu0 %v6141_v5  ;;  %v6204_v3 = vld [vmem:[#allocation5 + $0xd48] sm:$0xf]  ;;  %v3589_v5 = vpop.f32.mrf.mxu2  ;;  %v7165_v11 = vld [vmem:[#allocation5 + $0xe54] sm:$0xf0]  ;;  %v3565_v21 = vpop.f32.mrf.mxu0  ;;  %v6077_v24 = vor.u32 %v7101_v2, %v6076_v6  ;;  %v4622_v59 = vld [vmem:[#allocation5 + $0xf8] sm:$0xf0] }
 0x18a   :  { %3828 = vmatpush.bf16.msrb.mxu1 %v6269_v7  ;;  %v7133_v7 = vld [vmem:[#allocation5 + $0xd54] sm:$0xf0]  ;;  %v3590_v12 = vadd.f32 %v3589_v5, %v3577_v56  ;;  %v3602_v14 = vpop.f32.mrf.mxu3  ;;  %v3578_v28 = vpop.f32.mrf.mxu1  ;;  %v6188_v36 = vld [vmem:[#allocation5 + $0xd28] sm:$0xf]  ;;  %v6767_v60 = vld [vmem:[#allocation5 + $0x1ec] sm:$0xf] }
 0x18b   :  { %3841 = vmatpush.bf16.msrb.mxu2 %v6397_v10  ;;  %v6332_v10 = vld [vmem:[#allocation5 + $0xe48] sm:$0xf]  ;;  %v7197_v17 = vld [vmem:[#allocation5 + $0xf54] sm:$0xf0]  ;;  %v4878_v6 = vld [vmem:[#allocation5 + $0x2f8] sm:$0xf0] }
 0x18c   :  { %3854 = vmatpush.bf16.msrb.mxu3 %v6525_v16  ;;  %v6460_v16 = vld [vmem:[#allocation5 + $0xf48] sm:$0xf]  ;;  %v7642_v29 = vadd.f32 %v3602_v14, %v3590_v12  ;;  %v7097_v35 = vld [vmem:[#allocation5 + $0xc34] sm:$0xf0]  ;;  %v5006_v5 = vld [vmem:[#allocation5 + $0x3f8] sm:$0xf0] }
 0x18d   :  { %3816 = vmatpush.bf16.msrb.mxu0 %v6125_v30  ;;  %v6205_v30 = vor.u32 %v7133_v7, %v6204_v3  ;;  %v6461_v39 = vor.u32 %v7197_v17, %v6460_v16  ;;  %v6316_v42 = vld [vmem:[#allocation5 + $0xe28] sm:$0xf]  ;;  %v7161_v43 = vld [vmem:[#allocation5 + $0xe34] sm:$0xf0]  ;;  %v6731_v14 = vld [vmem:[#allocation5 + $0xcc] sm:$0xf] }
 0x18e   :  { %3829 = vmatpush.bf16.msrb.mxu1 %v6253_v32  ;;  %v6333_v32 = vor.u32 %v7165_v11, %v6332_v10  ;;  %v6444_v44 = vld [vmem:[#allocation5 + $0xf28] sm:$0xf]  ;;  %v7193_v45 = vld [vmem:[#allocation5 + $0xf34] sm:$0xf0]  ;;  %v6317_v50 = vor.u32 %v7161_v43, %v6316_v42  ;;  %v4625_v10 = vor.u32 %v6735_v58, %v4622_v59  ;;  %v4606_v16 = vld [vmem:[#allocation5 + $0xd8] sm:$0xf0] }
 0x18f   :  { %3842 = vmatpush.bf16.msrb.mxu2 %v6381_v33  ;;  %v6060_v33 = vld [vmem:[#allocation5 + $0xc28] sm:$0xf]  ;;  %v7093_v47 = vld [vmem:[#allocation5 + $0xc14] sm:$0xf0]  ;;  %v6445_v53 = vor.u32 %v7193_v45, %v6444_v44  ;;  %v6763_v17 = vld [vmem:[#allocation5 + $0x1cc] sm:$0xf] }
 0x190   :  { %3855 = vmatpush.bf16.msrb.mxu3 %v6509_v41  ;;  %v7129_v41 = vld [vmem:[#allocation5 + $0xd34] sm:$0xf0]  ;;  %v6061_v62 = vor.u32 %v7097_v35, %v6060_v33  ;;  %v6044_v46 = vld [vmem:[#allocation5 + $0xc08] sm:$0xf]  ;;  %v6795_v28 = vld [vmem:[#allocation5 + $0x2cc] sm:$0xf]  ;;  %v4609_v35 = vor.u32 %v6731_v14, %v4606_v16 }
 0x191   :  { %3817 = vmatpush.bf16.msrb.mxu0 %v6109_v49  ;;  %v6189_v49 = vor.u32 %v7129_v41, %v6188_v36  ;;  %v6300_v52 = vld [vmem:[#allocation5 + $0xe08] sm:$0xf]  ;;  %v7157_v48 = vld [vmem:[#allocation5 + $0xe14] sm:$0xf0]  ;;  %v3591_v57 = vpop.f32.mrf.mxu2  ;;  %v4990_v33 = vld [vmem:[#allocation5 + $0x3d8] sm:$0xf0] }
 0x192   :  { %3830 = vmatpush.bf16.msrb.mxu1 %v6237_v51  ;;  %v6172_v51 = vld [vmem:[#allocation5 + $0xd08] sm:$0xf]  ;;  %v7189_v56 = vld [vmem:[#allocation5 + $0xf14] sm:$0xf0]  ;;  %v3604_v61 = vpop.f32.mrf.mxu3  ;;  %v6301_v3 = vor.u32 %v7157_v48, %v6300_v52  ;;  %v6727_v41 = vld [vmem:[#allocation5 + $0xac] sm:$0xf] }
 0x193   :  { %3843 = vmatpush.bf16.msrb.mxu2 %v6365_v54  ;;  %v7125_v54 = vld [vmem:[#allocation5 + $0xd14] sm:$0xf0]  ;;  %v4590_v42 = vld [vmem:[#allocation5 + $0xb8] sm:$0xf0]  ;;  %v6759_v43 = vld [vmem:[#allocation5 + $0x1ac] sm:$0xf] }
 0x194   :  { %3856 = vmatpush.bf16.msrb.mxu3 %v6493_v55  ;;  %v6428_v55 = vld [vmem:[#allocation5 + $0xf08] sm:$0xf]  ;;  %v6173_v2 = vor.u32 %v7125_v54, %v6172_v51  ;;  %v4718_v45 = vld [vmem:[#allocation5 + $0x1b8] sm:$0xf0]  ;;  %v6723_v52 = vld [vmem:[#allocation5 + $0x8c] sm:$0xf] }
 0x195   :  { %3818 = vmatpush.bf16.msrb.mxu0 %v6093_v63  ;;  %v6045_v63 = vor.u32 %v7093_v47, %v6044_v46  ;;  %v6429_v7 = vor.u32 %v7189_v56, %v6428_v55  ;;  %v4846_v46 = vld [vmem:[#allocation5 + $0x2b8] sm:$0xf0]  ;;  %v6823_v47 = vld [vmem:[#allocation5 + $0x3ac] sm:$0xf]  ;;  %v4721_v51 = vor.u32 %v6759_v43, %v4718_v45 }
 0x196   :  { %3831 = vmatpush.bf16.msrb.mxu1 %v6221_v0  ;;  %v4750_v0 = vld [vmem:[#allocation5 + $0x1f8] sm:$0xf0]  ;;  %v6755_v48 = vld [vmem:[#allocation5 + $0x18c] sm:$0xf] }
 0x197   :  { %3844 = vmatpush.bf16.msrb.mxu2 %v6349_v1  ;;  %v6799_v1 = vld [vmem:[#allocation5 + $0x2ec] sm:$0xf]  ;;  %v4753_v11 = vor.u32 %v6767_v60, %v4750_v0  ;;  %v4702_v56 = vld [vmem:[#allocation5 + $0x198] sm:$0xf0] }
 0x198   :  { %3857 = vmatpush.bf16.msrb.mxu3 %v6477_v4  ;;  %v6831_v4 = vld [vmem:[#allocation5 + $0x3ec] sm:$0xf]  ;;  %v4881_v12 = vor.u32 %v6799_v1, %v4878_v6  ;;  %v4830_v58 = vld [vmem:[#allocation5 + $0x298] sm:$0xf0]  ;;  %v4705_v6 = vor.u32 %v6755_v48, %v4702_v56 }
 0x199   :  { %3819 = vmatpush.bf16.msrb.mxu0 %v6077_v24  ;;  %v5009_v21 = vor.u32 %v6831_v4, %v5006_v5  ;;  %v4734_v24 = vld [vmem:[#allocation5 + $0x1d8] sm:$0xf0]  ;;  %v6787_v57 = vld [vmem:[#allocation5 + $0x28c] sm:$0xf] }
 0x19a   :  { %3832 = vmatpush.bf16.msrb.mxu1 %v6205_v30  ;;  %v4862_v30 = vld [vmem:[#allocation5 + $0x2d8] sm:$0xf0]  ;;  %v4737_v36 = vor.u32 %v6763_v17, %v4734_v24  ;;  %v6819_v60 = vld [vmem:[#allocation5 + $0x38c] sm:$0xf] }
 0x19b   :  { %3845 = vmatpush.bf16.msrb.mxu2 %v6333_v32  ;;  %v6827_v32 = vld [vmem:[#allocation5 + $0x3cc] sm:$0xf]  ;;  %v4958_v61 = vld [vmem:[#allocation5 + $0x398] sm:$0xf0] }
 0x19c   :  { %3858 = vmatpush.bf16.msrb.mxu3 %v6461_v39  ;;  %v4865_v39 = vor.u32 %v6795_v28, %v4862_v30  ;;  %v4993_v44 = vor.u32 %v6827_v32, %v4990_v33  ;;  %v4558_v4 = vld [vmem:[#allocation5 + $0x78] sm:$0xf0]  ;;  %v6751_v5 = vld [vmem:[#allocation5 + $0x16c] sm:$0xf] }
 0x19d   :  { %3820 = vmatpush.bf16.msrb.mxu0 %v6061_v62  ;;  %v6791_v62 = vld [vmem:[#allocation5 + $0x2ac] sm:$0xf]  ;;  %v4814_v14 = vld [vmem:[#allocation5 + $0x278] sm:$0xf0] }
 0x19e   :  { %3833 = vmatpush.bf16.msrb.mxu1 %v6189_v49  ;;  %v4974_v49 = vld [vmem:[#allocation5 + $0x3b8] sm:$0xf0]  ;;  %v4849_v54 = vor.u32 %v6791_v62, %v4846_v46  ;;  %v6815_v16 = vld [vmem:[#allocation5 + $0x36c] sm:$0xf] }
 0x19f   :  { %3846 = vmatpush.bf16.msrb.mxu2 %v6317_v50  ;;  %v4593_v50 = vor.u32 %v6727_v41, %v4590_v42  ;;  %v4977_v55 = vor.u32 %v6823_v47, %v4974_v49  ;;  %v4942_v17 = vld [vmem:[#allocation5 + $0x378] sm:$0xf0]  ;;  %v6715_v28 = vld [vmem:[#allocation5 + $0x4c] sm:$0xf] }
 0x1a0   :  { %3859 = vmatpush.bf16.msrb.mxu3 %v6445_v53  ;;  %v4574_v53 = vld [vmem:[#allocation5 + $0x98] sm:$0xf0]  ;;  %v6747_v32 = vld [vmem:[#allocation5 + $0x14c] sm:$0xf]  ;;  %v4945_v33 = vor.u32 %v6815_v16, %v4942_v17 }
 0x1a1   :  { %3821 = vmatpush.bf16.msrb.mxu0 %v6045_v63  ;;  %v3615_v59 = vpop.f32.mrf.mxu0  ;;  %v4577_v0 = vor.u32 %v6723_v52, %v4574_v53  ;;  %v4542_v30 = vld [vmem:[#allocation5 + $0x58] sm:$0xf0]  ;;  %v6743_v53 = vld [vmem:[#allocation5 + $0x12c] sm:$0xf] }
 0x1a2   :  { %3834 = vmatpush.bf16.msrb.mxu1 %v6173_v2  ;;  %v3616_v63 = vadd.f32 %v3615_v59, %v7642_v29  ;;  %v3628_v1 = vpop.f32.mrf.mxu1  ;;  %v4833_v2 = vor.u32 %v6787_v57, %v4830_v58  ;;  %v4798_v41 = vld [vmem:[#allocation5 + $0x258] sm:$0xf0]  ;;  %v4545_v46 = vor.u32 %v6715_v28, %v4542_v30  ;;  %v6775_v56 = vld [vmem:[#allocation5 + $0x22c] sm:$0xf] }
 0x1a3   :  { %3847 = vmatpush.bf16.msrb.mxu2 %v6301_v3  ;;  %v6719_v3 = vld [vmem:[#allocation5 + $0x6c] sm:$0xf]  ;;  %v4926_v45 = vld [vmem:[#allocation5 + $0x358] sm:$0xf0] }
 0x1a4   :  { %3860 = vmatpush.bf16.msrb.mxu3 %v6429_v7  ;;  %3822 = vmatmul.bf16.vlgmr.msrb.gmra.mxu0 %v7585_v13  ;;  %v4961_v7 = vor.u32 %v6819_v60, %v4958_v61  ;;  %v4526_v52 = vld [vmem:[#allocation5 + $0x38] sm:$0xf0]  ;;  %v6807_v58 = vld [vmem:[#allocation5 + $0x32c] sm:$0xf] }
 0x1a5   :  { %3866 = vmatpush.bf16.msra.mxu0 %v4625_v10  ;;  %3835 = vmatmul.bf16.vlgmr.msrb.gmra.mxu1 %v7589_v20  ;;  %v3629_v10 = vadd.f32 %v3628_v1, %v3616_v63  ;;  %v4782_v57 = vld [vmem:[#allocation5 + $0x238] sm:$0xf0]  ;;  %v6707_v61 = vld [vmem:[#allocation5 + $0xc] sm:$0xf] }
 0x1a6   :  { %3879 = vmatpush.bf16.msra.mxu1 %v4753_v11  ;;  %3848 = vmatmul.bf16.vlgmr.msrb.gmra.mxu2 %v7587_v19  ;;  %v4686_v11 = vld [vmem:[#allocation5 + $0x178] sm:$0xf0]  ;;  %v4785_v1 = vor.u32 %v6775_v56, %v4782_v57  ;;  %v6895_v16 = vld [vmem:[#allocation5 + $0x5ec] sm:$0xf] }
 0x1a7   :  { %3892 = vmatpush.bf16.msra.mxu2 %v4881_v12  ;;  %3861 = vmatmul.bf16.vlgmr.msrb.gmra.mxu3 %v7591_v26  ;;  %v6783_v12 = vld [vmem:[#allocation5 + $0x26c] sm:$0xf]  ;;  %v4689_v29 = vor.u32 %v6751_v5, %v4686_v11  ;;  %v4910_v59 = vld [vmem:[#allocation5 + $0x338] sm:$0xf0] }
 0x1a8   :  { %3905 = vmatpush.bf16.msra.mxu3 %v5009_v21  ;;  %v4561_v21 = vor.u32 %v6719_v3, %v4558_v4  ;;  %v4817_v24 = vor.u32 %v6783_v12, %v4814_v14  ;;  %v4510_v63 = vld [vmem:[#allocation5 + $0x18] sm:$0xf0]  ;;  %v6771_v3 = vld [vmem:[#allocation5 + $0x20c] sm:$0xf]  ;;  %v4913_v4 = vor.u32 %v6807_v58, %v4910_v59 }
 0x1a9   :  { %3867 = vmatpush.bf16.msra.mxu0 %v4609_v35  ;;  %v3641_v35 = vpop.f32.mrf.mxu2  ;;  %v3617_v62 = vpop.f32.mrf.mxu0  ;;  %v4766_v5 = vld [vmem:[#allocation5 + $0x218] sm:$0xf0]  ;;  %v6863_v12 = vld [vmem:[#allocation5 + $0x4ec] sm:$0xf] }
 0x1aa   :  { %3880 = vmatpush.bf16.msra.mxu1 %v4737_v36  ;;  %v4670_v36 = vld [vmem:[#allocation5 + $0x158] sm:$0xf0]  ;;  %v3642_v42 = vadd.f32 %v3641_v35, %v3629_v10  ;;  %v3654_v43 = vpop.f32.mrf.mxu3  ;;  %v3630_v47 = vpop.f32.mrf.mxu1  ;;  %v6887_v57 = vld [vmem:[#allocation5 + $0x5ac] sm:$0xf] }
 0x1ab   :  { %3893 = vmatpush.bf16.msra.mxu2 %v4865_v39  ;;  %v6779_v39 = vld [vmem:[#allocation5 + $0x24c] sm:$0xf]  ;;  %v4894_v10 = vld [vmem:[#allocation5 + $0x318] sm:$0xf0] }
 0x1ac   :  { %3906 = vmatpush.bf16.msra.mxu3 %v4993_v44  ;;  %v6811_v44 = vld [vmem:[#allocation5 + $0x34c] sm:$0xf]  ;;  %v7649_v49 = vadd.f32 %v3654_v43, %v3642_v42  ;;  %v5134_v14 = vld [vmem:[#allocation5 + $0x4f8] sm:$0xf0] }
 0x1ad   :  { %3868 = vmatpush.bf16.msra.mxu0 %v4593_v50  ;;  %v4673_v50 = vor.u32 %v6747_v32, %v4670_v36  ;;  %v4929_v48 = vor.u32 %v6811_v44, %v4926_v45  ;;  %v5390_v28 = vld [vmem:[#allocation5 + $0x6f8] sm:$0xf0]  ;;  %v4769_v32 = vor.u32 %v6771_v3, %v4766_v5  ;;  %v6859_v43 = vld [vmem:[#allocation5 + $0x4cc] sm:$0xf] }
 0x1ae   :  { %3881 = vmatpush.bf16.msra.mxu1 %v4721_v51  ;;  %v4801_v51 = vor.u32 %v6779_v39, %v4798_v41  ;;  %v5518_v35 = vld [vmem:[#allocation5 + $0x7f8] sm:$0xf0]  ;;  %v5137_v39 = vor.u32 %v6863_v12, %v5134_v14  ;;  %v6891_v45 = vld [vmem:[#allocation5 + $0x5cc] sm:$0xf] }
 0x1af   :  { %3894 = vmatpush.bf16.msra.mxu2 %v4849_v54  ;;  %v6711_v54 = vld [vmem:[#allocation5 + $0x2c] sm:$0xf]  ;;  %v5118_v44 = vld [vmem:[#allocation5 + $0x4d8] sm:$0xf0] }
 0x1b0   :  { %3907 = vmatpush.bf16.msra.mxu3 %v4977_v55  ;;  %v4654_v55 = vld [vmem:[#allocation5 + $0x138] sm:$0xf0]  ;;  %v4529_v60 = vor.u32 %v6711_v54, %v4526_v52  ;;  %v6923_v47 = vld [vmem:[#allocation5 + $0x6cc] sm:$0xf]  ;;  %v5121_v52 = vor.u32 %v6859_v43, %v5118_v44 }
 0x1b1   :  { %3869 = vmatpush.bf16.msra.mxu0 %v4577_v0  ;;  %v4657_v0 = vor.u32 %v6743_v53, %v4654_v55  ;;  %v3643_v11 = vpop.f32.mrf.mxu2  ;;  %v5502_v54 = vld [vmem:[#allocation5 + $0x7d8] sm:$0xf0]  ;;  %v6855_v55 = vld [vmem:[#allocation5 + $0x4ac] sm:$0xf] }
 0x1b2   :  { %3882 = vmatpush.bf16.msra.mxu1 %v4705_v6  ;;  %v6739_v6 = vld [vmem:[#allocation5 + $0x10c] sm:$0xf]  ;;  %v3656_v17 = vpop.f32.mrf.mxu3  ;;  %v5102_v56 = vld [vmem:[#allocation5 + $0x4b8] sm:$0xf0] }
 0x1b3   :  { %3895 = vmatpush.bf16.msra.mxu2 %v4833_v2  ;;  %v4638_v2 = vld [vmem:[#allocation5 + $0x118] sm:$0xf0]  ;;  %v6883_v5 = vld [vmem:[#allocation5 + $0x58c] sm:$0xf] }
 0x1b4   :  { %3908 = vmatpush.bf16.msra.mxu3 %v4961_v7  ;;  %v6803_v7 = vld [vmem:[#allocation5 + $0x30c] sm:$0xf]  ;;  %v4641_v30 = vor.u32 %v6739_v6, %v4638_v2  ;;  %v5230_v59 = vld [vmem:[#allocation5 + $0x5b8] sm:$0xf0] }
 0x1b5   :  { %3870 = vmatpush.bf16.msra.mxu0 %v4561_v21  ;;  %v4513_v21 = vor.u32 %v6707_v61, %v4510_v63  ;;  %v4897_v36 = vor.u32 %v6803_v7, %v4894_v10  ;;  %v5358_v61 = vld [vmem:[#allocation5 + $0x6b8] sm:$0xf0]  ;;  %v6951_v63 = vld [vmem:[#allocation5 + $0x7ac] sm:$0xf]  ;;  %v5233_v2 = vor.u32 %v6887_v57, %v5230_v59  ;;  %v7655_v7 = vld [vmem:[#allocation7] sm:$0xf] }
 0x1b6   :  { %3883 = vmatpush.bf16.msra.mxu1 %v4689_v29  ;;  %v5262_v29 = vld [vmem:[#allocation5 + $0x5f8] sm:$0xf0]  ;;  %v6851_v6 = vld [vmem:[#allocation5 + $0x48c] sm:$0xf] }
 0x1b7   :  { %3896 = vmatpush.bf16.msra.mxu2 %v4817_v24  ;;  %v6927_v24 = vld [vmem:[#allocation5 + $0x6ec] sm:$0xf]  ;;  %v5265_v41 = vor.u32 %v6895_v16, %v5262_v29  ;;  %v5470_v14 = vld [vmem:[#allocation5 + $0x798] sm:$0xf0] }
 0x1b8   :  { %3909 = vmatpush.bf16.msra.mxu3 %v4945_v33  ;;  %v6959_v33 = vld [vmem:[#allocation5 + $0x7ec] sm:$0xf]  ;;  %v5393_v42 = vor.u32 %v6927_v24, %v5390_v28  ;;  %v5070_v24 = vld [vmem:[#allocation5 + $0x478] sm:$0xf0] }
 0x1b9   :  { %3871 = vmatpush.bf16.msra.mxu0 %v4545_v46  ;;  %v5521_v62 = vor.u32 %v6959_v33, %v5518_v35  ;;  %v5246_v46 = vld [vmem:[#allocation5 + $0x5d8] sm:$0xf0]  ;;  %v6915_v11 = vld [vmem:[#allocation5 + $0x68c] sm:$0xf] }
 0x1ba   :  { %3884 = vmatpush.bf16.msra.mxu1 %v4673_v50  ;;  %v5374_v50 = vld [vmem:[#allocation5 + $0x6d8] sm:$0xf0]  ;;  %v5249_v53 = vor.u32 %v6891_v45, %v5246_v46  ;;  %v6947_v12 = vld [vmem:[#allocation5 + $0x78c] sm:$0xf] }
 0x1bb   :  { %3897 = vmatpush.bf16.msra.mxu2 %v4801_v51  ;;  %v6955_v51 = vld [vmem:[#allocation5 + $0x7cc] sm:$0xf]  ;;  %v5473_v33 = vor.u32 %v6947_v12, %v5470_v14  ;;  %v5198_v35 = vld [vmem:[#allocation5 + $0x578] sm:$0xf0] }
 0x1bc   :  { %3910 = vmatpush.bf16.msra.mxu3 %v4929_v48  ;;  %v5377_v48 = vor.u32 %v6923_v47, %v5374_v50  ;;  %v5505_v58 = vor.u32 %v6955_v51, %v5502_v54  ;;  %v6847_v29 = vld [vmem:[#allocation5 + $0x46c] sm:$0xf]  ;;  %v5054_v47 = vld [vmem:[#allocation5 + $0x458] sm:$0xf0] }
 0x1bd   :  { %3872 = vmatpush.bf16.msra.mxu0 %v4529_v60  ;;  %v6919_v60 = vld [vmem:[#allocation5 + $0x6ac] sm:$0xf]  ;;  %v5073_v44 = vor.u32 %v6847_v29, %v5070_v24  ;;  %v5022_v14 = vld [vmem:[#allocation5 + $0x418] sm:$0xf0] }
 0x1be   :  { %3885 = vmatpush.bf16.msra.mxu1 %v4657_v0  ;;  %v5486_v0 = vld [vmem:[#allocation5 + $0x7b8] sm:$0xf0]  ;;  %v5361_v3 = vor.u32 %v6919_v60, %v5358_v61  ;;  %v6879_v28 = vld [vmem:[#allocation5 + $0x56c] sm:$0xf] }
 0x1bf   :  { %3898 = vmatpush.bf16.msra.mxu2 %v4785_v1  ;;  %v5105_v1 = vor.u32 %v6855_v55, %v5102_v56  ;;  %v5489_v10 = vor.u32 %v6951_v63, %v5486_v0  ;;  %v5201_v45 = vor.u32 %v6879_v28, %v5198_v35  ;;  %v6843_v46 = vld [vmem:[#allocation5 + $0x44c] sm:$0xf] }
 0x1c0   :  { %3911 = vmatpush.bf16.msra.mxu3 %v4913_v4  ;;  %v5086_v4 = vld [vmem:[#allocation5 + $0x498] sm:$0xf0]  ;;  %v6875_v50 = vld [vmem:[#allocation5 + $0x54c] sm:$0xf]  ;;  %v5057_v59 = vor.u32 %v6843_v46, %v5054_v47 }
 0x1c1   :  { %3873 = vmatpush.bf16.msra.mxu0 %v4513_v21  ;;  %v5089_v16 = vor.u32 %v6851_v6, %v5086_v4  ;;  %v6939_v57 = vld [vmem:[#allocation5 + $0x74c] sm:$0xf]  ;;  %v5038_v6 = vld [vmem:[#allocation5 + $0x438] sm:$0xf0] }
 0x1c2   :  { %3886 = vmatpush.bf16.msra.mxu1 %v4641_v30  ;;  %v6835_v12 = vld [vmem:[#allocation5 + $0x40c] sm:$0xf] }
 0x1c3   :  { %3899 = vmatpush.bf16.msra.mxu2 %v4769_v32  ;;  %v3680_v32 = vpop.f32.mrf.mxu1  ;;  %v6899_v29 = vld [vmem:[#allocation5 + $0x60c] sm:$0xf] }
 0x1c4   :  { %3912 = vmatpush.bf16.msra.mxu3 %v4897_v36  ;;  %3874 = vmatmul.bf16.vlgmr.msra.gmra.mxu0 %v7551_v9  ;;  %v5214_v9 = vld [vmem:[#allocation5 + $0x598] sm:$0xf0]  ;;  %v6911_v36 = vld [vmem:[#allocation5 + $0x66c] sm:$0xf] }
 0x1c5   :  { %3918 = vmatpush.bf16.msrb.mxu0 %v5137_v39  ;;  %3887 = vmatmul.bf16.vlgmr.msra.gmra.mxu1 %v7558_v25  ;;  %v3667_v25 = vpop.f32.mrf.mxu0  ;;  %v5217_v17 = vor.u32 %v6883_v5, %v5214_v9  ;;  %v5326_v39 = vld [vmem:[#allocation5 + $0x678] sm:$0xf0]  ;;  %v6935_v9 = vld [vmem:[#allocation5 + $0x72c] sm:$0xf] }
 0x1c6   :  { %3931 = vmatpush.bf16.msrb.mxu1 %v5265_v41  ;;  %3900 = vmatmul.bf16.vlgmr.msra.gmra.mxu2 %v7549_v8  ;;  %v676_v8 = vperm.slane %v7655_v7, 2  ;;  %v6943_v41 = vld [vmem:[#allocation5 + $0x76c] sm:$0xf]  ;;  %v5166_v5 = vld [vmem:[#allocation5 + $0x538] sm:$0xf0] }
 0x1c7   :  { %3944 = vmatpush.bf16.msrb.mxu2 %v5393_v42  ;;  %3913 = vmatmul.bf16.vlgmr.msra.gmra.mxu3 %v7553_v15  ;;  %v5342_v15 = vld [vmem:[#allocation5 + $0x698] sm:$0xf0]  ;;  %v7087_v47 = vld [vmem:[#allocation5 + $0xbec] sm:$0xf] }
 0x1c8   :  { %3957 = vmatpush.bf16.msrb.mxu3 %v5521_v62  ;;  %v5345_v21 = vor.u32 %v6915_v11, %v5342_v15  ;;  %v3668_v30 = vadd.f32 %v3667_v25, %v676_v8  ;;  %v5454_v42 = vld [vmem:[#allocation5 + $0x778] sm:$0xf0]  ;;  %v5329_v62 = vor.u32 %v6911_v36, %v5326_v39  ;;  %v6903_v8 = vld [vmem:[#allocation5 + $0x62c] sm:$0xf] }
 0x1c9   :  { %3919 = vmatpush.bf16.msrb.mxu0 %v5121_v52  ;;  %v3693_v51 = vpop.f32.mrf.mxu2  ;;  %v5457_v54 = vor.u32 %v6943_v41, %v5454_v42  ;;  %v5182_v52 = vld [vmem:[#allocation5 + $0x558] sm:$0xf0]  ;;  %v6991_v36 = vld [vmem:[#allocation5 + $0x8ec] sm:$0xf]  ;;  %v5025_v42 = vor.u32 %v6835_v12, %v5022_v14 }
 0x1ca   :  { %3932 = vmatpush.bf16.msrb.mxu1 %v5249_v53  ;;  %v3681_v43 = vadd.f32 %v3680_v32, %v3668_v30  ;;  %v6907_v53 = vld [vmem:[#allocation5 + $0x64c] sm:$0xf]  ;;  %v3706_v56 = vpop.f32.mrf.mxu3  ;;  %v5185_v63 = vor.u32 %v6875_v50, %v5182_v52  ;;  %v5422_v11 = vld [vmem:[#allocation5 + $0x738] sm:$0xf0] }
 0x1cb   :  { %3945 = vmatpush.bf16.msrb.mxu2 %v5377_v48  ;;  %v5310_v48 = vld [vmem:[#allocation5 + $0x658] sm:$0xf0]  ;;  %v5425_v28 = vor.u32 %v6935_v9, %v5422_v11  ;;  %v6931_v32 = vld [vmem:[#allocation5 + $0x70c] sm:$0xf] }
 0x1cc   :  { %3958 = vmatpush.bf16.msrb.mxu3 %v5505_v58  ;;  %v3694_v55 = vadd.f32 %v3693_v51, %v3681_v43  ;;  %v5438_v58 = vld [vmem:[#allocation5 + $0x758] sm:$0xf0]  ;;  %v5313_v0 = vor.u32 %v6907_v53, %v5310_v48  ;;  %v7023_v41 = vld [vmem:[#allocation5 + $0x9ec] sm:$0xf] }
 0x1cd   :  { %3920 = vmatpush.bf16.msrb.mxu0 %v5105_v1  ;;  %v3669_v61 = vpop.f32.mrf.mxu0  ;;  %v6839_v1 = vld [vmem:[#allocation5 + $0x42c] sm:$0xf]  ;;  %v5441_v4 = vor.u32 %v6939_v57, %v5438_v58  ;;  %v5278_v30 = vld [vmem:[#allocation5 + $0x618] sm:$0xf0] }
 0x1ce   :  { %3933 = vmatpush.bf16.msrb.mxu1 %v5233_v2  ;;  %v7658_v60 = vadd.f32 %v3706_v56, %v3694_v55  ;;  %v6871_v2 = vld [vmem:[#allocation5 + $0x52c] sm:$0xf]  ;;  %v5041_v15 = vor.u32 %v6839_v1, %v5038_v6  ;;  %v5646_v39 = vld [vmem:[#allocation5 + $0x8f8] sm:$0xf0]  ;;  %v5281_v46 = vor.u32 %v6899_v29, %v5278_v30 }
 0x1cf   :  { %3946 = vmatpush.bf16.msrb.mxu2 %v5361_v3  ;;  %v3682_v3 = vpop.f32.mrf.mxu1  ;;  %v5774_v43 = vld [vmem:[#allocation5 + $0x9f8] sm:$0xf0]  ;;  %v6987_v48 = vld [vmem:[#allocation5 + $0x8cc] sm:$0xf] }
 0x1d0   :  { %3959 = vmatpush.bf16.msrb.mxu3 %v5489_v10  ;;  %v5294_v10 = vld [vmem:[#allocation5 + $0x638] sm:$0xf0]  ;;  %v5777_v52 = vor.u32 %v7023_v41, %v5774_v43  ;;  %v7019_v56 = vld [vmem:[#allocation5 + $0x9cc] sm:$0xf] }
 0x1d1   :  { %3921 = vmatpush.bf16.msrb.mxu0 %v5089_v16  ;;  %v5169_v16 = vor.u32 %v6871_v2, %v5166_v5  ;;  %v5297_v25 = vor.u32 %v6903_v8, %v5294_v10  ;;  %v3695_v24 = vpop.f32.mrf.mxu2  ;;  %v6030_v50 = vld [vmem:[#allocation5 + $0xbf8] sm:$0xf0]  ;;  %v6983_v3 = vld [vmem:[#allocation5 + $0x8ac] sm:$0xf] }
 0x1d2   :  { %3934 = vmatpush.bf16.msrb.mxu1 %v5217_v17  ;;  %v6867_v17 = vld [vmem:[#allocation5 + $0x50c] sm:$0xf]  ;;  %v3708_v35 = vpop.f32.mrf.mxu3  ;;  %v5630_v55 = vld [vmem:[#allocation5 + $0x8d8] sm:$0xf0]  ;;  %v6033_v57 = vor.u32 %v7087_v47, %v6030_v50 }
 0x1d3   :  { %3947 = vmatpush.bf16.msrb.mxu2 %v5345_v21  ;;  %v5150_v21 = vld [vmem:[#allocation5 + $0x518] sm:$0xf0]  ;;  %v5633_v1 = vor.u32 %v6987_v48, %v5630_v55  ;;  %v7015_v5 = vld [vmem:[#allocation5 + $0x9ac] sm:$0xf] }
 0x1d4   :  { %3960 = vmatpush.bf16.msrb.mxu3 %v5473_v33  ;;  %v5406_v33 = vld [vmem:[#allocation5 + $0x718] sm:$0xf0]  ;;  %v7047_v9 = vld [vmem:[#allocation5 + $0xaac] sm:$0xf] }
 0x1d5   :  { %3922 = vmatpush.bf16.msrb.mxu0 %v5073_v44  ;;  %v7055_v44 = vld [vmem:[#allocation5 + $0xaec] sm:$0xf]  ;;  %v5409_v51 = vor.u32 %v6931_v32, %v5406_v33  ;;  %v5758_v58 = vld [vmem:[#allocation5 + $0x9d8] sm:$0xf0] }
 0x1d6   :  { %3935 = vmatpush.bf16.msrb.mxu1 %v5201_v45  ;;  %v5902_v45 = vld [vmem:[#allocation5 + $0xaf8] sm:$0xf0]  ;;  %v5761_v6 = vor.u32 %v7019_v56, %v5758_v58  ;;  %v7075_v32 = vld [vmem:[#allocation5 + $0xb8c] sm:$0xf] }
 0x1d7   :  { %3948 = vmatpush.bf16.msrb.mxu2 %v5329_v62  ;;  %v5153_v62 = vor.u32 %v6867_v17, %v5150_v21  ;;  %v5905_v53 = vor.u32 %v7055_v44, %v5902_v45  ;;  %v5886_v61 = vld [vmem:[#allocation5 + $0xad8] sm:$0xf0]  ;;  %v6979_v17 = vld [vmem:[#allocation5 + $0x88c] sm:$0xf] }
 0x1d8   :  { %3961 = vmatpush.bf16.msrb.mxu3 %v5457_v54  ;;  %v5649_v54 = vor.u32 %v6991_v36, %v5646_v39  ;;  %v5742_v10 = vld [vmem:[#allocation5 + $0x9b8] sm:$0xf0]  ;;  %v6975_v36 = vld [vmem:[#allocation5 + $0x86c] sm:$0xf] }
 0x1d9   :  { %3923 = vmatpush.bf16.msrb.mxu0 %v5057_v59  ;;  %v7051_v59 = vld [vmem:[#allocation5 + $0xacc] sm:$0xf]  ;;  %v5870_v11 = vld [vmem:[#allocation5 + $0xab8] sm:$0xf0] }
 0x1da   :  { %3936 = vmatpush.bf16.msrb.mxu1 %v5185_v63  ;;  %v7083_v63 = vld [vmem:[#allocation5 + $0xbcc] sm:$0xf]  ;;  %v5889_v2 = vor.u32 %v7051_v59, %v5886_v61  ;;  %v5998_v12 = vld [vmem:[#allocation5 + $0xbb8] sm:$0xf0] }
 0x1db   :  { %3949 = vmatpush.bf16.msrb.mxu2 %v5313_v0  ;;  %v6014_v0 = vld [vmem:[#allocation5 + $0xbd8] sm:$0xf0]  ;;  %v7007_v41 = vld [vmem:[#allocation5 + $0x96c] sm:$0xf] }
 0x1dc   :  { %3962 = vmatpush.bf16.msrb.mxu3 %v5441_v4  ;;  %v5614_v4 = vld [vmem:[#allocation5 + $0x8b8] sm:$0xf0]  ;;  %v6017_v8 = vor.u32 %v7083_v63, %v6014_v0  ;;  %v7039_v45 = vld [vmem:[#allocation5 + $0xa6c] sm:$0xf] }
 0x1dd   :  { %3924 = vmatpush.bf16.msrb.mxu0 %v5041_v15  ;;  %v7079_v15 = vld [vmem:[#allocation5 + $0xbac] sm:$0xf]  ;;  %v5617_v14 = vor.u32 %v6983_v3, %v5614_v4  ;;  %v5598_v21 = vld [vmem:[#allocation5 + $0x898] sm:$0xf0] }
 0x1de   :  { %3937 = vmatpush.bf16.msrb.mxu1 %v5169_v16  ;;  %v5745_v16 = vor.u32 %v7015_v5, %v5742_v10  ;;  %v6001_v29 = vor.u32 %v7079_v15, %v5998_v12  ;;  %v5726_v24 = vld [vmem:[#allocation5 + $0x998] sm:$0xf0]  ;;  %v7003_v48 = vld [vmem:[#allocation5 + $0x94c] sm:$0xf] }
 0x1df   :  { %3950 = vmatpush.bf16.msrb.mxu2 %v5297_v25  ;;  %v5873_v25 = vor.u32 %v7047_v9, %v5870_v11  ;;  %v5854_v30 = vld [vmem:[#allocation5 + $0xa98] sm:$0xf0]  ;;  %v7035_v58 = vld [vmem:[#allocation5 + $0xa4c] sm:$0xf] }
 0x1e0   :  { %3963 = vmatpush.bf16.msrb.mxu3 %v5425_v28  ;;  %v7043_v28 = vld [vmem:[#allocation5 + $0xa8c] sm:$0xf]  ;;  %v5582_v39 = vld [vmem:[#allocation5 + $0x878] sm:$0xf0] }
 0x1e1   :  { %3925 = vmatpush.bf16.msrb.mxu0 %v5025_v42  ;;  %v7664_v33 = vpop.f32.mrf.mxu0  ;;  %v5857_v35 = vor.u32 %v7043_v28, %v5854_v30  ;;  %v5710_v44 = vld [vmem:[#allocation5 + $0x978] sm:$0xf0]  ;;  %v5585_v50 = vor.u32 %v6975_v36, %v5582_v39  ;;  %v7067_v63 = vld [vmem:[#allocation5 + $0xb4c] sm:$0xf] }
 0x1e2   :  { %3938 = vmatpush.bf16.msrb.mxu1 %v5153_v62  ;;  %v7666_v42 = vpop.f32.mrf.mxu1  ;;  %v5838_v62 = vld [vmem:[#allocation5 + $0xa78] sm:$0xf0]  ;;  %v6967_v4 = vld [vmem:[#allocation5 + $0x82c] sm:$0xf] }
 0x1e3   :  { %3951 = vmatpush.bf16.msrb.mxu2 %v5281_v46  ;;  %v7071_v46 = vld [vmem:[#allocation5 + $0xb6c] sm:$0xf]  ;;  %v5966_v47 = vld [vmem:[#allocation5 + $0xb78] sm:$0xf0] }
 0x1e4   :  { %3964 = vmatpush.bf16.msrb.mxu3 %v5409_v51  ;;  %3926 = vmatmul.bf16.vlgmr.msrb.gmra.mxu0 %v7563_v37  ;;  %v5982_v37 = vld [vmem:[#allocation5 + $0xb98] sm:$0xf0]  ;;  %v5713_v51 = vor.u32 %v7007_v41, %v5710_v44  ;;  %v5969_v56 = vor.u32 %v7071_v46, %v5966_v47  ;;  %v7031_v15 = vld [vmem:[#allocation5 + $0xa2c] sm:$0xf] }
 0x1e5   :  { %3970 = vmatpush.bf16.msra.mxu0 %v5649_v54  ;;  %3939 = vmatmul.bf16.vlgmr.msrb.gmra.mxu1 %v7567_v40  ;;  %v5985_v43 = vor.u32 %v7075_v32, %v5982_v37  ;;  %v5841_v54 = vor.u32 %v7039_v45, %v5838_v62  ;;  %v5822_v59 = vld [vmem:[#allocation5 + $0xa58] sm:$0xf0]  ;;  %v7027_v30 = vld [vmem:[#allocation5 + $0xa0c] sm:$0xf] }
 0x1e6   :  { %3983 = vmatpush.bf16.msra.mxu1 %v5777_v52  ;;  %3952 = vmatmul.bf16.vlgmr.msrb.gmra.mxu2 %v7561_v34  ;;  %v7011_v34 = vld [vmem:[#allocation5 + $0x98c] sm:$0xf]  ;;  %v5950_v0 = vld [vmem:[#allocation5 + $0xb58] sm:$0xf0]  ;;  %v5825_v3 = vor.u32 %v7035_v58, %v5822_v59 }
 0x1e7   :  { %3996 = vmatpush.bf16.msra.mxu2 %v5905_v53  ;;  %3965 = vmatmul.bf16.vlgmr.msrb.gmra.mxu3 %v7565_v38  ;;  %v5601_v38 = vor.u32 %v6979_v17, %v5598_v21  ;;  %v5729_v40 = vor.u32 %v7011_v34, %v5726_v24  ;;  %v6971_v52 = vld [vmem:[#allocation5 + $0x84c] sm:$0xf]  ;;  %v5566_v53 = vld [vmem:[#allocation5 + $0x858] sm:$0xf0]  ;;  %v5953_v9 = vor.u32 %v7067_v63, %v5950_v0 }
 0x1e8   :  { %4009 = vmatpush.bf16.msra.mxu3 %v6033_v57  ;;  %v5694_v57 = vld [vmem:[#allocation5 + $0x958] sm:$0xf0]  ;;  %v6963_v17 = vld [vmem:[#allocation5 + $0x80c] sm:$0xf] }
 0x1e9   :  { %3971 = vmatpush.bf16.msra.mxu0 %v5633_v1  ;;  %v7668_v55 = vpop.f32.mrf.mxu2  ;;  %v5569_v1 = vor.u32 %v6971_v52, %v5566_v53  ;;  %v5550_v5 = vld [vmem:[#allocation5 + $0x838] sm:$0xf0]  ;;  %v6995_v24 = vld [vmem:[#allocation5 + $0x90c] sm:$0xf] }
 0x1ea   :  { %3984 = vmatpush.bf16.msra.mxu1 %v5761_v6  ;;  %v7670_v61 = vpop.f32.mrf.mxu3  ;;  %v3721_v6 = vpop.f32.mrf.mxu0  ;;  %v5678_v11 = vld [vmem:[#allocation5 + $0x938] sm:$0xf0]  ;;  %v7119_v39 = vld [vmem:[#allocation5 + $0xcec] sm:$0xf] }
 0x1eb   :  { %3997 = vmatpush.bf16.msra.mxu2 %v5889_v2  ;;  %v5697_v2 = vor.u32 %v7003_v48, %v5694_v57  ;;  %v3734_v10 = vpop.f32.mrf.mxu1  ;;  %v5806_v12 = vld [vmem:[#allocation5 + $0xa38] sm:$0xf0]  ;;  %v7183_v62 = vld [vmem:[#allocation5 + $0xeec] sm:$0xf] }
 0x1ec   :  { %4010 = vmatpush.bf16.msra.mxu3 %v6017_v8  ;;  %v6999_v8 = vld [vmem:[#allocation5 + $0x92c] sm:$0xf]  ;;  %v5534_v21 = vld [vmem:[#allocation5 + $0x818] sm:$0xf0] }
 0x1ed   :  { %3972 = vmatpush.bf16.msra.mxu0 %v5617_v14  ;;  %v7063_v14 = vld [vmem:[#allocation5 + $0xb2c] sm:$0xf]  ;;  %v5681_v34 = vor.u32 %v6999_v8, %v5678_v11  ;;  %v5662_v28 = vld [vmem:[#allocation5 + $0x918] sm:$0xf0]  ;;  %v5537_v44 = vor.u32 %v6963_v17, %v5534_v21 }
 0x1ee   :  { %3985 = vmatpush.bf16.msra.mxu1 %v5745_v16  ;;  %v5934_v16 = vld [vmem:[#allocation5 + $0xb38] sm:$0xf0]  ;;  %v5665_v47 = vor.u32 %v6995_v24, %v5662_v28  ;;  %v7115_v57 = vld [vmem:[#allocation5 + $0xccc] sm:$0xf] }
 0x1ef   :  { %3998 = vmatpush.bf16.msra.mxu2 %v5873_v25  ;;  %v5553_v25 = vor.u32 %v6967_v4, %v5550_v5  ;;  %v5937_v37 = vor.u32 %v7063_v14, %v5934_v16  ;;  %v6158_v41 = vld [vmem:[#allocation5 + $0xcf8] sm:$0xf0]  ;;  %v7147_v59 = vld [vmem:[#allocation5 + $0xdcc] sm:$0xf] }
 0x1f0   :  { %4011 = vmatpush.bf16.msra.mxu3 %v6001_v29  ;;  %v5809_v29 = vor.u32 %v7031_v15, %v5806_v12  ;;  %v6286_v45 = vld [vmem:[#allocation5 + $0xdf8] sm:$0xf0]  ;;  %v6161_v53 = vor.u32 %v7119_v39, %v6158_v41  ;;  %v7111_v10 = vld [vmem:[#allocation5 + $0xcac] sm:$0xf] }
 0x1f1   :  { %3973 = vmatpush.bf16.msra.mxu0 %v5601_v38  ;;  %v3747_v32 = vpop.f32.mrf.mxu2  ;;  %v5790_v38 = vld [vmem:[#allocation5 + $0xa18] sm:$0xf0]  ;;  %v7143_v11 = vld [vmem:[#allocation5 + $0xdac] sm:$0xf] }
 0x1f2   :  { %3986 = vmatpush.bf16.msra.mxu1 %v5729_v40  ;;  %v7059_v40 = vld [vmem:[#allocation5 + $0xb0c] sm:$0xf]  ;;  %v3760_v36 = vpop.f32.mrf.mxu3  ;;  %v6414_v46 = vld [vmem:[#allocation5 + $0xef8] sm:$0xf0] }
 0x1f3   :  { %3999 = vmatpush.bf16.msra.mxu2 %v5857_v35  ;;  %v5918_v35 = vld [vmem:[#allocation5 + $0xb18] sm:$0xf0]  ;;  %v7175_v14 = vld [vmem:[#allocation5 + $0xeac] sm:$0xf] }
 0x1f4   :  { %4012 = vmatpush.bf16.msra.mxu3 %v5985_v43  ;;  %v7151_v43 = vld [vmem:[#allocation5 + $0xdec] sm:$0xf]  ;;  %v5921_v52 = vor.u32 %v7059_v40, %v5918_v35  ;;  %v6142_v58 = vld [vmem:[#allocation5 + $0xcd8] sm:$0xf0] }
 0x1f5   :  { %3974 = vmatpush.bf16.msra.mxu0 %v5585_v50  ;;  %v5793_v50 = vor.u32 %v7027_v30, %v5790_v38  ;;  %v6289_v48 = vor.u32 %v7151_v43, %v6286_v45  ;;  %v6270_v0 = vld [vmem:[#allocation5 + $0xdd8] sm:$0xf0]  ;;  %v6145_v4 = vor.u32 %v7115_v57, %v6142_v58  ;;  %v7107_v24 = vld [vmem:[#allocation5 + $0xc8c] sm:$0xf] }
 0x1f6   :  { %3987 = vmatpush.bf16.msra.mxu1 %v5713_v51  ;;  %v7215_v51 = vld [vmem:[#allocation5 + $0xfec] sm:$0xf]  ;;  %v6398_v6 = vld [vmem:[#allocation5 + $0xed8] sm:$0xf0]  ;;  %v6273_v5 = vor.u32 %v7147_v59, %v6270_v0 }
 0x1f7   :  { %4000 = vmatpush.bf16.msra.mxu2 %v5841_v54  ;;  %v6542_v54 = vld [vmem:[#allocation5 + $0xff8] sm:$0xf0]  ;;  %v7139_v28 = vld [vmem:[#allocation5 + $0xd8c] sm:$0xf] }
 0x1f8   :  { %4013 = vmatpush.bf16.msra.mxu3 %v5969_v56  ;;  %v6417_v56 = vor.u32 %v7183_v62, %v6414_v46  ;;  %v6545_v63 = vor.u32 %v7215_v51, %v6542_v54  ;;  %v6254_v12 = vld [vmem:[#allocation5 + $0xdb8] sm:$0xf0]  ;;  %v7103_v41 = vld [vmem:[#allocation5 + $0xc6c] sm:$0xf] }
 0x1f9   :  { %3975 = vmatpush.bf16.msra.mxu0 %v5569_v1  ;;  %v7179_v1 = vld [vmem:[#allocation5 + $0xecc] sm:$0xf]  ;;  %v6382_v16 = vld [vmem:[#allocation5 + $0xeb8] sm:$0xf0] }
 0x1fa   :  { %3988 = vmatpush.bf16.msra.mxu1 %v5697_v2  ;;  %v7211_v2 = vld [vmem:[#allocation5 + $0xfcc] sm:$0xf]  ;;  %v6401_v8 = vor.u32 %v7179_v1, %v6398_v6  ;;  %v6510_v17 = vld [vmem:[#allocation5 + $0xfb8] sm:$0xf0] }
 0x1fb   :  { %4001 = vmatpush.bf16.msra.mxu2 %v5825_v3  ;;  %v6526_v3 = vld [vmem:[#allocation5 + $0xfd8] sm:$0xf0]  ;;  %v7167_v46 = vld [vmem:[#allocation5 + $0xe6c] sm:$0xf] }
 0x1fc   :  { %4014 = vmatpush.bf16.msra.mxu3 %v5953_v9  ;;  %v6126_v9 = vld [vmem:[#allocation5 + $0xcb8] sm:$0xf0]  ;;  %v6529_v15 = vor.u32 %v7211_v2, %v6526_v3  ;;  %v7131_v57 = vld [vmem:[#allocation5 + $0xd4c] sm:$0xf] }
 0x1fd   :  { %3976 = vmatpush.bf16.msra.mxu0 %v5553_v25  ;;  %v7207_v25 = vld [vmem:[#allocation5 + $0xfac] sm:$0xf]  ;;  %v6129_v21 = vor.u32 %v7111_v10, %v6126_v9  ;;  %v6238_v32 = vld [vmem:[#allocation5 + $0xd98] sm:$0xf0] }
 0x1fe   :  { %3989 = vmatpush.bf16.msra.mxu1 %v5681_v34  ;;  %v6257_v34 = vor.u32 %v7143_v11, %v6254_v12  ;;  %v6513_v30 = vor.u32 %v7207_v25, %v6510_v17  ;;  %v6494_v40 = vld [vmem:[#allocation5 + $0xf98] sm:$0xf0]  ;;  %v6241_v36 = vor.u32 %v7139_v28, %v6238_v32  ;;  %v7163_v0 = vld [vmem:[#allocation5 + $0xe4c] sm:$0xf] }
 0x1ff   :  { %4002 = vmatpush.bf16.msra.mxu2 %v5809_v29  ;;  %v6385_v29 = vor.u32 %v7175_v14, %v6382_v16  ;;  %v6094_v43 = vld [vmem:[#allocation5 + $0xc78] sm:$0xf0]  ;;  %v7195_v2 = vld [vmem:[#allocation5 + $0xf4c] sm:$0xf] }
 0x200   :  { %4015 = vmatpush.bf16.msra.mxu3 %v5937_v37  ;;  %v7171_v37 = vld [vmem:[#allocation5 + $0xe8c] sm:$0xf]  ;;  %v6222_v62 = vld [vmem:[#allocation5 + $0xd78] sm:$0xf0]  ;;  %v6097_v54 = vor.u32 %v7103_v41, %v6094_v43 }
 0x201   :  { %3977 = vmatpush.bf16.msra.mxu0 %v5537_v44  ;;  %v7676_v38 = vpop.f32.mrf.mxu0  ;;  %v7135_v44 = vld [vmem:[#allocation5 + $0xd6c] sm:$0xf]  ;;  %v6478_v51 = vld [vmem:[#allocation5 + $0xf78] sm:$0xf0] }
 0x202   :  { %3990 = vmatpush.bf16.msra.mxu1 %v5665_v47  ;;  %v7678_v35 = vpop.f32.mrf.mxu1  ;;  %v6350_v47 = vld [vmem:[#allocation5 + $0xe78] sm:$0xf0]  ;;  %v7127_v14 = vld [vmem:[#allocation5 + $0xd2c] sm:$0xf] }
 0x203   :  { %4003 = vmatpush.bf16.msra.mxu2 %v5793_v50  ;;  %v7199_v50 = vld [vmem:[#allocation5 + $0xf6c] sm:$0xf]  ;;  %v6334_v1 = vld [vmem:[#allocation5 + $0xe58] sm:$0xf0] }
 0x204   :  { %4016 = vmatpush.bf16.msra.mxu3 %v5921_v52  ;;  %3978 = vmatmul.bf16.vlgmr.msra.gmra.mxu0 %v7573_v18  ;;  %v6110_v18 = vld [vmem:[#allocation5 + $0xc98] sm:$0xf0]  ;;  %v6225_v52 = vor.u32 %v7135_v44, %v6222_v62  ;;  %v6481_v58 = vor.u32 %v7199_v50, %v6478_v51  ;;  %v6337_v11 = vor.u32 %v7163_v0, %v6334_v1  ;;  %v7159_v17 = vld [vmem:[#allocation5 + $0xe2c] sm:$0xf] }
 0x205   :  { %4022 = vmatpush.bf16.msrb.mxu0 %v6161_v53  ;;  %3991 = vmatmul.bf16.vlgmr.msra.gmra.mxu1 %v7577_v23  ;;  %v7203_v23 = vld [vmem:[#allocation5 + $0xf8c] sm:$0xf]  ;;  %v6353_v53 = vor.u32 %v7167_v46, %v6350_v47  ;;  %v6462_v3 = vld [vmem:[#allocation5 + $0xf58] sm:$0xf0] }
 0x206   :  { %4035 = vmatpush.bf16.msrb.mxu1 %v6289_v48  ;;  %4004 = vmatmul.bf16.vlgmr.msra.gmra.mxu2 %v7575_v22  ;;  %v6366_v22 = vld [vmem:[#allocation5 + $0xe98] sm:$0xf0]  ;;  %v6497_v45 = vor.u32 %v7203_v23, %v6494_v40  ;;  %v7099_v48 = vld [vmem:[#allocation5 + $0xc4c] sm:$0xf]  ;;  %v6465_v16 = vor.u32 %v7195_v2, %v6462_v3 }
 0x207   :  { %4048 = vmatpush.bf16.msrb.mxu2 %v6417_v56  ;;  %4017 = vmatmul.bf16.vlgmr.msra.gmra.mxu3 %v7579_v27  ;;  %v6113_v27 = vor.u32 %v7107_v24, %v6110_v18  ;;  %v6369_v39 = vor.u32 %v7171_v37, %v6366_v22  ;;  %v6078_v56 = vld [vmem:[#allocation5 + $0xc58] sm:$0xf0]  ;;  %v7091_v28 = vld [vmem:[#allocation5 + $0xc0c] sm:$0xf] }
 0x208   :  { %4061 = vmatpush.bf16.msrb.mxu3 %v6545_v63  ;;  %v6206_v63 = vld [vmem:[#allocation5 + $0xd58] sm:$0xf0]  ;;  %v7123_v32 = vld [vmem:[#allocation5 + $0xd0c] sm:$0xf] }
 0x209   :  { %4023 = vmatpush.bf16.msrb.mxu0 %v6145_v4  ;;  %v7680_v59 = vpop.f32.mrf.mxu2  ;;  %v3773_v4 = vpop.f32.mrf.mxu0  ;;  %v6209_v9 = vor.u32 %v7131_v57, %v6206_v63  ;;  %v6062_v12 = vld [vmem:[#allocation5 + $0xc38] sm:$0xf0]  ;;  %v7155_v23 = vld [vmem:[#allocation5 + $0xe0c] sm:$0xf]  ;;  %v7222_v63 = vld [vmem:[#allocation8 + $0x20] sm:$0xff] }
 0x20a   :  { %4036 = vmatpush.bf16.msrb.mxu1 %v6273_v5  ;;  %v7682_v6 = vpop.f32.mrf.mxu3  ;;  %v3720_v5 = vadd.f32 %v7664_v33, %v7658_v60  ;;  %v3786_v10 = vpop.f32.mrf.mxu1  ;;  %v6190_v25 = vld [vmem:[#allocation5 + $0xd38] sm:$0xf0] }
 0x20b   :  { %4049 = vmatpush.bf16.msrb.mxu2 %v6401_v8  ;;  %v6081_v8 = vor.u32 %v7099_v48, %v6078_v56  ;;  %v6193_v33 = vor.u32 %v7127_v14, %v6190_v25  ;;  %v6174_v22 = vld [vmem:[#allocation5 + $0xd18] sm:$0xf0]  ;;  %v7223_v48 = vld [vmem:[#allocation8 + $0x28] sm:$0xff] }
 0x20c   :  { %4062 = vmatpush.bf16.msrb.mxu3 %v6529_v15  ;;  %v7095_v15 = vld [vmem:[#allocation5 + $0xc2c] sm:$0xf]  ;;  %v3733_v24 = vadd.f32 %v7666_v42, %v3720_v5  ;;  %v6302_v40 = vld [vmem:[#allocation5 + $0xe18] sm:$0xf0]  ;;  %v6177_v44 = vor.u32 %v7123_v32, %v6174_v22  ;;  %v677_v32 = vperm.slane %v7655_v7, 3  ;;  %v7248_v7 = vld [vmem:[#allocation8 + $0xf0] sm:$0xff] }
 0x20d   :  { %4024 = vmatpush.bf16.msrb.mxu0 %v6129_v21  ;;  %v6318_v21 = vld [vmem:[#allocation5 + $0xe38] sm:$0xf0]  ;;  %v6065_v60 = vor.u32 %v7095_v15, %v6062_v12  ;;  %v7239_v56 = vld [vmem:[#allocation8 + $0xa8] sm:$0xff] }
 0x20e   :  { %4037 = vmatpush.bf16.msrb.mxu1 %v6257_v34  ;;  %v7191_v34 = vld [vmem:[#allocation5 + $0xf2c] sm:$0xf]  ;;  %v6321_v18 = vor.u32 %v7159_v17, %v6318_v21  ;;  %v3746_v42 = vadd.f32 %v7668_v55, %v3733_v24  ;;  %v7225_v46 = vld [vmem:[#allocation8 + $0x38] sm:$0xff]  ;;  %v7224_v55 = vld [vmem:[#allocation8 + $0x30] sm:$0xff] }
 0x20f   :  { %4050 = vmatpush.bf16.msrb.mxu2 %v6385_v29  ;;  %v6446_v29 = vld [vmem:[#allocation5 + $0xf38] sm:$0xf0]  ;;  %v7227_v12 = vld [vmem:[#allocation8 + $0x48] sm:$0xff]  ;;  %v7218_v21 = vld [vmem:[#allocation8] sm:$0xff] }
 0x210   :  { %4063 = vmatpush.bf16.msrb.mxu3 %v6513_v30  ;;  %v6046_v30 = vld [vmem:[#allocation5 + $0xc18] sm:$0xf0]  ;;  %v6449_v37 = vor.u32 %v7191_v34, %v6446_v29  ;;  %v3759_v51 = vadd.f32 %v7670_v61, %v3746_v42  ;;  %v7235_v14 = vld [vmem:[#allocation8 + $0x88] sm:$0xff]  ;;  %v4074_v34 = vmax.f32 %v7622_v31, 0.0  ;;  %v7226_v29 = vld [vmem:[#allocation8 + $0x40] sm:$0xff] }
 0x211   :  { %4025 = vmatpush.bf16.msrb.mxu0 %v6113_v27  ;;  %v3799_v27 = vpop.f32.mrf.mxu2  ;;  %v6049_v43 = vor.u32 %v7091_v28, %v6046_v30  ;;  %v7233_v47 = vld [vmem:[#allocation8 + $0x78] sm:$0xff]  ;;  %v7234_v24 = vld [vmem:[#allocation8 + $0x80] sm:$0xff] }
 0x212   :  { %4038 = vmatpush.bf16.msrb.mxu1 %v6241_v36  ;;  %v7187_v36 = vld [vmem:[#allocation5 + $0xf0c] sm:$0xf]  ;;  %v3812_v41 = vpop.f32.mrf.mxu3  ;;  %v7241_v50 = vld [vmem:[#allocation8 + $0xb8] sm:$0xff] }
 0x213   :  { %4051 = vmatpush.bf16.msrb.mxu2 %v6369_v39  ;;  %v6430_v39 = vld [vmem:[#allocation5 + $0xf18] sm:$0xf0] }
 0x214   :  { %4064 = vmatpush.bf16.msrb.mxu3 %v6497_v45  ;;  %v6305_v45 = vor.u32 %v7155_v23, %v6302_v40  ;;  %v6433_v62 = vor.u32 %v7187_v36, %v6430_v39  ;;  %v7229_v1 = vld [vmem:[#allocation8 + $0x58] sm:$0xff] }
 0x215   :  { %4026 = vmatpush.bf16.msrb.mxu0 %v6097_v54  ;;  %v3772_v54 = vadd.f32 %v7676_v38, %v3759_v51  ;;  %v7231_v38 = vld [vmem:[#allocation8 + $0x68] sm:$0xff]  ;;  %v7237_v2 = vld [vmem:[#allocation8 + $0x98] sm:$0xff] }
 0x216   :  { %4039 = vmatpush.bf16.msrb.mxu1 %v6225_v52  ;;  %v7232_v52 = vld [vmem:[#allocation8 + $0x70] sm:$0xff] }
 0x217   :  { %4052 = vmatpush.bf16.msrb.mxu2 %v6353_v53  ;;  %v7240_v53 = vld [vmem:[#allocation8 + $0xb0] sm:$0xff]  ;;  %v3785_v61 = vadd.f32 %v7678_v35, %v3772_v54  ;;  %v7221_v35 = vld [vmem:[#allocation8 + $0x18] sm:$0xff] }
 0x218   :  { %4065 = vmatpush.bf16.msrb.mxu3 %v6481_v58 }
 0x219   :  { %4027 = vmatpush.bf16.msrb.mxu0 %v6081_v8  ;;  %v3798_v57 = vadd.f32 %v7680_v59, %v3785_v61  ;;  %v7220_v8 = vld [vmem:[#allocation8 + $0x10] sm:$0xff]  ;;  %v7245_v61 = vld [vmem:[#allocation8 + $0xd8] sm:$0xff] }
 0x21a   :  { %4040 = vmatpush.bf16.msrb.mxu1 %v6209_v9  ;;  %v7228_v9 = vld [vmem:[#allocation8 + $0x50] sm:$0xff] }
 0x21b   :  { %4053 = vmatpush.bf16.msrb.mxu2 %v6337_v11  ;;  %v7236_v11 = vld [vmem:[#allocation8 + $0x90] sm:$0xff] }
 0x21c   :  { %4066 = vmatpush.bf16.msrb.mxu3 %v6465_v16 }
 0x21d   :  { %4028 = vmatpush.bf16.msrb.mxu0 %v6065_v60  ;;  %v4075_v60 = vmax.f32 %v7649_v49, 0.0 }
 0x21e   :  { %4041 = vmatpush.bf16.msrb.mxu1 %v6193_v33 }
 0x21f   :  { %4054 = vmatpush.bf16.msrb.mxu2 %v6321_v18  ;;  %v4078_v18 = vpack.c.bf16 %v4074_v34, %v4074_v34  ;;  %v4079_v28 = vpack.c.bf16 %v4075_v60, %v4075_v60  ;;  %v7257_v34 = vld [vmem:[#allocation11 + $0x38] sm:$0xff] }
 0x220   :  { %4067 = vmatpush.bf16.msrb.mxu3 %v6449_v37 }
 0x221   :  { %4029 = vmatpush.bf16.msrb.mxu0 %v6049_v43  ;;  %v3823_v58 = vpop.f32.mrf.mxu0 }
 0x222   :  { %4042 = vmatpush.bf16.msrb.mxu1 %v6177_v44 }
 0x223   :  { %4055 = vmatpush.bf16.msrb.mxu2 %v6305_v45 }
 0x224   :  { %4068 = vmatpush.bf16.msrb.mxu3 %v6433_v62  ;;  %4030 = vmatmul.bf16.vlgmr.msrb.gmra.mxu0 %v7585_v13  ;;  %v3836_v13 = vpop.f32.mrf.mxu1 }
 0x225   :  { %4342 = vmatpush.bf16.msra.mxu0 %v7225_v46  ;;  %4043 = vmatmul.bf16.vlgmr.msrb.gmra.mxu1 %v7589_v20  ;;  %v7230_v20 = vld [vmem:[#allocation8 + $0x60] sm:$0xff] }
 0x226   :  { %4355 = vmatpush.bf16.msra.mxu1 %v7233_v47  ;;  %4056 = vmatmul.bf16.vlgmr.msrb.gmra.mxu2 %v7587_v19  ;;  %v7238_v19 = vld [vmem:[#allocation8 + $0xa0] sm:$0xff]  ;;  %v7249_v47 = vld [vmem:[#allocation8 + $0xf8] sm:$0xff] }
 0x227   :  { %4368 = vmatpush.bf16.msra.mxu2 %v7241_v50  ;;  %4069 = vmatmul.bf16.vlgmr.msrb.gmra.mxu3 %v7591_v26  ;;  %v3811_v26 = vadd.f32 %v7682_v6, %v3798_v57  ;;  %v7219_v6 = vld [vmem:[#allocation8 + $0x8] sm:$0xff] }
 0x228   :  { %4381 = vmatpush.bf16.msra.mxu3 %v7249_v47  ;;  %v7243_v57 = vld [vmem:[#allocation8 + $0xc8] sm:$0xff] }
 0x229   :  { %4343 = vmatpush.bf16.msra.mxu0 %v7224_v55  ;;  %v3824_v0 = vadd.f32 %v3823_v58, %v3811_v26  ;;  %v3849_v3 = vpop.f32.mrf.mxu2  ;;  %v3825_v59 = vpop.f32.mrf.mxu0  ;;  %v7247_v55 = vld [vmem:[#allocation8 + $0xe8] sm:$0xff]  ;;  %v7242_v26 = vld [vmem:[#allocation8 + $0xc0] sm:$0xff] }
 0x22a   :  { %4356 = vmatpush.bf16.msra.mxu1 %v7232_v52  ;;  %v3862_v4 = vpop.f32.mrf.mxu3 }
 0x22b   :  { %4369 = vmatpush.bf16.msra.mxu2 %v7240_v53  ;;  %v3837_v5 = vadd.f32 %v3836_v13, %v3824_v0  ;;  %v7246_v53 = vld [vmem:[#allocation8 + $0xe0] sm:$0xff] }
 0x22c   :  { %v3838_v10 = vpop.f32.mrf.mxu1  ;;  %4382 = vmatpush.bf16.msra.mxu3 %v7248_v7 }
 0x22d   :  { %4344 = vmatpush.bf16.msra.mxu0 %v7223_v48  ;;  %v3850_v15 = vadd.f32 %v3849_v3, %v3837_v5 }
 0x22e   :  { %4357 = vmatpush.bf16.msra.mxu1 %v7231_v38 }
 0x22f   :  { %4370 = vmatpush.bf16.msra.mxu2 %v7239_v56  ;;  %v3863_v16 = vadd.f32 %v3862_v4, %v3850_v15  ;;  %v7244_v56 = vld [vmem:[#allocation8 + $0xd0] sm:$0xff] }
 0x230   :  { %4383 = vmatpush.bf16.msra.mxu3 %v7247_v55 }
 0x231   :  { %4345 = vmatpush.bf16.msra.mxu0 %v7222_v63  ;;  %v3851_v25 = vpop.f32.mrf.mxu2  ;;  %v4076_v33 = vmax.f32 %v3863_v16, 0.0 }
 0x232   :  { %4358 = vmatpush.bf16.msra.mxu1 %v7230_v20  ;;  %v3864_v17 = vpop.f32.mrf.mxu3 }
 0x233   :  { %4371 = vmatpush.bf16.msra.mxu2 %v7238_v19  ;;  %v4080_v30 = vpack.c.bf16 %v4076_v33, %v4076_v33 }
 0x234   :  { %4384 = vmatpush.bf16.msra.mxu3 %v7246_v53 }
 0x235   :  { %4346 = vmatpush.bf16.msra.mxu0 %v7221_v35 }
 0x236   :  { %4359 = vmatpush.bf16.msra.mxu1 %v7229_v1 }
 0x237   :  { %4372 = vmatpush.bf16.msra.mxu2 %v7237_v2 }
 0x238   :  { %4385 = vmatpush.bf16.msra.mxu3 %v7245_v61 }
 0x239   :  { %4347 = vmatpush.bf16.msra.mxu0 %v7220_v8 }
 0x23a   :  { %4360 = vmatpush.bf16.msra.mxu1 %v7228_v9 }
 0x23b   :  { %4373 = vmatpush.bf16.msra.mxu2 %v7236_v11 }
 0x23c   :  { %4386 = vmatpush.bf16.msra.mxu3 %v7244_v56 }
 0x23d   :  { %4348 = vmatpush.bf16.msra.mxu0 %v7219_v6 }
 0x23e   :  { %4361 = vmatpush.bf16.msra.mxu1 %v7227_v12 }
 0x23f   :  { %4374 = vmatpush.bf16.msra.mxu2 %v7235_v14 }
 0x240   :  { %4387 = vmatpush.bf16.msra.mxu3 %v7243_v57 }
 0x241   :  { %4349 = vmatpush.bf16.msra.mxu0 %v7218_v21  ;;  %v3875_v37 = vpop.f32.mrf.mxu0 }
 0x242   :  { %4362 = vmatpush.bf16.msra.mxu1 %v7226_v29  ;;  %v3876_v31 = vadd.f32 %v3875_v37, %v677_v32  ;;  %v3888_v22 = vpop.f32.mrf.mxu1  ;;  %v7253_v32 = vld [vmem:[#allocation11 + $0x18] sm:$0xff] }
 0x243   :  { %4375 = vmatpush.bf16.msra.mxu2 %v7234_v24  ;;  %v7256_v24 = vld [vmem:[#allocation11 + $0x30] sm:$0xff] }
 0x244   :  { %4350 = vmatmul.bf16.vlgmr.msra.gmra.mxu0 %v4078_v18  ;;  %v3889_v23 = vadd.f32 %v3888_v22, %v3876_v31  ;;  %4388 = vmatpush.bf16.msra.mxu3 %v7242_v26  ;;  %v7255_v18 = vld [vmem:[#allocation11 + $0x28] sm:$0xff] }
 0x245   :  { %4363 = vmatmul.bf16.vlgmr.msra.gmra.mxu1 %v4079_v28  ;;  %4464 = vmatpush.bf16.msrb.mxu0 %v7257_v34  ;;  %v7254_v28 = vld [vmem:[#allocation11 + $0x20] sm:$0xff] }
 0x246   :  { %4376 = vmatmul.bf16.vlgmr.msra.gmra.mxu2 %v4080_v30  ;;  %v7270_v30 = vld [vmem:[#allocation10] ss:$0 sm:$0xff] }
 0x249   :  { %v3901_v40 = vpop.f32.mrf.mxu2  ;;  %v3877_v39 = vpop.f32.mrf.mxu0  ;;  %4465 = vmatpush.bf16.msrb.mxu0 %v7256_v24 }
 0x24a   :  { %v3902_v27 = vadd.f32 %v3901_v40, %v3889_v23  ;;  %v3914_v36 = vpop.f32.mrf.mxu3  ;;  %v3890_v41 = vpop.f32.mrf.mxu1  ;;  %v7252_v23 = vld [vmem:[#allocation11 + $0x10] sm:$0xff] }
 0x24c   :  { %v3915_v49 = vadd.f32 %v3914_v36, %v3902_v27 }
 0x24d   :  { %4466 = vmatpush.bf16.msrb.mxu0 %v7255_v18 }
 0x251   :  { %v3903_v42 = vpop.f32.mrf.mxu2  ;;  %4467 = vmatpush.bf16.msrb.mxu0 %v7254_v28 }
 0x252   :  { %v3916_v43 = vpop.f32.mrf.mxu3  ;;  %v7251_v42 = vld [vmem:[#allocation11 + $0x8] sm:$0xff] }
 0x253   :  { %v7250_v43 = vld [vmem:[#allocation11] sm:$0xff] }
 0x255   :  { %4468 = vmatpush.bf16.msrb.mxu0 %v7253_v32 }
 0x259   :  { %4469 = vmatpush.bf16.msrb.mxu0 %v7252_v23 }
 0x25d   :  { %4470 = vmatpush.bf16.msrb.mxu0 %v7251_v42 }
 0x261   :  { %v3927_v44 = vpop.f32.mrf.mxu0  ;;  %4471 = vmatpush.bf16.msrb.mxu0 %v7250_v43 }
 0x262   :  { %v3940_v45 = vpop.f32.mrf.mxu1  ;;  %v3928_v58 = vadd.f32 %v3927_v44, %v3915_v49 }
 0x264   :  { %v3941_v0 = vadd.f32 %v3940_v45, %v3928_v58 }
 0x269   :  { %v3953_v62 = vpop.f32.mrf.mxu2  ;;  %v3929_v50 = vpop.f32.mrf.mxu0 }
 0x26a   :  { %v3966_v46 = vpop.f32.mrf.mxu3  ;;  %v3942_v51 = vpop.f32.mrf.mxu1  ;;  %v3954_v35 = vadd.f32 %v3953_v62, %v3941_v0  ;;  %v7271_v50 = vld [vmem:[#allocation13] ss:$0 sm:$0xff] }
 0x26c   :  { %v3967_v3 = vadd.f32 %v3966_v46, %v3954_v35 }
 0x271   :  { %v3955_v54 = vpop.f32.mrf.mxu2 }
 0x272   :  { %v3968_v52 = vpop.f32.mrf.mxu3 }
 0x281   :  { %v3979_v48 = vpop.f32.mrf.mxu0 }
 0x282   :  { %v3992_v38 = vpop.f32.mrf.mxu1  ;;  %v3980_v4 = vadd.f32 %v3979_v48, %v3967_v3 }
 0x284   :  { %v3993_v59 = vadd.f32 %v3992_v38, %v3980_v4 }
 0x289   :  { %v4005_v63 = vpop.f32.mrf.mxu2  ;;  %v3981_v20 = vpop.f32.mrf.mxu0 }
 0x28a   :  { %v4018_v13 = vpop.f32.mrf.mxu3  ;;  %v3994_v19 = vpop.f32.mrf.mxu1  ;;  %v4006_v5 = vadd.f32 %v4005_v63, %v3993_v59 }
 0x28c   :  { %v4019_v8 = vadd.f32 %v4018_v13, %v4006_v5 }
 0x291   :  { %v4007_v1 = vpop.f32.mrf.mxu2 }
 0x292   :  { %v4020_v2 = vpop.f32.mrf.mxu3 }
 0x2a1   :  { %v4031_v10 = vpop.f32.mrf.mxu0 }
 0x2a2   :  { %v4044_v9 = vpop.f32.mrf.mxu1  ;;  %v4032_v11 = vadd.f32 %v4031_v10, %v4019_v8 }
 0x2a4   :  { %v4045_v15 = vadd.f32 %v4044_v9, %v4032_v11 }
 0x2a9   :  { %v4057_v6 = vpop.f32.mrf.mxu2  ;;  %v4033_v16 = vpop.f32.mrf.mxu0 }
 0x2aa   :  { %v4070_v12 = vpop.f32.mrf.mxu3  ;;  %v4058_v14 = vadd.f32 %v4057_v6, %v4045_v15  ;;  %v4046_v25 = vpop.f32.mrf.mxu1 }
 0x2ac   :  { %v4071_v17 = vadd.f32 %v4070_v12, %v4058_v14 }
 0x2ae   :  { %v4077_v21 = vmax.f32 %v4071_v17, 0.0 }
 0x2b0   :  { %v4081_v29 = vpack.c.bf16 %v4077_v21, %v4077_v21 }
 0x2b1   :  { %v4059_v60 = vpop.f32.mrf.mxu2 }
 0x2b2   :  { %v4072_v33 = vpop.f32.mrf.mxu3  ;;  %4389 = vmatmul.bf16.vlgmr.msra.gmra.mxu3 %v4081_v29 }
 0x2c1   :  { %v4351_v37 = vpop.f32.mrf.mxu0 }
 0x2c2   :  { %v4352_v31 = vadd.f32 %v7270_v30, %v4351_v37  ;;  %v4364_v22 = vpop.f32.mrf.mxu1 }
 0x2c4   :  { %v4365_v40 = vadd.f32 %v4364_v22, %v4352_v31 }
 0x2c9   :  { %v4377_v27 = vpop.f32.mrf.mxu2  ;;  %v4353_v49 = vpop.f32.mrf.mxu0 }
 0x2ca   :  { %v4378_v36 = vadd.f32 %v4377_v27, %v4365_v40  ;;  %v4366_v39 = vpop.f32.mrf.mxu1 }
 0x2d1   :  { %v4379_v41 = vpop.f32.mrf.mxu2 }
 0x335   :  { %v4390_v44 = vpop.f32.mrf.mxu3 }
 0x336   :  { %v4391_v45 = vadd.f32 %v4390_v44, %v4378_v36 }
 0x338   :  { %v4394_v62 = vmax.f32 %v4391_v45, 0.0 }
 0x33a   :  { %v4395_v46 = vpack.c.bf16 %v4394_v62, %v4394_v62 }
 0x33c   :  { %4472 = vmatmul.bf16.vlgmr.msrb.gmra.mxu0 %v4395_v46 }
 0x33d   :  { %v4392_v47 = vpop.f32.mrf.mxu3 }
 0x3b9   :  { %v4473_v51 = vpop.f32.mrf.mxu0 }
 0x3ba   :  { %v4474_v7 = vadd.f32 %v7271_v50, %v4473_v51 }
 0x3bc   :  { %4477 = vst [vmem:[#allocation14] sm:$0xff] %v4474_v7 }
 0x3bd   :  { %4488 = dma.vmem_to_hbm [thread:$0]  %s4484_s6, 128, %s4486_s14, [#allocation4]  }
 0x3c1   :  { %v4475_v54 = vpop.f32.mrf.mxu0 }
 0x3c2   :  { %7474 = dma.done.wait [#allocation4], 128  }
 0x3c3   :  { %7475 = vsyncadd [#allocation4], 4294967168 }
 0x3c4   :  { %4493 = vsyncpa [#allocation3], 1 }
 0x3c5   :  { %4494 = vsyncpa [#allocation6], 1 }
 0x3c6   :  { %4495 = vsyncpa [#allocation9], 1 }
 0x3c7   :  { %4496 = vsyncpa [#allocation12], 1 }
 0x3c8   :  { %4497 = vsyncpa [#allocation4], 1 }

</bundles_post_ra>
